<compile_context>
chip_gen: v7x
topology: tpu7x:2x2x1
jax: 0.10.0
libtpu: 0.0.40
codegen_flags: <defaults>
</compile_context>

<pallas_src>
import functools

import numpy as np
import jax
import jax.numpy as jnp
from jax.experimental import pallas as pl
from jax.experimental.pallas import tpu as pltpu

EMBED_DIM = 300          # conv layers require 300 input channels
NUM_FILTERS = 100
CP = 384                 # padded channel width (300 -> 3*128 lanes)
# (kernel_size, padding); conv1-3 read the static embedding, conv4-6 the dynamic.
CONV_CFG = [(3, 1), (4, 2), (5, 2), (3, 1), (4, 2), (5, 2)]
MAX_K = max(k for k, _ in CONV_CFG)
MAX_PAD = max(p for _, p in CONV_CFG)


def _round_up(x, m):
    return ((x + m - 1) // m) * m


# ---------------------------------------------------------------------------
# Pallas kernel: for one block of TB sequences ->
#   conv(static) + conv(dynamic) (fused 5-tap matmuls, big-M) + masked max-pool
#   + bias + ReLU + fc, all in VMEM.
# ---------------------------------------------------------------------------
def fused_textcnn_kernel(xs_ref, xd_ref, ws_ref, wd_ref, bias_ref,
                         fcw_ref, fcb_ref, mask_ref, out_ref, z_scr,
                         *, tb, lp, t_out, m_rows):
    """Refs (leading block dim squeezed by the BlockSpecs):
      xs_ref/xd_ref : (TB*lp, 384)   bf16  TB padded rows, concatenated
      ws_ref/wd_ref : (5, 384, 384)  bf16  fused conv taps (3 branches each)
      bias_ref      : (1, 768)       f32   [static biases | dynamic biases]
      fcw_ref       : (768, 128)     f32   fused fc weight (row/col zero-padded)
      fcb_ref       : (1, 128)       f32
      mask_ref      : (t_out, 384)   f32   additive {0,-1e30} branch/time mask
      out_ref       : (TB, 128)      f32
      z_scr         : (TB, 768)      f32   VMEM scratch for pooled features
    """
    n_taps = ws_ref.shape[0]
    mask = mask_ref[...]                           # hoisted, shared by both branches

    def conv_pool_into(x_ref, w_ref, col_off):
        # 5 independent big-M MXU matmuls (f32 accumulation), tree-summed so the
        # adds don't serialize behind the MXU result path.
        prods = [jnp.dot(x_ref[j:j + m_rows, :], w_ref[j],
                         preferred_element_type=jnp.float32)
                 for j in range(n_taps)]
        while len(prods) > 1:
            nxt = [prods[i] + prods[i + 1] for i in range(0, len(prods) - 1, 2)]
            if len(prods) % 2:
                nxt.append(prods[-1])
            prods = nxt
        acc = prods[0]                             # (m_rows, 384) f32
        # Per-sequence max-pool: row b pools only its own t_out window (so
        # cross-row positions are never read); shorter branches are masked.
        for b in range(tb):
            pooled = jnp.max(acc[b * lp:b * lp + t_out, :] + mask,
                             axis=0, keepdims=True)            # (1, 384)
            z_scr[b:b + 1, col_off:col_off + CP] = pooled

    conv_pool_into(xs_ref, ws_ref, 0)      # static embedding  -> cols [0, 384)
    conv_pool_into(xd_ref, wd_ref, CP)     # dynamic embedding -> cols [384, 768)

    # bias + ReLU after the pool (exact: bias is L-invariant, ReLU monotone),
    # then the fused fc epilogue (dropout is identity at inference).
    z = jnp.maximum(z_scr[...] + bias_ref[...], 0.0)           # (TB, 768)
    out_ref[...] = (jnp.dot(z, fcw_ref[...], preferred_element_type=jnp.float32)
                    + fcb_ref[...])


# ---------------------------------------------------------------------------
# Wrapper: weight fusion + single pallas_call
# ---------------------------------------------------------------------------
def _fuse_group_weights(weights, cfgs):
    """Merge 3 conv branches into one (5, 384, 384) tap tensor (bf16, zero-padded)."""
    fused = jnp.zeros((MAX_K, CP, CP), jnp.bfloat16)
    for i, (w, (k, p)) in enumerate(zip(weights, cfgs)):
        off = MAX_PAD - p                  # tap offset inside the max-pad window
        fused = fused.at[off:off + k, :EMBED_DIM,
                         i * NUM_FILTERS:(i + 1) * NUM_FILTERS].set(
            w.astype(jnp.bfloat16))
    return fused


def _split_batch(batch, lp):
    """Pick rows-per-grid-step TB: big enough to fill the MXU M dim, small enough
    to keep VMEM bounded and >= 2 grid steps (v7x megacore) when batch allows."""
    tb = max(1, min(16, 512 // max(lp, 1), (batch + 1) // 2, batch))
    nblk = -(-batch // tb)
    return tb, nblk


def cnn_forward(params, tokens):
    """tokens: (B, L) int32 -> logits (B, label_size). Mirrors CNN.forward (eval)."""
    B, L = tokens.shape
    assert CONV_CFG[:3] == CONV_CFG[3:]
    cfgs = CONV_CFG[:3]
    l_outs = tuple(L + 2 * p - k + 1 for k, p in cfgs)   # per-branch conv lengths
    t_out = max(l_outs)
    lp = _round_up(t_out + MAX_K - 1, 8)    # per-row padded window, sublane-aligned
    pad_l = MAX_PAD

    TB, nblk = _split_batch(B, lp)
    Bp = nblk * TB
    m_rows = (TB - 1) * lp + t_out          # conv output rows per grid step

    label = params["fc_w"].shape[1]
    LBL = max(128, _round_up(label, 128))   # lane-dense output width

    # ---- padded token ids; pad id maps to the all-zero embedding row --------
    pad_id = params["embed"].shape[0] - 1
    ids = jnp.full((Bp, lp), pad_id, jnp.int32)
    ids = ids.at[:B, pad_l:pad_l + L].set(tokens)
    ids = ids.reshape(nblk, TB * lp)

    # Embedding gathers produce the padded (…,384) activations directly.
    # TODO(synk): embedding lookup stays in XLA (jnp.take); a Pallas gather via
    # scalar-prefetch index_maps is possible but not worth it at these sizes.
    xd = jnp.take(params["embed"], ids, axis=0)           # (nblk, TB*lp, 384) bf16
    xs = jnp.take(params["embed_static"], ids, axis=0)    # (nblk, TB*lp, 384) bf16

    # ---- fused conv weights / biases / fc / mask (static constants) ---------
    ws = _fuse_group_weights([params[f"conv{i}"][0] for i in (1, 2, 3)], cfgs)
    wd = _fuse_group_weights([params[f"conv{i}"][0] for i in (4, 5, 6)], cfgs)

    half = 3 * NUM_FILTERS
    bias = jnp.zeros((1, 2 * CP), jnp.float32)
    bias = bias.at[0, :half].set(
        jnp.concatenate([params[f"conv{i}"][1] for i in (1, 2, 3)]))
    bias = bias.at[0, CP:CP + half].set(
        jnp.concatenate([params[f"conv{i}"][1] for i in (4, 5, 6)]))

    fcw = jnp.zeros((2 * CP, LBL), jnp.float32)
    fcw = fcw.at[:half, :label].set(params["fc_w"][:half])
    fcw = fcw.at[CP:CP + half, :label].set(params["fc_w"][half:])
    fcb = jnp.zeros((1, LBL), jnp.float32).at[0, :label].set(params["fc_b"])

    # Additive {0, -1e30} mask: rows = time within a sequence window, cols =
    # fused output channels (branches have different valid output lengths).
    vlen = np.zeros((CP,), np.int32)
    for i, vl in enumerate(l_outs):
        vlen[i * NUM_FILTERS:(i + 1) * NUM_FILTERS] = vl
    vlen[half:] = t_out                      # structurally-zero pad channels: unmasked
    mask = jnp.asarray(
        np.where(np.arange(t_out)[:, None] < vlen[None, :], 0.0, -1e30),
        dtype=jnp.float32)

    kernel = functools.partial(fused_textcnn_kernel, tb=TB, lp=lp,
                               t_out=t_out, m_rows=m_rows)
    out = pl.pallas_call(
        kernel,
        out_shape=jax.ShapeDtypeStruct((nblk, TB, LBL), jnp.float32),
        grid=(nblk,),
        in_specs=[
            pl.BlockSpec((None, TB * lp, CP), lambda i: (i, 0, 0)),   # xs
            pl.BlockSpec((None, TB * lp, CP), lambda i: (i, 0, 0)),   # xd
            pl.BlockSpec((MAX_K, CP, CP), lambda i: (0, 0, 0)),       # ws (resident)
            pl.BlockSpec((MAX_K, CP, CP), lambda i: (0, 0, 0)),       # wd (resident)
            pl.BlockSpec((1, 2 * CP), lambda i: (0, 0)),              # fused biases
            pl.BlockSpec((2 * CP, LBL), lambda i: (0, 0)),            # fused fc weight
            pl.BlockSpec((1, LBL), lambda i: (0, 0)),                 # fc bias
            pl.BlockSpec((t_out, CP), lambda i: (0, 0)),              # time/branch mask
        ],
        out_specs=pl.BlockSpec((None, TB, LBL), lambda i: (i, 0, 0)),
        scratch_shapes=[pltpu.VMEM((TB, 2 * CP), jnp.float32)],
        compiler_params=pltpu.CompilerParams(
            dimension_semantics=("parallel",)),   # batch blocks across TensorCores
    )(xs, xd, ws, wd, bias, fcw, fcb, mask)

    return out.reshape(Bp, LBL)[:B, :label]


# ---------------------------------------------------------------------------
# Parameter init (mirrors the PyTorch CNN module; random in place of pretrained)
# ---------------------------------------------------------------------------
def init_params(key, vocab_size, label_size):
    keys = jax.random.split(key, 16)

    def table(k):
        # (vocab+1, 384): row `vocab` is the all-zero pad row, cols 300:384 zero.
        t = jnp.zeros((vocab_size + 1, CP), jnp.float32)
        t = t.at[:vocab_size, :EMBED_DIM].set(
            0.1 * jax.random.normal(k, (vocab_size, EMBED_DIM)))
        return t.astype(jnp.bfloat16)

    params = {"embed": table(keys[0]), "embed_static": table(keys[1])}
    for idx, (k, _) in enumerate(CONV_CFG):
        # torch Conv1d weight is (Cout, Cin, K); stored here transposed (K, Cin, Cout).
        w = (0.05 * jax.random.normal(keys[2 + 2 * idx],
                                      (k, EMBED_DIM, NUM_FILTERS))).astype(jnp.bfloat16)
        b = 0.05 * jax.random.normal(keys[3 + 2 * idx], (NUM_FILTERS,),
                                     dtype=jnp.float32)
        params[f"conv{idx + 1}"] = (w, b)
    params["fc_w"] = 0.05 * jax.random.normal(
        keys[14], (6 * NUM_FILTERS, label_size), dtype=jnp.float32)
    params["fc_b"] = 0.05 * jax.random.normal(
        keys[15], (label_size,), dtype=jnp.float32)
    return params


if __name__ == "__main__":
    key = jax.random.PRNGKey(0)
    k_params, k_tokens = jax.random.split(key)

    vocab_size = 50
    label_size = 5
    B, L = 2, 16

    params = init_params(k_params, vocab_size, label_size)
    tokens = jax.random.randint(k_tokens, (B, L), 0, vocab_size, dtype=jnp.int32)

    y = jax.jit(cnn_forward)(params, tokens)
    y = jax.block_until_ready(y)
    assert y.shape == (B, label_size), y.shape
    print("KERNEL_OK")
</pallas_src>

<mosaic_0001>
module attributes {stable_mosaic.version = 11 : i64} {
  func.func @fused_textcnn_kernel(%arg0: i32, %arg1: memref<1x24x384xbf16, #tpu.memory_space<vmem>>, %arg2: memref<1x24x384xbf16, #tpu.memory_space<vmem>>, %arg3: memref<5x384x384xbf16, #tpu.memory_space<vmem>>, %arg4: memref<5x384x384xbf16, #tpu.memory_space<vmem>>, %arg5: memref<1x768xf32, #tpu.memory_space<vmem>>, %arg6: memref<768x128xf32, #tpu.memory_space<vmem>>, %arg7: memref<1x128xf32, #tpu.memory_space<vmem>>, %arg8: memref<17x384xf32, #tpu.memory_space<vmem>>, %arg9: memref<1x1x128xf32, #tpu.memory_space<vmem>>, %arg10: memref<1x768xf32, #tpu.memory_space<vmem>>) attributes {dimension_semantics = [#tpu.dimension_semantics<parallel>], iteration_bounds = array<i64: 2>, scalar_prefetch = 0 : i64, scratch_operands = 1 : i64, tpu.core_type = #tpu.core_type<tc>, window_params = [{transform_indices = @transform_0, window_bounds = array<i64: 1, 24, 384>}, {transform_indices = @transform_1, window_bounds = array<i64: 1, 24, 384>}, {pipeline_mode = #tpu.pipeline_mode<synchronous>, transform_indices = @transform_2, window_bounds = array<i64: 5, 384, 384>}, {pipeline_mode = #tpu.pipeline_mode<synchronous>, transform_indices = @transform_3, window_bounds = array<i64: 5, 384, 384>}, {pipeline_mode = #tpu.pipeline_mode<synchronous>, transform_indices = @transform_4, window_bounds = array<i64: 1, 768>}, {pipeline_mode = #tpu.pipeline_mode<synchronous>, transform_indices = @transform_5, window_bounds = array<i64: 768, 128>}, {pipeline_mode = #tpu.pipeline_mode<synchronous>, transform_indices = @transform_6, window_bounds = array<i64: 1, 128>}, {pipeline_mode = #tpu.pipeline_mode<synchronous>, transform_indices = @transform_7, window_bounds = array<i64: 17, 384>}, {transform_indices = @transform_8, window_bounds = array<i64: 1, 1, 128>}]} {
    %c0 = arith.constant 0 : index
    %c0_0 = arith.constant 0 : index
    %0 = vector.load %arg8[%c0, %c0_0] : memref<17x384xf32, #tpu.memory_space<vmem>>, vector<17x384xf32>
    %c0_1 = arith.constant 0 : index
    %c0_2 = arith.constant 0 : index
    %c0_3 = arith.constant 0 : index
    %1 = vector.load %arg1[%c0_1, %c0_2, %c0_3] : memref<1x24x384xbf16, #tpu.memory_space<vmem>>, vector<1x17x384xbf16>
    %2 = vector.shape_cast %1 : vector<1x17x384xbf16> to vector<17x384xbf16>
    %c0_4 = arith.constant 0 : index
    %c0_5 = arith.constant 0 : index
    %c0_6 = arith.constant 0 : index
    %3 = vector.load %arg3[%c0_4, %c0_5, %c0_6] : memref<5x384x384xbf16, #tpu.memory_space<vmem>>, vector<1x384x384xbf16>
    %4 = vector.shape_cast %3 : vector<1x384x384xbf16> to vector<384x384xbf16>
    %cst = arith.constant dense<0.000000e+00> : vector<17x384xf32>
    %5 = tpu.matmul %2, %4, %cst {dimension_numbers = #tpu.dot_dimension_numbers<[1], [0], [0], [1], [0, 0, 1, 1], [], []>} : vector<17x384xbf16>, vector<384x384xbf16>, vector<17x384xf32> -> vector<17x384xf32>
    %c0_7 = arith.constant 0 : index
    %c1 = arith.constant 1 : index
    %c0_8 = arith.constant 0 : index
    %6 = vector.load %arg1[%c0_7, %c1, %c0_8] : memref<1x24x384xbf16, #tpu.memory_space<vmem>>, vector<1x17x384xbf16>
    %7 = vector.shape_cast %6 : vector<1x17x384xbf16> to vector<17x384xbf16>
    %c1_9 = arith.constant 1 : index
    %c0_10 = arith.constant 0 : index
    %c0_11 = arith.constant 0 : index
    %8 = vector.load %arg3[%c1_9, %c0_10, %c0_11] : memref<5x384x384xbf16, #tpu.memory_space<vmem>>, vector<1x384x384xbf16>
    %9 = vector.shape_cast %8 : vector<1x384x384xbf16> to vector<384x384xbf16>
    %cst_12 = arith.constant dense<0.000000e+00> : vector<17x384xf32>
    %10 = tpu.matmul %7, %9, %cst_12 {dimension_numbers = #tpu.dot_dimension_numbers<[1], [0], [0], [1], [0, 0, 1, 1], [], []>} : vector<17x384xbf16>, vector<384x384xbf16>, vector<17x384xf32> -> vector<17x384xf32>
    %c0_13 = arith.constant 0 : index
    %c2 = arith.constant 2 : index
    %c0_14 = arith.constant 0 : index
    %11 = vector.load %arg1[%c0_13, %c2, %c0_14] : memref<1x24x384xbf16, #tpu.memory_space<vmem>>, vector<1x17x384xbf16>
    %12 = vector.shape_cast %11 : vector<1x17x384xbf16> to vector<17x384xbf16>
    %c2_15 = arith.constant 2 : index
    %c0_16 = arith.constant 0 : index
    %c0_17 = arith.constant 0 : index
    %13 = vector.load %arg3[%c2_15, %c0_16, %c0_17] : memref<5x384x384xbf16, #tpu.memory_space<vmem>>, vector<1x384x384xbf16>
    %14 = vector.shape_cast %13 : vector<1x384x384xbf16> to vector<384x384xbf16>
    %cst_18 = arith.constant dense<0.000000e+00> : vector<17x384xf32>
    %15 = tpu.matmul %12, %14, %cst_18 {dimension_numbers = #tpu.dot_dimension_numbers<[1], [0], [0], [1], [0, 0, 1, 1], [], []>} : vector<17x384xbf16>, vector<384x384xbf16>, vector<17x384xf32> -> vector<17x384xf32>
    %c0_19 = arith.constant 0 : index
    %c3 = arith.constant 3 : index
    %c0_20 = arith.constant 0 : index
    %16 = vector.load %arg1[%c0_19, %c3, %c0_20] : memref<1x24x384xbf16, #tpu.memory_space<vmem>>, vector<1x17x384xbf16>
    %17 = vector.shape_cast %16 : vector<1x17x384xbf16> to vector<17x384xbf16>
    %c3_21 = arith.constant 3 : index
    %c0_22 = arith.constant 0 : index
    %c0_23 = arith.constant 0 : index
    %18 = vector.load %arg3[%c3_21, %c0_22, %c0_23] : memref<5x384x384xbf16, #tpu.memory_space<vmem>>, vector<1x384x384xbf16>
    %19 = vector.shape_cast %18 : vector<1x384x384xbf16> to vector<384x384xbf16>
    %cst_24 = arith.constant dense<0.000000e+00> : vector<17x384xf32>
    %20 = tpu.matmul %17, %19, %cst_24 {dimension_numbers = #tpu.dot_dimension_numbers<[1], [0], [0], [1], [0, 0, 1, 1], [], []>} : vector<17x384xbf16>, vector<384x384xbf16>, vector<17x384xf32> -> vector<17x384xf32>
    %c0_25 = arith.constant 0 : index
    %c4 = arith.constant 4 : index
    %c0_26 = arith.constant 0 : index
    %21 = vector.load %arg1[%c0_25, %c4, %c0_26] : memref<1x24x384xbf16, #tpu.memory_space<vmem>>, vector<1x17x384xbf16>
    %22 = vector.shape_cast %21 : vector<1x17x384xbf16> to vector<17x384xbf16>
    %c4_27 = arith.constant 4 : index
    %c0_28 = arith.constant 0 : index
    %c0_29 = arith.constant 0 : index
    %23 = vector.load %arg3[%c4_27, %c0_28, %c0_29] : memref<5x384x384xbf16, #tpu.memory_space<vmem>>, vector<1x384x384xbf16>
    %24 = vector.shape_cast %23 : vector<1x384x384xbf16> to vector<384x384xbf16>
    %cst_30 = arith.constant dense<0.000000e+00> : vector<17x384xf32>
    %25 = tpu.matmul %22, %24, %cst_30 {dimension_numbers = #tpu.dot_dimension_numbers<[1], [0], [0], [1], [0, 0, 1, 1], [], []>} : vector<17x384xbf16>, vector<384x384xbf16>, vector<17x384xf32> -> vector<17x384xf32>
    %26 = arith.addf %5, %10 : vector<17x384xf32>
    %27 = arith.addf %15, %20 : vector<17x384xf32>
    %28 = arith.addf %26, %27 : vector<17x384xf32>
    %29 = arith.addf %28, %25 : vector<17x384xf32>
    %30 = arith.addf %29, %0 : vector<17x384xf32>
    %cst_31 = arith.constant dense<0xFF800000> : vector<384xf32>
    %31 = vector.multi_reduction <maximumf>, %30, %cst_31 [0] : vector<17x384xf32> to vector<384xf32>
    %32 = vector.shape_cast %31 : vector<384xf32> to vector<1x384xf32>
    %c0_32 = arith.constant 0 : index
    %c0_33 = arith.constant 0 : index
    %33 = vector.load %arg10[%c0_32, %c0_33] : memref<1x768xf32, #tpu.memory_space<vmem>>, vector<1x384xf32>
    tpu.vector_store %arg10[%c0_32, %c0_33], %32 {strides = array<i32>} : memref<1x768xf32, #tpu.memory_space<vmem>>, vector<1x384xf32>,
    %c0_34 = arith.constant 0 : index
    %c0_35 = arith.constant 0 : index
    %c0_36 = arith.constant 0 : index
    %34 = vector.load %arg2[%c0_34, %c0_35, %c0_36] : memref<1x24x384xbf16, #tpu.memory_space<vmem>>, vector<1x17x384xbf16>
    %35 = vector.shape_cast %34 : vector<1x17x384xbf16> to vector<17x384xbf16>
    %c0_37 = arith.constant 0 : index
    %c0_38 = arith.constant 0 : index
    %c0_39 = arith.constant 0 : index
    %36 = vector.load %arg4[%c0_37, %c0_38, %c0_39] : memref<5x384x384xbf16, #tpu.memory_space<vmem>>, vector<1x384x384xbf16>
    %37 = vector.shape_cast %36 : vector<1x384x384xbf16> to vector<384x384xbf16>
    %cst_40 = arith.constant dense<0.000000e+00> : vector<17x384xf32>
    %38 = tpu.matmul %35, %37, %cst_40 {dimension_numbers = #tpu.dot_dimension_numbers<[1], [0], [0], [1], [0, 0, 1, 1], [], []>} : vector<17x384xbf16>, vector<384x384xbf16>, vector<17x384xf32> -> vector<17x384xf32>
    %c0_41 = arith.constant 0 : index
    %c1_42 = arith.constant 1 : index
    %c0_43 = arith.constant 0 : index
    %39 = vector.load %arg2[%c0_41, %c1_42, %c0_43] : memref<1x24x384xbf16, #tpu.memory_space<vmem>>, vector<1x17x384xbf16>
    %40 = vector.shape_cast %39 : vector<1x17x384xbf16> to vector<17x384xbf16>
    %c1_44 = arith.constant 1 : index
    %c0_45 = arith.constant 0 : index
    %c0_46 = arith.constant 0 : index
    %41 = vector.load %arg4[%c1_44, %c0_45, %c0_46] : memref<5x384x384xbf16, #tpu.memory_space<vmem>>, vector<1x384x384xbf16>
    %42 = vector.shape_cast %41 : vector<1x384x384xbf16> to vector<384x384xbf16>
    %cst_47 = arith.constant dense<0.000000e+00> : vector<17x384xf32>
    %43 = tpu.matmul %40, %42, %cst_47 {dimension_numbers = #tpu.dot_dimension_numbers<[1], [0], [0], [1], [0, 0, 1, 1], [], []>} : vector<17x384xbf16>, vector<384x384xbf16>, vector<17x384xf32> -> vector<17x384xf32>
    %c0_48 = arith.constant 0 : index
    %c2_49 = arith.constant 2 : index
    %c0_50 = arith.constant 0 : index
    %44 = vector.load %arg2[%c0_48, %c2_49, %c0_50] : memref<1x24x384xbf16, #tpu.memory_space<vmem>>, vector<1x17x384xbf16>
    %45 = vector.shape_cast %44 : vector<1x17x384xbf16> to vector<17x384xbf16>
    %c2_51 = arith.constant 2 : index
    %c0_52 = arith.constant 0 : index
    %c0_53 = arith.constant 0 : index
    %46 = vector.load %arg4[%c2_51, %c0_52, %c0_53] : memref<5x384x384xbf16, #tpu.memory_space<vmem>>, vector<1x384x384xbf16>
    %47 = vector.shape_cast %46 : vector<1x384x384xbf16> to vector<384x384xbf16>
    %cst_54 = arith.constant dense<0.000000e+00> : vector<17x384xf32>
    %48 = tpu.matmul %45, %47, %cst_54 {dimension_numbers = #tpu.dot_dimension_numbers<[1], [0], [0], [1], [0, 0, 1, 1], [], []>} : vector<17x384xbf16>, vector<384x384xbf16>, vector<17x384xf32> -> vector<17x384xf32>
    %c0_55 = arith.constant 0 : index
    %c3_56 = arith.constant 3 : index
    %c0_57 = arith.constant 0 : index
    %49 = vector.load %arg2[%c0_55, %c3_56, %c0_57] : memref<1x24x384xbf16, #tpu.memory_space<vmem>>, vector<1x17x384xbf16>
    %50 = vector.shape_cast %49 : vector<1x17x384xbf16> to vector<17x384xbf16>
    %c3_58 = arith.constant 3 : index
    %c0_59 = arith.constant 0 : index
    %c0_60 = arith.constant 0 : index
    %51 = vector.load %arg4[%c3_58, %c0_59, %c0_60] : memref<5x384x384xbf16, #tpu.memory_space<vmem>>, vector<1x384x384xbf16>
    %52 = vector.shape_cast %51 : vector<1x384x384xbf16> to vector<384x384xbf16>
    %cst_61 = arith.constant dense<0.000000e+00> : vector<17x384xf32>
    %53 = tpu.matmul %50, %52, %cst_61 {dimension_numbers = #tpu.dot_dimension_numbers<[1], [0], [0], [1], [0, 0, 1, 1], [], []>} : vector<17x384xbf16>, vector<384x384xbf16>, vector<17x384xf32> -> vector<17x384xf32>
    %c0_62 = arith.constant 0 : index
    %c4_63 = arith.constant 4 : index
    %c0_64 = arith.constant 0 : index
    %54 = vector.load %arg2[%c0_62, %c4_63, %c0_64] : memref<1x24x384xbf16, #tpu.memory_space<vmem>>, vector<1x17x384xbf16>
    %55 = vector.shape_cast %54 : vector<1x17x384xbf16> to vector<17x384xbf16>
    %c4_65 = arith.constant 4 : index
    %c0_66 = arith.constant 0 : index
    %c0_67 = arith.constant 0 : index
    %56 = vector.load %arg4[%c4_65, %c0_66, %c0_67] : memref<5x384x384xbf16, #tpu.memory_space<vmem>>, vector<1x384x384xbf16>
    %57 = vector.shape_cast %56 : vector<1x384x384xbf16> to vector<384x384xbf16>
    %cst_68 = arith.constant dense<0.000000e+00> : vector<17x384xf32>
    %58 = tpu.matmul %55, %57, %cst_68 {dimension_numbers = #tpu.dot_dimension_numbers<[1], [0], [0], [1], [0, 0, 1, 1], [], []>} : vector<17x384xbf16>, vector<384x384xbf16>, vector<17x384xf32> -> vector<17x384xf32>
    %59 = arith.addf %38, %43 : vector<17x384xf32>
    %60 = arith.addf %48, %53 : vector<17x384xf32>
    %61 = arith.addf %59, %60 : vector<17x384xf32>
    %62 = arith.addf %61, %58 : vector<17x384xf32>
    %63 = arith.addf %62, %0 : vector<17x384xf32>
    %cst_69 = arith.constant dense<0xFF800000> : vector<384xf32>
    %64 = vector.multi_reduction <maximumf>, %63, %cst_69 [0] : vector<17x384xf32> to vector<384xf32>
    %65 = vector.shape_cast %64 : vector<384xf32> to vector<1x384xf32>
    %c0_70 = arith.constant 0 : index
    %c384 = arith.constant 384 : index
    %66 = vector.load %arg10[%c0_70, %c384] : memref<1x768xf32, #tpu.memory_space<vmem>>, vector<1x384xf32>
    tpu.vector_store %arg10[%c0_70, %c384], %65 {strides = array<i32>} : memref<1x768xf32, #tpu.memory_space<vmem>>, vector<1x384xf32>,
    %c0_71 = arith.constant 0 : index
    %c0_72 = arith.constant 0 : index
    %67 = vector.load %arg10[%c0_71, %c0_72] : memref<1x768xf32, #tpu.memory_space<vmem>>, vector<1x768xf32>
    %c0_73 = arith.constant 0 : index
    %c0_74 = arith.constant 0 : index
    %68 = vector.load %arg5[%c0_73, %c0_74] : memref<1x768xf32, #tpu.memory_space<vmem>>, vector<1x768xf32>
    %69 = arith.addf %67, %68 : vector<1x768xf32>
    %cst_75 = arith.constant 0.000000e+00 : f32
    %70 = vector.broadcast %cst_75 : f32 to vector<1x768xf32>
    %71 = arith.maximumf %69, %70 : vector<1x768xf32>
    %c0_76 = arith.constant 0 : index
    %c0_77 = arith.constant 0 : index
    %72 = vector.load %arg6[%c0_76, %c0_77] : memref<768x128xf32, #tpu.memory_space<vmem>>, vector<768x128xf32>
    %cst_78 = arith.constant dense<0.000000e+00> : vector<1x128xf32>
    %73 = tpu.matmul %71, %72, %cst_78 {dimension_numbers = #tpu.dot_dimension_numbers<[1], [0], [0], [1], [0, 0, 1, 1], [], []>} : vector<1x768xf32>, vector<768x128xf32>, vector<1x128xf32> -> vector<1x128xf32>
    %c0_79 = arith.constant 0 : index
    %c0_80 = arith.constant 0 : index
    %74 = vector.load %arg7[%c0_79, %c0_80] : memref<1x128xf32, #tpu.memory_space<vmem>>, vector<1x128xf32>
    %75 = arith.addf %73, %74 : vector<1x128xf32>
    %c0_81 = arith.constant 0 : index
    %c0_82 = arith.constant 0 : index
    %c0_83 = arith.constant 0 : index
    %76 = vector.load %arg9[%c0_81, %c0_82, %c0_83] : memref<1x1x128xf32, #tpu.memory_space<vmem>>, vector<1x1x128xf32>
    %77 = vector.shape_cast %76 : vector<1x1x128xf32> to vector<1x128xf32>
    %78 = vector.shape_cast %75 : vector<1x128xf32> to vector<1x1x128xf32>
    tpu.vector_store %arg9[%c0_81, %c0_82, %c0_83], %78 {strides = array<i32>} : memref<1x1x128xf32, #tpu.memory_space<vmem>>, vector<1x1x128xf32>,
    return
  }
  func.func @transform_0(%arg0: i32) -> (i32, i32, i32) {
    %c0_i32 = arith.constant 0 : i32
    %c0_i32_0 = arith.constant 0 : i32
    %c0_i32_1 = arith.constant 0 : i32
    return %arg0, %c0_i32, %c0_i32_0 : i32, i32, i32
  }
  func.func @transform_1(%arg0: i32) -> (i32, i32, i32) {
    %c0_i32 = arith.constant 0 : i32
    %c0_i32_0 = arith.constant 0 : i32
    %c0_i32_1 = arith.constant 0 : i32
    return %arg0, %c0_i32, %c0_i32_0 : i32, i32, i32
  }
  func.func @transform_2(%arg0: i32) -> (i32, i32, i32) {
    %c0_i32 = arith.constant 0 : i32
    %c0_i32_0 = arith.constant 0 : i32
    %c0_i32_1 = arith.constant 0 : i32
    %c0_i32_2 = arith.constant 0 : i32
    return %c0_i32, %c0_i32_0, %c0_i32_1 : i32, i32, i32
  }
  func.func @transform_3(%arg0: i32) -> (i32, i32, i32) {
    %c0_i32 = arith.constant 0 : i32
    %c0_i32_0 = arith.constant 0 : i32
    %c0_i32_1 = arith.constant 0 : i32
    %c0_i32_2 = arith.constant 0 : i32
    return %c0_i32, %c0_i32_0, %c0_i32_1 : i32, i32, i32
  }
  func.func @transform_4(%arg0: i32) -> (i32, i32) {
    %c0_i32 = arith.constant 0 : i32
    %c0_i32_0 = arith.constant 0 : i32
    %c0_i32_1 = arith.constant 0 : i32
    return %c0_i32, %c0_i32_0 : i32, i32
  }
  func.func @transform_5(%arg0: i32) -> (i32, i32) {
    %c0_i32 = arith.constant 0 : i32
    %c0_i32_0 = arith.constant 0 : i32
    %c0_i32_1 = arith.constant 0 : i32
    return %c0_i32, %c0_i32_0 : i32, i32
  }
  func.func @transform_6(%arg0: i32) -> (i32, i32) {
    %c0_i32 = arith.constant 0 : i32
    %c0_i32_0 = arith.constant 0 : i32
    %c0_i32_1 = arith.constant 0 : i32
    return %c0_i32, %c0_i32_0 : i32, i32
  }
  func.func @transform_7(%arg0: i32) -> (i32, i32) {
    %c0_i32 = arith.constant 0 : i32
    %c0_i32_0 = arith.constant 0 : i32
    %c0_i32_1 = arith.constant 0 : i32
    return %c0_i32, %c0_i32_0 : i32, i32
  }
  func.func @transform_8(%arg0: i32) -> (i32, i32, i32) {
    %c0_i32 = arith.constant 0 : i32
    %c0_i32_0 = arith.constant 0 : i32
    %c0_i32_1 = arith.constant 0 : i32
    return %arg0, %c0_i32, %c0_i32_0 : i32, i32, i32
  }
}

</mosaic_0001>

<bundles_post_ra>
// kernel: cnn_forward.1
= control target key start
LH: loop header
LB: loop body
LE: loop exit
PB: predicated region body
PF: predicated region fallthrough
CT: control target
= control target key end

     0   :  { %13 = vsyncpa [#allocation4], 0  ;;  %s15018_s0 = inlined_call_operand.vmem [shape: bf16[2,24,384], index: 0, kind: input, shape index: {}]   ;;  %s15019_s1 = inlined_call_operand.vmem [shape: bf16[2,24,384], index: 1, kind: input, shape index: {}]   ;;  %s15020_s2 = inlined_call_operand.vmem [shape: bf16[5,384,384], index: 2, kind: input, shape index: {}]   ;;  %s15021_s3 = inlined_call_operand.vmem [shape: bf16[5,384,384], index: 3, kind: input, shape index: {}]   ;;  %s15022_s4 = inlined_call_operand.vmem [shape: f32[1,768], index: 4, kind: input, shape index: {}]   ;;  %s15023_s5 = inlined_call_operand.vmem [shape: f32[768,128], index: 5, kind: input, shape index: {}]   ;;  %s15024_s6 = inlined_call_operand.vmem [shape: f32[1,128], index: 6, kind: input, shape index: {}]   ;;  %s15025_s7 = inlined_call_operand.vmem [shape: f32[17,384], index: 7, kind: input, shape index: {}]   ;;  %s15026_s8 = inlined_call_operand.hbm [shape: f32[2,1,128], index: 8, kind: output, shape index: {}]  }
   0x1   :  { %15 = vsyncpa [#allocation4 + $0x1], 0  ;;  %s11681_s27 = smov 0   ;;  %s11683_s28 = smov 0  }
   0x2   :  { %s11685_s29 = smov 0   ;;  %s11687_s30 = smov 0  }
   0x3 LB: > { %s11702_s9 = sadd.s32 4294967295, %s11631_s30   ;;  %s8133_s10 = sadd.s32 4294967294, %s11631_s30   ;;  %s11631_s30 = sphi %s11687_s30, %s15034_s30   ;;  %s11627_s29 = sphi %s11685_s29, %s15033_s29   ;;  %s11623_s28 = sphi %s11683_s28, %s15032_s28   ;;  %s11619_s27 = sphi %s11681_s27, %s15031_s27  }
   0x4   : > { %s11706_s11 = sadd.s32 1, %s11631_s30   ;;  %s206_s12 = sadd.s32 1, %s11627_s29 }
   0x5   : > { %s203_s13 = ssub.s32 %s11631_s30, %s11706_s11  ;;  %p216_p0 = scmp.ne.s32.totalorder %s11627_s29, %s11623_s28 }
   0x6   : > { %p204_p1 = scmp.eq.s32.totalorder %s203_s13, 0  ;;  %p217_p2 = scmp.eq.s32.totalorder %s11702_s9, 1 }
   0x7   : > { %p222_p3 = scmp.ne.s32.totalorder %s11623_s28, %s11619_s27  ;;  %p223_p4 = scmp.eq.s32.totalorder %s8133_s10, 1 }
   0x8   : > { %s11717_s14 = scalar_select %p204_p1, %s11627_s29, %s206_s12  }
   0x9   : > { %p11719_p5 = por %p217_p2, %p216_p0  ;;  %p11723_p6 = por %p223_p4, %p222_p3 }
   0xa   : > { %p8136_p7 = scmp.ge.s32.totalorder %s11631_s30, 1  ;;  %p275_p8 = scmp.lt.s32.totalorder %s11631_s30, 3 }
   0xc   : > { %p276_p9 = pnand %p8136_p7, %p275_p8 }
   0xd   : > { %v10561_v0 = vld [vmem:[%s15020_s2 + $0x244] ss:$12 sps:$4 sm:$0xff] (!%p276_p9)   ;;  %v10563_v1 = vld [vmem:[%s15020_s2 + $0x3c8] ss:$12 sps:$4 sm:$0xff] (!%p276_p9)   ;;  %v10564_v2 = vld [vmem:[%s15020_s2 + $0x240] ss:$12 sps:$4 sm:$0xff] (!%p276_p9)  }
   0xe   : > { %279 = sbr.rel (%p276_p9) target bundleno = 1410 (0x582), region = 52  ;;  %986 = vmatprep.subr.bf16.mxu0 (!%p276_p9), %v10561_v0  ;;  %p313_p10 = scmp.lt.s32.totalorder (!%p276_p9), %s11702_s9, 1  ;;  %10151 = vmatprep.subr.bf16.mxu1 (!%p276_p9), %v10563_v1  ;;  %v10565_v3 = vld [vmem:[%s15020_s2 + $0x25c] ss:$12 sps:$4 sm:$0xff] (!%p276_p9)   ;;  %v10567_v4 = vld [vmem:[%s15020_s2 + $0x3e0] ss:$12 sps:$4 sm:$0xff] (!%p276_p9)  }
   0xf   : > { %987 = vmatpush1.bf16.msra.mxu0 (!%p276_p9), %v10564_v2  ;;  %10152 = vmatpush3.bf16.msra.mxu1 (!%p276_p9), %v10563_v1  ;;  %v10568_v5 = vld [vmem:[%s15020_s2 + $0x258] ss:$12 sps:$4 sm:$0xff] (!%p276_p9)   ;;  %v10569_v6 = vld [vmem:[%s15020_s2 + $0x274] ss:$12 sps:$4 sm:$0xff] (!%p276_p9)   ;;  %v10572_v8 = vld [vmem:[%s15020_s2 + $0x270] ss:$12 sps:$4 sm:$0xff] (!%p276_p9)  }
  0x10   : > { %988 = vmatprep.subr.bf16.mxu0 (!%p276_p9), %v10565_v3  ;;  %10153 = vmatprep.subr.bf16.mxu1 (!%p276_p9), %v10567_v4  ;;  %v10571_v7 = vld [vmem:[%s15020_s2 + $0x3f8] ss:$12 sps:$4 sm:$0xff] (!%p276_p9)   ;;  %v10575_v10 = vld [vmem:[%s15020_s2 + $0x410] ss:$12 sps:$4 sm:$0xff] (!%p276_p9)   ;;  %v10576_v11 = vld [vmem:[%s15020_s2 + $0x288] ss:$12 sps:$4 sm:$0xff] (!%p276_p9)  }
  0x11   : > { %v10573_v9 = vld [vmem:[%s15020_s2 + $0x28c] ss:$12 sps:$4 sm:$0xff] (!%p276_p9)   ;;  %v10577_v12 = vld [vmem:[%s15020_s2 + $0x2a4] ss:$12 sps:$4 sm:$0xff] (!%p276_p9)   ;;  %v10579_v13 = vld [vmem:[%s15020_s2 + $0x428] ss:$12 sps:$4 sm:$0xff] (!%p276_p9)  }
  0x12   : > { %v10580_v14 = vld [vmem:[%s15020_s2 + $0x2a0] ss:$12 sps:$4 sm:$0xff] (!%p276_p9)   ;;  %v10581_v15 = vld [vmem:[%s15020_s2 + $0x2bc] ss:$12 sps:$4 sm:$0xff] (!%p276_p9)   ;;  %v10584_v17 = vld [vmem:[%s15020_s2 + $0x2b8] ss:$12 sps:$4 sm:$0xff] (!%p276_p9)  }
  0x13   : > { %989 = vmatpush1.bf16.msra.mxu0 (!%p276_p9), %v10568_v5  ;;  %10154 = vmatpush3.bf16.msra.mxu1 (!%p276_p9), %v10567_v4  ;;  %v10583_v16 = vld [vmem:[%s15020_s2 + $0x440] ss:$12 sps:$4 sm:$0xff] (!%p276_p9)   ;;  %v10587_v23 = vld [vmem:[%s15020_s2 + $0x458] ss:$12 sps:$4 sm:$0xff] (!%p276_p9)   ;;  %vm553_vm0 = vsmask.f32 (!%p276_p9), 7424 }
  0x14   : > { %990 = vmatprep.subr.bf16.mxu0 (!%p276_p9), %v10569_v6  ;;  %10155 = vmatprep.subr.bf16.mxu1 (!%p276_p9), %v10571_v7  ;;  %v10585_v20 = vld [vmem:[%s15020_s2 + $0x2d4] ss:$12 sps:$4 sm:$0xff] (!%p276_p9)   ;;  %v10588_v27 = vld [vmem:[%s15020_s2 + $0x2d0] ss:$12 sps:$4 sm:$0xff] (!%p276_p9)   ;;  %v10589_v28 = vld [vmem:[%s15020_s2 + $0x2ec] ss:$12 sps:$4 sm:$0xff] (!%p276_p9)  }
  0x15   : > { %s11758_s22 = scalar_select %p313_p10, %s11702_s9, 1  ;;  %v10591_v31 = vld [vmem:[%s15020_s2 + $0x470] ss:$12 sps:$4 sm:$0xff]   ;;  %v10592_v33 = vld [vmem:[%s15020_s2 + $0x2e8] ss:$12 sps:$4 sm:$0xff]   ;;  %vm2155_vm2 = vcmask 1045504  }
  0x16   : > { %v10595_v35 = vld [vmem:[%s15020_s2 + $0x304] ss:$12 sps:$4 sm:$0xff]   ;;  %v10597_v36 = vld [vmem:[%s15020_s2 + $0x788] ss:$12 sps:$4 sm:$0xff]   ;;  %v10598_v38 = vld [vmem:[%s15020_s2 + $0x300] ss:$12 sps:$4 sm:$0xff]  }
  0x17   : > { %s10519_s10 = smul.u32 36, %s11758_s22  ;;  %991 = vmatpush1.bf16.msra.mxu0 %v10572_v8  ;;  %10156 = vmatpush3.bf16.msra.mxu1 %v10571_v7  ;;  %v10599_v39 = vld [vmem:[%s15020_s2 + $0x6c8] ss:$12 sps:$4 sm:$0xff]   ;;  %v10602_v41 = vld [vmem:[%s15020_s2 + $0x7a0] ss:$12 sps:$4 sm:$0xff]   ;;  %vm3341_vm3 = vcmask 1046528  }
  0x18   : > { %992 = vmatprep.subr.bf16.mxu0 %v10573_v9  ;;  %10157 = vmatprep.subr.bf16.mxu1 %v10575_v10  ;;  %v10600_v40 = vld [vmem:[%s15020_s2 + $0x31c] ss:$12 sps:$4 sm:$0xff]   ;;  %v10603_v42 = vld [vmem:[%s15020_s2 + $0x318] ss:$12 sps:$4 sm:$0xff]   ;;  %v10604_v43 = vld [vmem:[%s15020_s2 + $0x6e0] ss:$12 sps:$4 sm:$0xff]  }
  0x19   : > { %s11784_s26 = scalar_lea.vmem %s15018_s0, %s10519_s10  ;;  %v10605_v44 = vld [vmem:[%s15020_s2 + $0x334] ss:$12 sps:$4 sm:$0xff]   ;;  %v10607_v45 = vld [vmem:[%s15020_s2 + $0x7b8] ss:$12 sps:$4 sm:$0xff]   ;;  %v10608_v46 = vld [vmem:[%s15020_s2 + $0x330] ss:$12 sps:$4 sm:$0xff]   ;;  %s12651_s19 = scalar_lea.vmem %s15019_s1, %s10519_s10 }
  0x1a   : > { %v334_v18 = vld [vmem:[%s11784_s26 + $0x8] sm:$0xf]  ;;  %v11797_v19 = vld [vmem:[%s11784_s26 + $0x14] sm:$0xf]  ;;  %v10609_v47 = vld [vmem:[%s15020_s2 + $0x6f8] ss:$12 sps:$4 sm:$0xff]  }
  0x1b   : > { %993 = vmatpush1.bf16.msra.mxu0 %v10576_v11  ;;  %10158 = vmatpush3.bf16.msra.mxu1 %v10575_v10  ;;  %v11803_v21 = vcombine.low %v334_v18, %v11797_v19  ;;  %v11806_v22 = vld [vmem:[%s11784_s26 + $0x20] ss:$0 sps:$4 sm:$0x11]   ;;  %v10610_v48 = vld [vmem:[%s15020_s2 + $0x34c] ss:$12 sps:$4 sm:$0xff]   ;;  %vm3966_vm4 = vcmask 1040384  }
  0x1c   : > { %994 = vmatprep.subr.bf16.mxu0 %v10577_v12  ;;  %10159 = vmatprep.subr.bf16.mxu1 %v10579_v13  ;;  %v586_v26 = vshll.u32 %v11806_v22, 16  ;;  %v594_v37 = vshrl.u32 %v11806_v22, 16  ;;  %v10612_v49 = vld [vmem:[%s15020_s2 + $0x7d0] ss:$12 sps:$4 sm:$0xff]   ;;  %v10613_v50 = vld [vmem:[%s15020_s2 + $0x348] ss:$12 sps:$4 sm:$0xff]  }
  0x1d   : > { %v579_v24 = vshrl.u32 %v11803_v21, 16  ;;  %v581_v25 = vshll.u32 %v11803_v21, 16  ;;  %v10614_v51 = vld [vmem:[%s15020_s2 + $0x710] ss:$12 sps:$4 sm:$0xff]   ;;  %v10617_v53 = vld [vmem:[%s15020_s2 + $0x7e8] ss:$12 sps:$4 sm:$0xff]  }
  0x1e   : > { %v588_v30 = vrot.slane %v586_v26, 1  ;;  %v10615_v52 = vld [vmem:[%s15020_s2 + $0x364] ss:$12 sps:$4 sm:$0xff]   ;;  %v10618_v54 = vld [vmem:[%s15020_s2 + $0x360] ss:$12 sps:$4 sm:$0xff]   ;;  %s311_s25 = sand.u32 1, %s11623_s28  }
  0x1f   : > { %995 = vmatpush1.bf16.msra.mxu0 %v10580_v14  ;;  %10160 = vmatpush3.bf16.msra.mxu1 %v10579_v13  ;;  %v583_v29 = vrot.slane %v581_v25, 1  ;;  %v10619_v55 = vld [vmem:[%s15020_s2 + $0x728] ss:$12 sps:$4 sm:$0xff]   ;;  %v11897_v57 = vld [vmem:[%s11784_s26 + $0xc] sm:$0xff]  ;;  %v1184_v58 = vld [vmem:[%s11784_s26] sm:$0xee] }
  0x20   : > { %996 = vmatprep.subr.bf16.mxu0 %v10581_v15  ;;  %10161 = vmatprep.subr.bf16.mxu1 %v10583_v16  ;;  %v10620_v56 = vld [vmem:[%s15020_s2 + $0x37c] ss:$12 sps:$4 sm:$0xff]   ;;  %v11902_v60 = vcombine.high %v1184_v58, %v11897_v57  ;;  %v333_v61 = vld [vmem:[%s11784_s26] sm:$0xff]  ;;  %v11907_v63 = vcombine.low %v1184_v58, %v11897_v57  ;;  %vm1398_vm1 = vsmask.f32 6400  ;;  %s9663_s22 = sshll.u32 %s11702_s9, 4 }
  0x21   : > { %v584_v32 = vor.u32 %v583_v29, %v579_v24  ;;  %v1186_v59 = vld [vmem:[%s11784_s26 + $0x18] sm:$0x33]  ;;  %v10622_v0 = vld [vmem:[%s15020_s2 + $0x800] ss:$12 sps:$4 sm:$0xff]   ;;  %v11915_v2 = vcombine.high %v333_v61, %v11897_v57  ;;  %v10695_v22 = vld [vmem:[%s15020_s2 + $0x2a8] ss:$12 sps:$4 sm:$0xff]   ;;  %s14976_s17 = scalar_lea.hbm %s15026_s8, %s9663_s22 }
  0x22   : > { %v337_v62 = vld [vmem:[%s11784_s26 + $0x18] sm:$0x11]  ;;  %v11912_v1 = vcombine.high %v1186_v59, %v1186_v59  ;;  %v10624_v5 = vld [vmem:[%s15020_s2 + $0x740] ss:$12 sps:$4 sm:$0xff]   ;;  %v1417_v6 = vshrl.u32 %v11902_v60, 16  ;;  %v1420_v7 = vshll.u32 %v11902_v60, 16  ;;  %v11927_v8 = vcombine.low %v1186_v59, %v1186_v59 }
  0x23   : > { %997 = vmatpush1.bf16.msra.mxu0 %v10584_v17  ;;  %10162 = vmatpush3.bf16.msra.mxu1 %v10583_v16  ;;  %v11827_v34 = vsel %vm553_vm0, %v584_v32, %v588_v30  ;;  %v11917_v3 = vcombine.high %v337_v62, %v337_v62  ;;  %v10623_v4 = vld [vmem:[%s15020_s2 + $0x378] ss:$12 sps:$4 sm:$0xff]   ;;  %v1400_v9 = vshrl.u32 %v11907_v63, 16  ;;  %v10625_v10 = vld [vmem:[%s15020_s2 + $0x394] ss:$12 sps:$4 sm:$0xff]   ;;  %v567_v13 = vshrl.u32 %v11915_v2, 16 }
  0x24   : > { %998 = vmatprep.subr.bf16.mxu0 %v10585_v20  ;;  %10163 = vmatprep.subr.bf16.mxu1 %v10587_v23  ;;  %v1425_v11 = vshrl.u32 %v11912_v1, 16  ;;  %v1428_v12 = vshll.u32 %v11912_v1, 16  ;;  %v569_v14 = vshll.u32 %v11915_v2, 16  ;;  %v1419_v15 = vrot.slane %v1417_v6, 1  ;;  %v10627_v18 = vld [vmem:[%s15020_s2 + $0x818] ss:$12 sps:$4 sm:$0xff]  }
  0x25   : > { %10167 = vmatprep.mubr.bf16.mxu1 %v11827_v34  ;;  %v1422_v16 = vrot.slane %v1420_v7, 2  ;;  %v574_v17 = vshll.u32 %v11917_v3, 16  ;;  %v1403_v25 = vshll.u32 %v11907_v63, 16  ;;  %v10628_v26 = vld [vmem:[%s15020_s2 + $0x390] ss:$12 sps:$4 sm:$0xff]   ;;  %v1408_v29 = vshrl.u32 %v11927_v8, 16 }
  0x26   : > { %v11941_v20 = vrot.slane %v1425_v11, 1  ;;  %v571_v24 = vrot.slane %v569_v14, 1  ;;  %v1411_v30 = vshll.u32 %v11927_v8, 16  ;;  %v10639_v59 = vld [vmem:[%s15020_s2 + $0x3c0] ss:$12 sps:$4 sm:$0xff]   ;;  %s312_s10 = scalar_lea.vmem [#allocation3], %s311_s25 }
  0x27   : > { %999 = vmatpush1.bf16.msra.mxu0 %v10588_v27  ;;  %10164 = vmatpush3.bf16.msra.mxu1 %v10587_v23  ;;  %v1430_v23 = vrot.slane %v1428_v12, 2  ;;  %v1423_v27 = vor.u32 %v1422_v16, %v1419_v15  ;;  %v10647_v6 = vld [vmem:[%s15020_s2 + $0x3d8] ss:$12 sps:$4 sm:$0xff]   ;;  %v10653_v7 = vld [vmem:[%s15020_s2 + $0x3f4] ss:$12 sps:$4 sm:$0xff]   ;;  %s8054_s18 = scalar_lea.sflag [#allocation4], %s311_s25 }
  0x28   : > { %1000 = vmatprep.subr.bf16.mxu0 %v10589_v28  ;;  %10165 = vmatprep.subr.bf16.mxu1 %v10591_v31  ;;  %v576_v28 = vrot.slane %v574_v17, 1  ;;  %v10657_v12 = vld [vmem:[%s15020_s2 + $0x40c] ss:$12 sps:$4 sm:$0xff]   ;;  %v10676_v15 = vld [vmem:[%s11784_s26 + $0x20] ss:$0 sps:$4 sm:$0x33]  }
  0x29   : > { %v1431_v32 = vor.u32 %v1430_v23, %v11941_v20  ;;  %v10658_v16 = vld [vmem:[%s15020_s2 + $0x890] ss:$12 sps:$4 sm:$0xff]   ;;  %v1442_v23 = vshrl.u32 %v10676_v15, 16  ;;  %s11635_s9 = smov [#allocation3]  }
  0x2a   : > { %s11573_s20 = sshll.u32 %s11635_s9, 4  ;;  %s11574_s20 = int_to_ptr.vmem [resolvable:$false] %s11573_s20 }
  0x2b   : > { %1001 = vmatpush1.bf16.msra.mxu0 %v10592_v33  ;;  %10166 = vmatpush3.bf16.msra.mxu1 %v10591_v31  ;;  %v10629_v31 = vld [vmem:[%s15020_s2 + $0x758] ss:$12 sps:$4 sm:$0xff]   ;;  %v572_v33 = vor.u32 %v571_v24, %v567_v13  ;;  %v1185_v13 = vld [vmem:[%s11784_s26 + $0x8] sm:$0xe]  ;;  %v1445_v24 = vshll.u32 %v10676_v15, 16  ;;  %s11575_s21 = scalar_lea.vmem %s11574_s20, 32 }
  0x2c   : > { %1002 = vmatprep.subr.bf16.mxu0 %v10595_v35  ;;  %9704 = vmatprep.subr.bf16.mxu1 %v10597_v36  ;;  %v1402_v35 = vrot.slane %v1400_v9, 1  ;;  %v11954_v36 = vcombine.low %v333_v61, %v11897_v57  ;;  %v10654_v9 = vld [vmem:[%s15020_s2 + $0x878] ss:$12 sps:$4 sm:$0xff]   ;;  %v12029_v14 = vcombine.low %v1185_v13, %v11797_v19  ;;  %v10691_v15 = vld [vmem:[%s15020_s2 + $0x290] ss:$12 sps:$4 sm:$0xff]  }
  0x2d   : > { %v10661_v19 = vld [vmem:[%s15020_s2 + $0x424] ss:$12 sps:$4 sm:$0xff]   ;;  %v2040_v13 = vld [vmem:[%s11784_s26 + $0x18] sm:$0x77] }
  0x2e   : > { %10168 = vmatmul.mubr.bf16.vlgmr.msra.gmra.mrb[0].mxu1 %v594_v37  ;;  %v1434_v17 = vshrl.u32 %v12029_v14, 16 }
  0x2f   : > { %1003 = vmatpush1.bf16.msra.mxu0 %v10598_v38  ;;  %9705 = vmatpush3.bf16.msra.mxu1 %v10599_v39  ;;  %v1405_v38 = vrot.slane %v1403_v25, 2  ;;  %v11956_v39 = vrot.slane %v1408_v29, 1  ;;  %v10655_v25 = vld [vmem:[%s15020_s2 + $0x408] ss:$12 sps:$4 sm:$0xff]   ;;  %v1447_v29 = vrot.slane %v1445_v24, 2 }
  0x30   : > { %1004 = vmatprep.subr.bf16.mxu0 %v10600_v40  ;;  %9706 = vmatprep.subr.bf16.mxu1 %v10602_v41  ;;  %v1413_v40 = vrot.slane %v1411_v30, 2  ;;  %v11958_v41 = vcombine.low %v337_v62, %v337_v62  ;;  %v10662_v30 = vld [vmem:[%s15020_s2 + $0x8a8] ss:$12 sps:$4 sm:$0xff]  }
  0x31   : > { %v10694_v24 = vld [vmem:[%s15020_s2 + $0xa28] ss:$12 sps:$4 sm:$0xff]  }
  0x32   : > { %v590_v11 = vshrl.u32 %v11958_v41, 16 }
  0x33   : > { %1005 = vmatpush1.bf16.msra.mxu0 %v10603_v42  ;;  %9707 = vmatpush3.bf16.msra.mxu1 %v10604_v43  ;;  %v10630_v42 = vld [vmem:[%s15020_s2 + $0x3ac] ss:$12 sps:$4 sm:$0xff]   ;;  %v10632_v43 = vld [vmem:[%s15020_s2 + $0x830] ss:$12 sps:$4 sm:$0xff]  }
  0x34   : > { %1006 = vmatprep.subr.bf16.mxu0 %v10605_v44  ;;  %9708 = vmatprep.subr.bf16.mxu1 %v10607_v45  ;;  %v11967_v44 = vsel %vm1398_vm1, %v1423_v27, %v1431_v32  ;;  %v11970_v45 = vsel %vm553_vm0, %v572_v33, %v576_v28  ;;  %v12046_v28 = vrot.slane %v1442_v23, 1  ;;  %v11633_v33 = vmov 0   ;;  %v10693_v23 = vld [vmem:[%s15020_s2 + $0x368] ss:$12 sps:$4 sm:$0xff]  }
  0x35   : > { %1974 = vmatprep.mubr.bf16.mxu1 %v11967_v44  ;;  %1018 = vmatprep.mubr.bf16.mxu0 %v11970_v45 }
  0x36   : > { %v1448_v32 = vor.u32 %v1447_v29, %v12046_v28  ;;  %v10699_v29 = vld [vmem:[%s15020_s2 + $0x2c0] ss:$12 sps:$4 sm:$0xff]  }
  0x37   : > { %1007 = vmatpush1.bf16.msra.mxu0 %v10608_v46  ;;  %9709 = vmatpush3.bf16.msra.mxu1 %v10609_v47  ;;  %v555_v46 = vshrl.u32 %v11954_v36, 16  ;;  %v557_v47 = vshll.u32 %v11954_v36, 16 }
  0x38   : > { %1008 = vmatprep.subr.bf16.mxu0 %v10610_v48  ;;  %9710 = vmatprep.subr.bf16.mxu1 %v10612_v49  ;;  %v562_v48 = vshll.u32 %v11958_v41, 16  ;;  %v10633_v49 = vld [vmem:[%s15020_s2 + $0x3a8] ss:$12 sps:$4 sm:$0xff]  }
  0x3b   : > { %1009 = vmatpush1.bf16.msra.mxu0 %v10613_v50  ;;  %9711 = vmatpush3.bf16.msra.mxu1 %v10614_v51  ;;  %v10634_v50 = vld [vmem:[%s15020_s2 + $0x770] ss:$12 sps:$4 sm:$0xff]  }
  0x3c   : > { %1010 = vmatprep.subr.bf16.mxu0 %v10615_v52  ;;  %9712 = vmatprep.subr.bf16.mxu1 %v10617_v53  ;;  %v10641_v51 = vld [vmem:[%s15020_s2 + $0x3c4] ss:$12 sps:$4 sm:$0xff]   ;;  %v1406_v52 = vor.u32 %v1405_v38, %v1402_v35  ;;  %v1414_v53 = vor.u32 %v1413_v40, %v11956_v39  ;;  %v10659_v35 = vld [vmem:[%s15020_s2 + $0x420] ss:$12 sps:$4 sm:$0xff]   ;;  %v10665_v38 = vld [vmem:[%s15020_s2 + $0x43c] ss:$12 sps:$4 sm:$0xff]  }
  0x3e   : > { %v11994_v61 = vsel %vm1398_vm1, %v1406_v52, %v1414_v53  ;;  %v10677_v52 = vld [vmem:[%s15020_s2 + $0x308] ss:$12 sps:$4 sm:$0xff]  }
  0x3f   : > { %1011 = vmatpush1.bf16.msra.mxu0 %v10618_v54  ;;  %9713 = vmatpush3.bf16.msra.mxu1 %v10619_v55  ;;  %v559_v54 = vrot.slane %v557_v47, 1  ;;  %v564_v55 = vrot.slane %v562_v48, 1  ;;  %v10670_v47 = vld [vmem:[%s15020_s2 + $0x8d8] ss:$12 sps:$4 sm:$0xff]   ;;  %v10667_v48 = vld [vmem:[%s15020_s2 + $0x450] ss:$12 sps:$4 sm:$0xff]  }
  0x40   : > { %1012 = vmatprep.subr.bf16.mxu0 %v10620_v56  ;;  %9714 = vmatprep.subr.bf16.mxu1 %v10622_v0  ;;  %v10644_v56 = vld [vmem:[%s15020_s2 + $0x848] ss:$12 sps:$4 sm:$0xff]  }
  0x41   : > { %v560_v58 = vor.u32 %v559_v54, %v555_v46  ;;  %v10649_v0 = vld [vmem:[%s15020_s2 + $0x3dc] ss:$12 sps:$4 sm:$0xff]   ;;  %v10669_v46 = vld [vmem:[%s15020_s2 + $0x454] ss:$12 sps:$4 sm:$0xff]  }
  0x42   : > { %v10678_v53 = vld [vmem:[%s15020_s2 + $0x9c8] ss:$12 sps:$4 sm:$0xff]  }
  0x43   : > { %1013 = vmatpush1.bf16.msra.mxu0 %v10623_v4  ;;  %9715 = vmatpush3.bf16.msra.mxu1 %v10624_v5  ;;  %v11997_v62 = vsel %vm553_vm0, %v560_v58, %v564_v55  ;;  %v10650_v4 = vld [vmem:[%s15020_s2 + $0x860] ss:$12 sps:$4 sm:$0xff]   ;;  %v592_v5 = vshrl.u32 %v11917_v3, 16  ;;  %v10679_v54 = vld [vmem:[%s15020_s2 + $0x248] ss:$12 sps:$4 sm:$0xff]  }
  0x44   : > { %1014 = vmatprep.subr.bf16.mxu0 %v10625_v10  ;;  %9716 = vmatprep.subr.bf16.mxu1 %v10627_v18  ;;  %v10651_v10 = vld [vmem:[%s15020_s2 + $0x3f0] ss:$12 sps:$4 sm:$0xff]   ;;  %v1437_v18 = vshll.u32 %v12029_v14, 16  ;;  %v10680_v55 = vld [vmem:[%s15020_s2 + $0x908] ss:$12 sps:$4 sm:$0xff]  }
  0x45   : > { %v10682_v58 = vld [vmem:[%s15020_s2 + $0x9e0] ss:$12 sps:$4 sm:$0xff]  }
  0x46   : > { %v1439_v27 = vrot.slane %v1437_v18, 2  ;;  %v8683_v18 = vcombine.high %v2040_v13, %v2040_v13 }
  0x47   : > { %1015 = vmatpush1.bf16.msra.mxu0 %v10628_v26  ;;  %9717 = vmatpush3.bf16.msra.mxu1 %v10629_v31  ;;  %v1436_v26 = vrot.slane %v1434_v17, 1 }
  0x48   : > { %1016 = vmatprep.subr.bf16.mxu0 %v10630_v42  ;;  %9718 = vmatprep.subr.bf16.mxu1 %v10632_v43  ;;  %v10666_v42 = vld [vmem:[%s15020_s2 + $0x8c0] ss:$12 sps:$4 sm:$0xff]   ;;  %v10663_v43 = vld [vmem:[%s15020_s2 + $0x438] ss:$12 sps:$4 sm:$0xff]  }
  0x49   : > { %v1440_v31 = vor.u32 %v1439_v27, %v1436_v26  ;;  %v10696_v26 = vld [vmem:[%s15020_s2 + $0x968] ss:$12 sps:$4 sm:$0xff]   ;;  %v10697_v27 = vld [vmem:[%s15020_s2 + $0x380] ss:$12 sps:$4 sm:$0xff]  }
  0x4b   : > { %1017 = vmatpush1.bf16.msra.mxu0 %v10633_v49  ;;  %9719 = vmatpush3.bf16.msra.mxu1 %v10634_v50  ;;  %v12060_v40 = vsel %vm1398_vm1, %v1440_v31, %v1448_v32  ;;  %v10673_v49 = vld [vmem:[%s15020_s2 + $0x46c] ss:$12 sps:$4 sm:$0xff]   ;;  %v10674_v50 = vld [vmem:[%s15020_s2 + $0x8f0] ss:$12 sps:$4 sm:$0xff]  }
  0x4c   : > { %1037 = vmatprep.subr.bf16.mxu0 %v10641_v51  ;;  %10171 = vmatprep.subr.bf16.mxu1 %v10644_v56  ;;  %v10671_v51 = vld [vmem:[%s15020_s2 + $0x468] ss:$12 sps:$4 sm:$0xff]   ;;  %v10701_v31 = vld [vmem:[%s15020_s2 + $0x398] ss:$12 sps:$4 sm:$0xff]  }
  0x4d   : > { %v10702_v32 = vld [vmem:[%s15020_s2 + $0xa58] ss:$12 sps:$4 sm:$0xff]  }
  0x4e   : > { %1975 = vmatmul.mubr.bf16.vlgmr.msra.gmra.mrb[4].mxu1 %v11994_v61  ;;  %1019 = vmatmul.mubr.bf16.vlgmr.msra.gmra.mrb[0].mxu0 %v11997_v62 }
  0x4f   : > { %1038 = vmatpush1.bf16.msra.mxu0 %v10639_v59  ;;  %10172 = vmatpush3.bf16.msra.mxu1 %v10644_v56  ;;  %v10681_v56 = vld [vmem:[%s15020_s2 + $0x320] ss:$12 sps:$4 sm:$0xff]  }
  0x50   : > { %1039 = vmatprep.subr.bf16.mxu0 %v10649_v0  ;;  %10173 = vmatprep.subr.bf16.mxu1 %v10650_v4  ;;  %v10683_v59 = vld [vmem:[%s15020_s2 + $0x260] ss:$12 sps:$4 sm:$0xff]  }
  0x51   : > { %1982 = vmatprep.mubr.bf16.mxu1 %v11941_v20  ;;  %1028 = vmatprep.mubr.bf16.mxu0 %v592_v5  ;;  %v10684_v0 = vld [vmem:[%s15020_s2 + $0x920] ss:$12 sps:$4 sm:$0xff]  }
  0x53   : > { %1040 = vmatpush1.bf16.msra.mxu0 %v10647_v6  ;;  %10174 = vmatpush3.bf16.msra.mxu1 %v10650_v4  ;;  %v10685_v4 = vld [vmem:[%s15020_s2 + $0x338] ss:$12 sps:$4 sm:$0xff]  }
  0x54   : > { %1041 = vmatprep.subr.bf16.mxu0 %v10653_v7  ;;  %10175 = vmatprep.subr.bf16.mxu1 %v10654_v9  ;;  %v10686_v6 = vld [vmem:[%s15020_s2 + $0x9f8] ss:$12 sps:$4 sm:$0xff]  }
  0x55   : > { %v10688_v7 = vld [vmem:[%s15020_s2 + $0x938] ss:$12 sps:$4 sm:$0xff]  }
  0x56   : > { %1983 = vmatmul.mubr.bf16.gmra.mrb[8].mxu1 %v11956_v39  ;;  %1029 = vmatmul.mubr.bf16.gmra.mrb[4].mxu0 %v590_v11 }
  0x57   : > { %1042 = vmatpush1.bf16.msra.mxu0 %v10651_v10  ;;  %10176 = vmatpush3.bf16.msra.mxu1 %v10654_v9  ;;  %v10689_v9 = vld [vmem:[%s15020_s2 + $0x350] ss:$12 sps:$4 sm:$0xff]  }
  0x58   : > { %1043 = vmatprep.subr.bf16.mxu0 %v10657_v12  ;;  %10177 = vmatprep.subr.bf16.mxu1 %v10658_v16  ;;  %v10690_v10 = vld [vmem:[%s15020_s2 + $0xa10] ss:$12 sps:$4 sm:$0xff]   ;;  %v2038_v12 = vld [vmem:[%s11784_s26] sm:$0xcc] }
  0x59   : > { %1069 = vmatprep.mubr.bf16.mxu0 %v11633_v33  ;;  %10187 = vmatprep.mubr.bf16.mxu1 %v12060_v40  ;;  %v8680_v17 = vcombine.high %v2038_v12, %v11897_v57 }
  0x5b   : > { %1044 = vmatpush1.bf16.msra.mxu0 %v10655_v25  ;;  %10178 = vmatpush3.bf16.msra.mxu1 %v10658_v16  ;;  %v10692_v16 = vld [vmem:[%s15020_s2 + $0x950] ss:$12 sps:$4 sm:$0xff]   ;;  %v2159_v25 = vrot.slane %v8680_v17, 2  ;;  %v10729_v17 = vld [vmem:[%s15020_s2 + $0x720] ss:$12 sps:$4 sm:$0xff]  }
  0x5c   : > { %1045 = vmatprep.subr.bf16.mxu0 %v10661_v19  ;;  %10179 = vmatprep.subr.bf16.mxu1 %v10662_v30  ;;  %v12149_v19 = vrot.slane %v8683_v18, 2  ;;  %v10735_v18 = vld [vmem:[%s15020_s2 + $0x73c] ss:$12 sps:$4 sm:$0xff]  }
  0x5f   : > { %1046 = vmatpush1.bf16.msra.mxu0 %v10659_v35  ;;  %10180 = vmatpush3.bf16.msra.mxu1 %v10662_v30  ;;  %v10700_v30 = vld [vmem:[%s15020_s2 + $0x980] ss:$12 sps:$4 sm:$0xff]   ;;  %v10703_v35 = vld [vmem:[%s15020_s2 + $0x2d8] ss:$12 sps:$4 sm:$0xff]  }
  0x60   : > { %1047 = vmatprep.subr.bf16.mxu0 %v10665_v38  ;;  %10181 = vmatprep.subr.bf16.mxu1 %v10666_v42  ;;  %v10704_v38 = vld [vmem:[%s15020_s2 + $0x998] ss:$12 sps:$4 sm:$0xff]  }
  0x63   : > { %1048 = vmatpush1.bf16.msra.mxu0 %v10663_v43  ;;  %10182 = vmatpush3.bf16.msra.mxu1 %v10666_v42  ;;  %v8679_v42 = vcombine.low %v2038_v12, %v11897_v57  ;;  %v8682_v43 = vcombine.low %v2040_v13, %v2040_v13  ;;  %v10708_v57 = vld [vmem:[%s15020_s2 + $0x9b0] ss:$12 sps:$4 sm:$0xff]   ;;  %v10727_v12 = vld [vmem:[%s15020_s2 + $0x70c] ss:$12 sps:$4 sm:$0xff]   ;;  %v10725_v13 = vld [vmem:[%s15020_s2 + $0x708] ss:$12 sps:$4 sm:$0xff]  }
  0x64   : > { %1049 = vmatprep.subr.bf16.mxu0 %v10669_v46  ;;  %10183 = vmatprep.subr.bf16.mxu1 %v10670_v47  ;;  %v10705_v46 = vld [vmem:[%s15020_s2 + $0x3b0] ss:$12 sps:$4 sm:$0xff]  }
  0x67   : > { %1050 = vmatpush1.bf16.msra.mxu0 %v10667_v48  ;;  %10184 = vmatpush3.bf16.msra.mxu1 %v10670_v47  ;;  %v10706_v47 = vld [vmem:[%s15020_s2 + $0xa70] ss:$12 sps:$4 sm:$0xff]  }
  0x68   : > { %1051 = vmatprep.subr.bf16.mxu0 %v10673_v49  ;;  %10185 = vmatprep.subr.bf16.mxu1 %v10674_v50  ;;  %v10707_v48 = vld [vmem:[%s15020_s2 + $0x2f0] ss:$12 sps:$4 sm:$0xff]   ;;  %v2156_v49 = vrot.slane %v8679_v42, 2  ;;  %v10752_v42 = vld [vmem:[%s15020_s2 + $0x798] ss:$12 sps:$4 sm:$0xff]  }
  0x6b   : > { %1052 = vmatpush1.bf16.msra.mxu0 %v10671_v51  ;;  %10186 = vmatpush3.bf16.msra.mxu1 %v10674_v50  ;;  %v12200_v50 = vrot.slane %v8682_v43, 2  ;;  %v10713_v51 = vld [vmem:[%s15020_s2 + $0x6c4] ss:$12 sps:$4 sm:$0xff]   ;;  %v10756_v43 = vld [vmem:[%s15020_s2 + $0x20] ss:$12 sps:$4 sm:$0xff]  }
  0x6c   : > { %9666 = vmatprep.subr.bf16.mxu0 %v10677_v52  ;;  %9742 = vmatprep.subr.bf16.mxu1 %v10678_v53  ;;  %v10716_v52 = vld [vmem:[%s15020_s2 + $0xa88] ss:$12 sps:$4 sm:$0xff]   ;;  %v10711_v53 = vld [vmem:[%s15020_s2 + $0x6c0] ss:$12 sps:$4 sm:$0xff]  }
  0x6e   : > { %10188 = vmatmul.mubr.bf16.vlgmr.msra.gmra.mrb[12].mxu1 %v12046_v28  ;;  %1070 = vmatmul.mubr.bf16.vlgmr.msra.gmra.mrb[0].mxu0 %v11827_v34  ;;  %v10687_v34 = vld [vmem:[%s15020_s2 + $0x278] ss:$12 sps:$4 sm:$0xff]  }
  0x6f   : > { %9667 = vmatpush3.bf16.msra.mxu0 %v10679_v54  ;;  %9743 = vmatpush3.bf16.msra.mxu1 %v10680_v55  ;;  %v12213_v54 = vsel %vm2155_vm2, %v2156_v49, %v12200_v50  ;;  %v10719_v55 = vld [vmem:[%s15020_s2 + $0x6dc] ss:$12 sps:$4 sm:$0xff]   ;;  %v10764_v49 = vld [vmem:[%s15020_s2 + $0x7cc] ss:$12 sps:$4 sm:$0xff]  }
  0x70   : > { %9668 = vmatprep.subr.bf16.mxu0 %v10681_v56  ;;  %9744 = vmatprep.subr.bf16.mxu1 %v10682_v58  ;;  %v2039_v56 = vld [vmem:[%s11784_s26 + $0x8] sm:$0xc]  ;;  %v10720_v58 = vld [vmem:[%s15020_s2 + $0xaa0] ss:$12 sps:$4 sm:$0xff]  }
  0x71   : > { %1079 = vmatprep.mubr.bf16.mxu0 %v11633_v33 }
  0x73   : > { %9669 = vmatpush3.bf16.msra.mxu0 %v10683_v59  ;;  %9745 = vmatpush3.bf16.msra.mxu1 %v10684_v0  ;;  %v10746_v59 = vld [vmem:[%s11784_s26 + $0x20] ss:$0 sps:$4 sm:$0x77]   ;;  %v10717_v0 = vld [vmem:[%s15020_s2 + $0x6d8] ss:$12 sps:$4 sm:$0xff]  }
  0x74   : > { %9670 = vmatprep.subr.bf16.mxu0 %v10685_v4  ;;  %9746 = vmatprep.subr.bf16.mxu1 %v10686_v6  ;;  %v11557_v4 = vld [vmem:[%s11784_s26 + $0x14] sm:$0xf] }
  0x75   : > { %v8681_v6 = vcombine.low %v2039_v56, %v11557_v4  ;;  %v10770_v56 = vld [vmem:[%s15020_s2 + $0x128] ss:$12 sps:$4 sm:$0xff]   ;;  %v10775_v4 = vld [vmem:[%s15020_s2 + $0x140] ss:$12 sps:$4 sm:$0xff]  }
  0x76   : > { %1080 = vmatmul.mubr.bf16.gmra.mrb[8].mxu0 %v594_v37  ;;  %v12157_v37 = vsel %vm2155_vm2, %v2159_v25, %v12149_v19  ;;  %v10740_v25 = vld [vmem:[%s15020_s2 + $0xb18] ss:$12 sps:$4 sm:$0xff]  }
  0x77   : > { %9671 = vmatpush3.bf16.msra.mxu0 %v10687_v34  ;;  %9747 = vmatpush3.bf16.msra.mxu1 %v10688_v7  ;;  %v10723_v34 = vld [vmem:[%s15020_s2 + $0x6f4] ss:$12 sps:$4 sm:$0xff]   ;;  %v2162_v7 = vrot.slane %v8681_v6, 2  ;;  %v10772_v6 = vld [vmem:[%s15020_s2 + $0x7f8] ss:$12 sps:$4 sm:$0xff]  }
  0x78   : > { %9672 = vmatprep.subr.bf16.mxu0 %v10689_v9  ;;  %9748 = vmatprep.subr.bf16.mxu1 %v10690_v10  ;;  %v12238_v9 = vrot.slane %v10746_v59, 2  ;;  %v10721_v10 = vld [vmem:[%s15020_s2 + $0x6f0] ss:$12 sps:$4 sm:$0xff]   ;;  %v10771_v59 = vld [vmem:[%s15020_s2 + $0x68] ss:$12 sps:$4 sm:$0xff]  }
  0x79   : > { %1120 = vmatprep.mubr.bf16.mxu0 %v11970_v45  ;;  %v10698_v45 = vld [vmem:[%s15020_s2 + $0xa40] ss:$12 sps:$4 sm:$0xff]   ;;  %2689 = vmatprep.mubr.bf16.mxu1 %v12157_v37 }
  0x7b   : > { %9673 = vmatpush3.bf16.msra.mxu0 %v10691_v15  ;;  %9749 = vmatpush3.bf16.msra.mxu1 %v10692_v16  ;;  %v12257_v15 = vsel %vm2155_vm2, %v2162_v7, %v12238_v9  ;;  %v10731_v16 = vld [vmem:[%s15020_s2 + $0x724] ss:$12 sps:$4 sm:$0xff]  }
  0x7c   : > { %9674 = vmatprep.subr.bf16.mxu0 %v10693_v23  ;;  %9750 = vmatprep.subr.bf16.mxu1 %v10694_v24  ;;  %v10736_v23 = vld [vmem:[%s15020_s2 + $0xb00] ss:$12 sps:$4 sm:$0xff]   ;;  %v10780_v7 = vld [vmem:[%s15020_s2 + $0x158] ss:$12 sps:$4 sm:$0xff]  }
  0x7d   : > { %v10739_v24 = vld [vmem:[%s15020_s2 + $0x754] ss:$12 sps:$4 sm:$0xff]  }
  0x7f   : > { %9675 = vmatpush3.bf16.msra.mxu0 %v10695_v22  ;;  %9751 = vmatpush3.bf16.msra.mxu1 %v10696_v26  ;;  %v10737_v22 = vld [vmem:[%s15020_s2 + $0x750] ss:$12 sps:$4 sm:$0xff]   ;;  %v10743_v26 = vld [vmem:[%s15020_s2 + $0x76c] ss:$12 sps:$4 sm:$0xff]  }
  0x80   : > { %9676 = vmatprep.subr.bf16.mxu0 %v10697_v27  ;;  %9752 = vmatprep.subr.bf16.mxu1 %v10698_v45  ;;  %v10744_v27 = vld [vmem:[%s15020_s2 + $0xb30] ss:$12 sps:$4 sm:$0xff]   ;;  %v10741_v45 = vld [vmem:[%s15020_s2 + $0x768] ss:$12 sps:$4 sm:$0xff]  }
  0x83   : > { %9677 = vmatpush3.bf16.msra.mxu0 %v10699_v29  ;;  %9753 = vmatpush3.bf16.msra.mxu1 %v10700_v30  ;;  %v10749_v29 = vld [vmem:[%s15020_s2 + $0x784] ss:$12 sps:$4 sm:$0xff]   ;;  %v10750_v30 = vld [vmem:[%s15020_s2 + $0xc8] ss:$12 sps:$4 sm:$0xff]  }
  0x84   : > { %9678 = vmatprep.subr.bf16.mxu0 %v10701_v31  ;;  %9754 = vmatprep.subr.bf16.mxu1 %v10702_v32  ;;  %v10747_v31 = vld [vmem:[%s15020_s2 + $0x780] ss:$12 sps:$4 sm:$0xff]   ;;  %v10751_v32 = vld [vmem:[%s15020_s2 + $0x8] ss:$12 sps:$4 sm:$0xff]  }
  0x87   : > { %9679 = vmatpush3.bf16.msra.mxu0 %v10703_v35  ;;  %9755 = vmatpush3.bf16.msra.mxu1 %v10704_v38  ;;  %v10754_v35 = vld [vmem:[%s15020_s2 + $0x79c] ss:$12 sps:$4 sm:$0xff]   ;;  %v10755_v38 = vld [vmem:[%s15020_s2 + $0xe0] ss:$12 sps:$4 sm:$0xff]  }
  0x88   : > { %9680 = vmatprep.subr.bf16.mxu0 %v10705_v46  ;;  %9756 = vmatprep.subr.bf16.mxu1 %v10706_v47  ;;  %v10759_v46 = vld [vmem:[%s15020_s2 + $0x7b4] ss:$12 sps:$4 sm:$0xff]   ;;  %v10760_v47 = vld [vmem:[%s15020_s2 + $0xf8] ss:$12 sps:$4 sm:$0xff]  }
  0x8b   : > { %9681 = vmatpush3.bf16.msra.mxu0 %v10707_v48  ;;  %9757 = vmatpush3.bf16.msra.mxu1 %v10708_v57  ;;  %v10757_v48 = vld [vmem:[%s15020_s2 + $0x7b0] ss:$12 sps:$4 sm:$0xff]   ;;  %v10761_v57 = vld [vmem:[%s15020_s2 + $0x38] ss:$12 sps:$4 sm:$0xff]  }
  0x8c   : > { %1840 = vmatprep.subr.bf16.mxu0 %v10713_v51  ;;  %10191 = vmatprep.subr.bf16.mxu1 %v10716_v52  ;;  %v10765_v51 = vld [vmem:[%s15020_s2 + $0x110] ss:$12 sps:$4 sm:$0xff]  }
  0x8e   : > { %1121 = vmatmul.mubr.bf16.vlgmr.msra.gmra.mrb[12].mxu0 %v11997_v62  ;;  %2690 = vmatmul.mubr.bf16.vlgmr.msra.gmra.mrb[16].mxu1 %v12213_v54  ;;  %v10724_v62 = vld [vmem:[%s15020_s2 + $0xab8] ss:$12 sps:$4 sm:$0xff]  }
  0x8f   : > { %1841 = vmatpush1.bf16.msra.mxu0 %v10711_v53  ;;  %10192 = vmatpush3.bf16.msra.mxu1 %v10716_v52  ;;  %v10762_v52 = vld [vmem:[%s15020_s2 + $0x7c8] ss:$12 sps:$4 sm:$0xff]   ;;  %v10766_v53 = vld [vmem:[%s15020_s2 + $0x50] ss:$12 sps:$4 sm:$0xff]  }
  0x90   : > { %1842 = vmatprep.subr.bf16.mxu0 %v10719_v55  ;;  %10193 = vmatprep.subr.bf16.mxu1 %v10720_v58  ;;  %v10769_v55 = vld [vmem:[%s15020_s2 + $0x7e4] ss:$12 sps:$4 sm:$0xff]  }
  0x91   : > { %1128 = vmatprep.mubr.bf16.mxu0 %v592_v5  ;;  %2697 = vmatprep.mubr.bf16.mxu1 %v12149_v19  ;;  %v10728_v5 = vld [vmem:[%s15020_s2 + $0xad0] ss:$12 sps:$4 sm:$0xff]  }
  0x93   : > { %1843 = vmatpush1.bf16.msra.mxu0 %v10717_v0  ;;  %10194 = vmatpush3.bf16.msra.mxu1 %v10720_v58  ;;  %v10767_v58 = vld [vmem:[%s15020_s2 + $0x7e0] ss:$12 sps:$4 sm:$0xff]   ;;  %v10774_v0 = vld [vmem:[%s15020_s2 + $0x7fc] ss:$12 sps:$4 sm:$0xff]  }
  0x94   : > { %1844 = vmatprep.subr.bf16.mxu0 %v10723_v34  ;;  %10195 = vmatprep.subr.bf16.mxu1 %v10724_v62  ;;  %v10776_v34 = vld [vmem:[%s15020_s2 + $0x80] ss:$12 sps:$4 sm:$0xff]  }
  0x96   : > { %1129 = vmatmul.mubr.bf16.gmra.mrb[16].mxu0 %v590_v11  ;;  %2698 = vmatmul.mubr.bf16.gmra.mrb[20].mxu1 %v12200_v50  ;;  %v10732_v11 = vld [vmem:[%s15020_s2 + $0xae8] ss:$12 sps:$4 sm:$0xff]  }
  0x97   : > { %1845 = vmatpush1.bf16.msra.mxu0 %v10721_v10  ;;  %10196 = vmatpush3.bf16.msra.mxu1 %v10724_v62  ;;  %v10779_v62 = vld [vmem:[%s15020_s2 + $0x814] ss:$12 sps:$4 sm:$0xff]   ;;  %v10777_v10 = vld [vmem:[%s15020_s2 + $0x810] ss:$12 sps:$4 sm:$0xff]  }
  0x98   : > { %1846 = vmatprep.subr.bf16.mxu0 %v10727_v12  ;;  %10197 = vmatprep.subr.bf16.mxu1 %v10728_v5  ;;  %v10781_v12 = vld [vmem:[%s15020_s2 + $0x98] ss:$12 sps:$4 sm:$0xff]  }
  0x99   : > { %10207 = vmatprep.mubr.bf16.mxu1 %v12257_v15  ;;  %1872 = vmatprep.mubr.bf16.mxu0 %v11967_v44  ;;  %v10733_v44 = vld [vmem:[%s15020_s2 + $0x738] ss:$12 sps:$4 sm:$0xff]  }
  0x9b   : > { %1847 = vmatpush1.bf16.msra.mxu0 %v10725_v13  ;;  %10198 = vmatpush3.bf16.msra.mxu1 %v10728_v5  ;;  %v10784_v5 = vld [vmem:[%s15020_s2 + $0x82c] ss:$12 sps:$4 sm:$0xff]   ;;  %v10785_v13 = vld [vmem:[%s15020_s2 + $0x170] ss:$12 sps:$4 sm:$0xff]  }
  0x9c   : > { %1848 = vmatprep.subr.bf16.mxu0 %v10731_v16  ;;  %10199 = vmatprep.subr.bf16.mxu1 %v10732_v11  ;;  %v10782_v16 = vld [vmem:[%s15020_s2 + $0x828] ss:$12 sps:$4 sm:$0xff]  }
  0x9f   : > { %1849 = vmatpush1.bf16.msra.mxu0 %v10729_v17  ;;  %10200 = vmatpush3.bf16.msra.mxu1 %v10732_v11  ;;  %v10786_v11 = vld [vmem:[%s15020_s2 + $0xb0] ss:$12 sps:$4 sm:$0xff]  }
  0xa0   : > { %1850 = vmatprep.subr.bf16.mxu0 %v10735_v18  ;;  %10201 = vmatprep.subr.bf16.mxu1 %v10736_v23  ;;  %v10789_v17 = vld [vmem:[%s15020_s2 + $0x844] ss:$12 sps:$4 sm:$0xff]   ;;  %v10790_v18 = vld [vmem:[%s15020_s2 + $0x188] ss:$12 sps:$4 sm:$0xff]  }
  0xa3   : > { %1851 = vmatpush1.bf16.msra.mxu0 %v10733_v44  ;;  %10202 = vmatpush3.bf16.msra.mxu1 %v10736_v23  ;;  %v10787_v23 = vld [vmem:[%s15020_s2 + $0x840] ss:$12 sps:$4 sm:$0xff]   ;;  %v10793_v44 = vld [vmem:[%s15020_s2 + $0x85c] ss:$12 sps:$4 sm:$0xff]  }
  0xa4   : > { %1852 = vmatprep.subr.bf16.mxu0 %v10739_v24  ;;  %10203 = vmatprep.subr.bf16.mxu1 %v10740_v25  ;;  %v10794_v24 = vld [vmem:[%s15020_s2 + $0x1a0] ss:$12 sps:$4 sm:$0xff]  }
  0xa7   : > { %1853 = vmatpush1.bf16.msra.mxu0 %v10737_v22  ;;  %10204 = vmatpush3.bf16.msra.mxu1 %v10740_v25  ;;  %v10791_v25 = vld [vmem:[%s15020_s2 + $0x858] ss:$12 sps:$4 sm:$0xff]   ;;  %v10797_v22 = vld [vmem:[%s15020_s2 + $0x874] ss:$12 sps:$4 sm:$0xff]  }
  0xa8   : > { %1854 = vmatprep.subr.bf16.mxu0 %v10743_v26  ;;  %10205 = vmatprep.subr.bf16.mxu1 %v10744_v27  ;;  %v10798_v26 = vld [vmem:[%s15020_s2 + $0x1b8] ss:$12 sps:$4 sm:$0xff]  }
  0xab   : > { %1855 = vmatpush1.bf16.msra.mxu0 %v10741_v45  ;;  %10206 = vmatpush3.bf16.msra.mxu1 %v10744_v27  ;;  %v10801_v27 = vld [vmem:[%s15020_s2 + $0x88c] ss:$12 sps:$4 sm:$0xff]   ;;  %v10802_v45 = vld [vmem:[%s15020_s2 + $0x1d0] ss:$12 sps:$4 sm:$0xff]  }
  0xac   : > { %1856 = vmatprep.subr.bf16.mxu0 %v10749_v29  ;;  %9780 = vmatprep.subr.bf16.mxu1 %v10750_v30  ;;  %v10805_v29 = vld [vmem:[%s15020_s2 + $0x8a4] ss:$12 sps:$4 sm:$0xff]   ;;  %v10806_v30 = vld [vmem:[%s15020_s2 + $0x1e8] ss:$12 sps:$4 sm:$0xff]  }
  0xae   : > { %10208 = vmatmul.mubr.bf16.vlgmr.msra.gmra.mrb[24].mxu1 %v12238_v9 }
  0xaf   : > { %1857 = vmatpush1.bf16.msra.mxu0 %v10747_v31  ;;  %9781 = vmatpush3.bf16.msra.mxu1 %v10751_v32  ;;  %v10809_v31 = vld [vmem:[%s15020_s2 + $0x8bc] ss:$12 sps:$4 sm:$0xff]   ;;  %v10810_v32 = vld [vmem:[%s15020_s2 + $0x200] ss:$12 sps:$4 sm:$0xff]  }
  0xb0   : > { %1858 = vmatprep.subr.bf16.mxu0 %v10754_v35  ;;  %9782 = vmatprep.subr.bf16.mxu1 %v10755_v38  ;;  %v10807_v35 = vld [vmem:[%s15020_s2 + $0x8b8] ss:$12 sps:$4 sm:$0xff]   ;;  %v10813_v38 = vld [vmem:[%s15020_s2 + $0x8d4] ss:$12 sps:$4 sm:$0xff]  }
  0xb1   : > { %3277 = vmatprep.mubr.bf16.mxu1 %v11915_v2 }
  0xb3   : > { %1859 = vmatpush1.bf16.msra.mxu0 %v10752_v42  ;;  %9783 = vmatpush3.bf16.msra.mxu1 %v10756_v43  ;;  %v10814_v42 = vld [vmem:[%s15020_s2 + $0x218] ss:$12 sps:$4 sm:$0xff]   ;;  %v10811_v43 = vld [vmem:[%s15020_s2 + $0x8d0] ss:$12 sps:$4 sm:$0xff]  }
  0xb4   : > { %1860 = vmatprep.subr.bf16.mxu0 %v10759_v46  ;;  %9784 = vmatprep.subr.bf16.mxu1 %v10760_v47  ;;  %v10817_v46 = vld [vmem:[%s15020_s2 + $0x8ec] ss:$12 sps:$4 sm:$0xff]   ;;  %v10818_v47 = vld [vmem:[%s15020_s2 + $0x230] ss:$12 sps:$4 sm:$0xff]  }
  0xb7   : > { %1861 = vmatpush1.bf16.msra.mxu0 %v10757_v48  ;;  %9785 = vmatpush3.bf16.msra.mxu1 %v10761_v57  ;;  %v10815_v48 = vld [vmem:[%s15020_s2 + $0x8e8] ss:$12 sps:$4 sm:$0xff]   ;;  %v10821_v57 = vld [vmem:[%s15020_s2 + $0x904] ss:$12 sps:$4 sm:$0xff]  }
  0xb8   : > { %1862 = vmatprep.subr.bf16.mxu0 %v10764_v49  ;;  %9786 = vmatprep.subr.bf16.mxu1 %v10765_v51  ;;  %v10822_v49 = vld [vmem:[%s15020_s2 + $0x548] ss:$12 sps:$4 sm:$0xff]   ;;  %v3345_v51 = vrot.slane %v11902_v60, 1  ;;  %v10827_v60 = vld [vmem:[%s15020_s2 + $0x560] ss:$12 sps:$4 sm:$0xff]  }
  0xbb   : > { %1863 = vmatpush1.bf16.msra.mxu0 %v10762_v52  ;;  %9787 = vmatpush3.bf16.msra.mxu1 %v10766_v53  ;;  %v10819_v52 = vld [vmem:[%s15020_s2 + $0x900] ss:$12 sps:$4 sm:$0xff]   ;;  %v10823_v53 = vld [vmem:[%s15020_s2 + $0x488] ss:$12 sps:$4 sm:$0xff]  }
  0xbc   : > { %1864 = vmatprep.subr.bf16.mxu0 %v10769_v55  ;;  %9788 = vmatprep.subr.bf16.mxu1 %v10770_v56  ;;  %v12489_v55 = vrot.slane %v11912_v1, 1  ;;  %v10826_v56 = vld [vmem:[%s15020_s2 + $0x91c] ss:$12 sps:$4 sm:$0xff]   ;;  %v10824_v1 = vld [vmem:[%s15020_s2 + $0x918] ss:$12 sps:$4 sm:$0xff]  }
  0xbf   : > { %1865 = vmatpush1.bf16.msra.mxu0 %v10767_v58  ;;  %9789 = vmatpush3.bf16.msra.mxu1 %v10771_v59  ;;  %v11558_v58 = vld [vmem:[%s11784_s26 + $0x20] ss:$0 sps:$4 sm:$0x11]  }
  0xc0   : > { %1866 = vmatprep.subr.bf16.mxu0 %v10774_v0  ;;  %9790 = vmatprep.subr.bf16.mxu1 %v10775_v4  ;;  %v10828_v59 = vld [vmem:[%s15020_s2 + $0x4a0] ss:$12 sps:$4 sm:$0xff]   ;;  %v12507_v0 = vsel %vm3341_vm3, %v3345_v51, %v12489_v55  ;;  %v10867_v51 = vld [vmem:[%s15020_s2 + $0x9f0] ss:$12 sps:$4 sm:$0xff]  }
  0xc1   : > { %v10831_v4 = vld [vmem:[%s15020_s2 + $0x934] ss:$12 sps:$4 sm:$0xff]  }
  0xc3   : > { %1867 = vmatpush1.bf16.msra.mxu0 %v10772_v6  ;;  %9791 = vmatpush3.bf16.msra.mxu1 %v10776_v34  ;;  %v10829_v6 = vld [vmem:[%s15020_s2 + $0x930] ss:$12 sps:$4 sm:$0xff]   ;;  %v10833_v34 = vld [vmem:[%s15020_s2 + $0x4b8] ss:$12 sps:$4 sm:$0xff]  }
  0xc4   : > { %1868 = vmatprep.subr.bf16.mxu0 %v10779_v62  ;;  %9792 = vmatprep.subr.bf16.mxu1 %v10780_v7  ;;  %v10836_v62 = vld [vmem:[%s15020_s2 + $0x94c] ss:$12 sps:$4 sm:$0xff]   ;;  %v10837_v7 = vld [vmem:[%s15020_s2 + $0x590] ss:$12 sps:$4 sm:$0xff]  }
  0xc7   : > { %1869 = vmatpush1.bf16.msra.mxu0 %v10777_v10  ;;  %9793 = vmatpush3.bf16.msra.mxu1 %v10781_v12  ;;  %v10834_v10 = vld [vmem:[%s15020_s2 + $0x948] ss:$12 sps:$4 sm:$0xff]   ;;  %v10838_v12 = vld [vmem:[%s15020_s2 + $0x4d0] ss:$12 sps:$4 sm:$0xff]  }
  0xc8   : > { %1870 = vmatprep.subr.bf16.mxu0 %v10784_v5  ;;  %9794 = vmatprep.subr.bf16.mxu1 %v10785_v13  ;;  %v10841_v5 = vld [vmem:[%s15020_s2 + $0x964] ss:$12 sps:$4 sm:$0xff]   ;;  %v10842_v13 = vld [vmem:[%s15020_s2 + $0x5a8] ss:$12 sps:$4 sm:$0xff]  }
  0xcb   : > { %1871 = vmatpush1.bf16.msra.mxu0 %v10782_v16  ;;  %9795 = vmatpush3.bf16.msra.mxu1 %v10786_v11  ;;  %v10839_v16 = vld [vmem:[%s15020_s2 + $0x960] ss:$12 sps:$4 sm:$0xff]   ;;  %v10846_v11 = vld [vmem:[%s15020_s2 + $0x97c] ss:$12 sps:$4 sm:$0xff]  }
  0xcc   : > { %1891 = vmatprep.subr.bf16.mxu0 %v10789_v17  ;;  %10211 = vmatprep.subr.bf16.mxu1 %v10790_v18  ;;  %v10844_v17 = vld [vmem:[%s15020_s2 + $0x978] ss:$12 sps:$4 sm:$0xff]  }
  0xce   : > { %3278 = vmatmul.mubr.bf16.vlgmr.msra.gmra.mrb[28].mxu1 %v11954_v36  ;;  %1873 = vmatmul.mubr.bf16.vlgmr.msra.gmra.mrb[0].mxu0 %v11994_v61  ;;  %v10795_v61 = vld [vmem:[%s15020_s2 + $0x870] ss:$12 sps:$4 sm:$0xff]  }
  0xcf   : > { %1892 = vmatpush1.bf16.msra.mxu0 %v10787_v23  ;;  %10212 = vmatpush3.bf16.msra.mxu1 %v10790_v18  ;;  %v10848_v18 = vld [vmem:[%s15020_s2 + $0x500] ss:$12 sps:$4 sm:$0xff]  }
  0xd0   : > { %1893 = vmatprep.subr.bf16.mxu0 %v10793_v44  ;;  %10213 = vmatprep.subr.bf16.mxu1 %v10794_v24  ;;  %v10851_v23 = vld [vmem:[%s15020_s2 + $0x994] ss:$12 sps:$4 sm:$0xff]   ;;  %v10852_v44 = vld [vmem:[%s15020_s2 + $0x5d8] ss:$12 sps:$4 sm:$0xff]  }
  0xd1   : > { %3285 = vmatprep.mubr.bf16.mxu1 %v11917_v3  ;;  %1882 = vmatprep.mubr.bf16.mxu0 %v11941_v20  ;;  %v10799_v20 = vld [vmem:[%s15020_s2 + $0x888] ss:$12 sps:$4 sm:$0xff]  }
  0xd3   : > { %1894 = vmatpush1.bf16.msra.mxu0 %v10791_v25  ;;  %10214 = vmatpush3.bf16.msra.mxu1 %v10794_v24 }
  0xd4   : > { %1895 = vmatprep.subr.bf16.mxu0 %v10797_v22  ;;  %10215 = vmatprep.subr.bf16.mxu1 %v10798_v26  ;;  %v10849_v22 = vld [vmem:[%s15020_s2 + $0x990] ss:$12 sps:$4 sm:$0xff]  }
  0xd6   : > { %3286 = vmatmul.mubr.bf16.gmra.mrb[32].mxu1 %v11958_v41  ;;  %1883 = vmatmul.mubr.bf16.gmra.mrb[20].mxu0 %v11956_v39  ;;  %v10803_v39 = vld [vmem:[%s15020_s2 + $0x8a0] ss:$12 sps:$4 sm:$0xff]  }
  0xd7   : > { %1896 = vmatpush1.bf16.msra.mxu0 %v10795_v61  ;;  %10216 = vmatpush3.bf16.msra.mxu1 %v10798_v26  ;;  %v10853_v26 = vld [vmem:[%s15020_s2 + $0x518] ss:$12 sps:$4 sm:$0xff]  }
  0xd8   : > { %1897 = vmatprep.subr.bf16.mxu0 %v10801_v27  ;;  %10217 = vmatprep.subr.bf16.mxu1 %v10802_v45  ;;  %v10856_v27 = vld [vmem:[%s15020_s2 + $0x9ac] ss:$12 sps:$4 sm:$0xff]  }
  0xd9   : > { %10227 = vmatprep.mubr.bf16.mxu1 %v11803_v21  ;;  %1923 = vmatprep.mubr.bf16.mxu0 %v11633_v33 }
  0xdb   : > { %1898 = vmatpush1.bf16.msra.mxu0 %v10799_v20  ;;  %10218 = vmatpush3.bf16.msra.mxu1 %v10802_v45  ;;  %v10857_v20 = vld [vmem:[%s15020_s2 + $0x5f0] ss:$12 sps:$4 sm:$0xff]  }
  0xdc   : > { %1899 = vmatprep.subr.bf16.mxu0 %v10805_v29  ;;  %10219 = vmatprep.subr.bf16.mxu1 %v10806_v30  ;;  %v10854_v29 = vld [vmem:[%s15020_s2 + $0x9a8] ss:$12 sps:$4 sm:$0xff]  }
  0xdf   : > { %1900 = vmatpush1.bf16.msra.mxu0 %v10803_v39  ;;  %10220 = vmatpush3.bf16.msra.mxu1 %v10806_v30  ;;  %v10858_v30 = vld [vmem:[%s15020_s2 + $0x530] ss:$12 sps:$4 sm:$0xff]  }
  0xe0   : > { %1901 = vmatprep.subr.bf16.mxu0 %v10809_v31  ;;  %10221 = vmatprep.subr.bf16.mxu1 %v10810_v32  ;;  %v10861_v39 = vld [vmem:[%s15020_s2 + $0x9c4] ss:$12 sps:$4 sm:$0xff]   ;;  %v3342_v31 = vrot.slane %v11907_v63, 1  ;;  %v10865_v63 = vld [vmem:[%s15020_s2 + $0x9dc] ss:$12 sps:$4 sm:$0xff]  }
  0xe3   : > { %1902 = vmatpush1.bf16.msra.mxu0 %v10807_v35  ;;  %10222 = vmatpush3.bf16.msra.mxu1 %v10810_v32  ;;  %v12596_v32 = vrot.slane %v11927_v8, 1  ;;  %v10862_v35 = vld [vmem:[%s15020_s2 + $0x608] ss:$12 sps:$4 sm:$0xff]   ;;  %v10866_v8 = vld [vmem:[%s15020_s2 + $0x620] ss:$12 sps:$4 sm:$0xff]  }
  0xe4   : > { %1903 = vmatprep.subr.bf16.mxu0 %v10813_v38  ;;  %10223 = vmatprep.subr.bf16.mxu1 %v10814_v42  ;;  %v10859_v38 = vld [vmem:[%s15020_s2 + $0x9c0] ss:$12 sps:$4 sm:$0xff]  }
  0xe7   : > { %1904 = vmatpush1.bf16.msra.mxu0 %v10811_v43  ;;  %10224 = vmatpush3.bf16.msra.mxu1 %v10814_v42  ;;  %v12606_v42 = vsel %vm3341_vm3, %v3342_v31, %v12596_v32  ;;  %v10863_v43 = vld [vmem:[%s15020_s2 + $0x9d8] ss:$12 sps:$4 sm:$0xff]  }
  0xe8   : > { %1905 = vmatprep.subr.bf16.mxu0 %v10817_v46  ;;  %10225 = vmatprep.subr.bf16.mxu1 %v10818_v47  ;;  %v10869_v46 = vld [vmem:[%s15020_s2 + $0x9f4] ss:$12 sps:$4 sm:$0xff]  }
  0xeb   : > { %1906 = vmatpush1.bf16.msra.mxu0 %v10815_v48  ;;  %10226 = vmatpush3.bf16.msra.mxu1 %v10818_v47  ;;  %v10870_v47 = vld [vmem:[%s15020_s2 + $0x638] ss:$12 sps:$4 sm:$0xff]   ;;  %v3348_v48 = vrot.slane %v12029_v14, 1 }
  0xec   : > { %2555 = vmatprep.subr.bf16.mxu0 %v10821_v57  ;;  %9818 = vmatprep.subr.bf16.mxu1 %v10822_v49  ;;  %v11559_v57 = vld [vmem:[%s11784_s26 + $0x20] ss:$0 sps:$4 sm:$0x33]  }
  0xed   : > { %v12627_v49 = vrot.slane %v11559_v57, 1 }
  0xee   : > { %10228 = vmatmul.mubr.bf16.vlgmr.msra.gmra.mrb[36].mxu1 %v11558_v58  ;;  %1924 = vmatmul.mubr.bf16.vlgmr.msra.gmra.mrb[0].mxu0 %v12060_v40  ;;  %v10832_v40 = vld [vmem:[%s15020_s2 + $0x578] ss:$12 sps:$4 sm:$0xff]   ;;  %v10878_v58 = vld [vmem:[%s15020_s2 + $0x668] ss:$12 sps:$4 sm:$0xff]  }
  0xef   : > { %2556 = vmatpush1.bf16.msra.mxu0 %v10819_v52  ;;  %9819 = vmatpush3.bf16.msra.mxu1 %v10823_v53  ;;  %v10873_v52 = vld [vmem:[%s15020_s2 + $0xa0c] ss:$12 sps:$4 sm:$0xff]   ;;  %v10874_v53 = vld [vmem:[%s15020_s2 + $0x650] ss:$12 sps:$4 sm:$0xff]   ;;  %v12641_v14 = vsel %vm3341_vm3, %v3348_v48, %v12627_v49 }
  0xf0   : > { %2557 = vmatprep.subr.bf16.mxu0 %v10826_v56  ;;  %9820 = vmatprep.subr.bf16.mxu1 %v10827_v60  ;;  %v10871_v56 = vld [vmem:[%s15020_s2 + $0xa08] ss:$12 sps:$4 sm:$0xff]   ;;  %v10877_v60 = vld [vmem:[%s15020_s2 + $0xa24] ss:$12 sps:$4 sm:$0xff]  }
  0xf1   : > { %3875 = vmatprep.mubr.bf16.mxu1 %v12507_v0  ;;  %1933 = vmatprep.mubr.bf16.mxu0 %v11633_v33 }
  0xf3   : > { %2558 = vmatpush1.bf16.msra.mxu0 %v10824_v1  ;;  %9821 = vmatpush3.bf16.msra.mxu1 %v10828_v59  ;;  %v10875_v1 = vld [vmem:[%s15020_s2 + $0xa20] ss:$12 sps:$4 sm:$0xff]  }
  0xf4   : > { %2559 = vmatprep.subr.bf16.mxu0 %v10831_v4  ;;  %9822 = vmatprep.subr.bf16.mxu1 %v10832_v40  ;;  %v12664_v59 = vld [vmem:[%s12651_s19] sm:$0xff]  ;;  %v12667_v4 = vld [vmem:[%s12651_s19 + $0xc] sm:$0xff]  ;;  %v10881_v40 = vld [vmem:[%s15020_s2 + $0xa3c] ss:$12 sps:$4 sm:$0xff]  }
  0xf6   : > { %1934 = vmatmul.mubr.bf16.gmra.mrb[24].mxu0 %v12046_v28  ;;  %v10843_v28 = vld [vmem:[%s15020_s2 + $0x4e8] ss:$12 sps:$4 sm:$0xff]  }
  0xf7   : > { %2560 = vmatpush1.bf16.msra.mxu0 %v10829_v6  ;;  %9823 = vmatpush3.bf16.msra.mxu1 %v10833_v34  ;;  %v10882_v6 = vld [vmem:[%s15020_s2 + $0x680] ss:$12 sps:$4 sm:$0xff]   ;;  %v10879_v34 = vld [vmem:[%s15020_s2 + $0xa38] ss:$12 sps:$4 sm:$0xff]  }
  0xf8   : > { %2561 = vmatprep.subr.bf16.mxu0 %v10836_v62  ;;  %9824 = vmatprep.subr.bf16.mxu1 %v10837_v7  ;;  %v12680_v62 = vcombine.high %v12664_v59, %v12667_v4  ;;  %v12683_v7 = vld [vmem:[%s12651_s19 + $0x18] sm:$0x11] }
  0xf9   : > { %2587 = vmatprep.mubr.bf16.mxu0 %v12157_v37  ;;  %v10847_v37 = vld [vmem:[%s15020_s2 + $0x5c0] ss:$12 sps:$4 sm:$0xff]  }
  0xfb   : > { %2562 = vmatpush1.bf16.msra.mxu0 %v10834_v10  ;;  %9825 = vmatpush3.bf16.msra.mxu1 %v10838_v12  ;;  %v10885_v10 = vld [vmem:[%s15020_s2 + $0xa54] ss:$12 sps:$4 sm:$0xff]   ;;  %v10886_v12 = vld [vmem:[%s15020_s2 + $0x698] ss:$12 sps:$4 sm:$0xff]  }
  0xfc   : > { %2563 = vmatprep.subr.bf16.mxu0 %v10841_v5  ;;  %9826 = vmatprep.subr.bf16.mxu1 %v10842_v13 }
  0xff   : > { %2564 = vmatpush1.bf16.msra.mxu0 %v10839_v16  ;;  %9827 = vmatpush3.bf16.msra.mxu1 %v10843_v28  ;;  %v12693_v16 = vcombine.high %v12683_v7, %v12683_v7  ;;  %v4261_v28 = vshll.u32 %v12680_v62, 16 }
 0x100   : > { %2565 = vmatprep.subr.bf16.mxu0 %v10846_v11  ;;  %9828 = vmatprep.subr.bf16.mxu1 %v10847_v37 }
 0x101   : > { %v12567_v24 = vpop.f32.mrb[0].mxu1 }
 0x102   : > { %v12569_v25 = vpop.f32.mrb[1].mxu1 }
 0x103   : > { %v10170_v61 = vpop.f32.mrb[2].mxu1  ;;  %2566 = vmatpush1.bf16.msra.mxu0 %v10844_v17  ;;  %9829 = vmatpush3.bf16.msra.mxu1 %v10848_v18  ;;  %v10883_v17 = vld [vmem:[%s15020_s2 + $0xa50] ss:$12 sps:$4 sm:$0xff]  }
 0x104   : > { %v12580_v45 = vpop.f32.mrb[3].mxu1  ;;  %2567 = vmatprep.subr.bf16.mxu0 %v10851_v23  ;;  %9830 = vmatprep.subr.bf16.mxu1 %v10852_v44  ;;  %v10889_v23 = vld [vmem:[%s15020_s2 + $0xa6c] ss:$12 sps:$4 sm:$0xff]   ;;  %v10890_v44 = vld [vmem:[%s15020_s2 + $0x6b0] ss:$12 sps:$4 sm:$0xff]   ;;  %v4263_v61 = vrot.slane %v4261_v28, 1 }
 0x105   : > { %v10920_v28 = vld [vmem:[%s15021_s3 + $0x2a4] ss:$12 sps:$4 sm:$0xff]  }
 0x107   : > { %2568 = vmatpush1.bf16.msra.mxu0 %v10849_v22  ;;  %9831 = vmatpush3.bf16.msra.mxu1 %v10853_v26  ;;  %v4259_v26 = vshrl.u32 %v12680_v62, 16 }
 0x108   : > { %2569 = vmatprep.subr.bf16.mxu0 %v10856_v27  ;;  %9832 = vmatprep.subr.bf16.mxu1 %v10857_v20  ;;  %v4266_v27 = vshll.u32 %v12693_v16, 16  ;;  %v10887_v20 = vld [vmem:[%s15020_s2 + $0xa68] ss:$12 sps:$4 sm:$0xff]  }
 0x10b   : > { %2570 = vmatpush1.bf16.msra.mxu0 %v10854_v29  ;;  %9833 = vmatpush3.bf16.msra.mxu1 %v10858_v30  ;;  %v10893_v29 = vld [vmem:[%s15020_s2 + $0xa84] ss:$12 sps:$4 sm:$0xff]  }
 0x10c   : > { %2571 = vmatprep.subr.bf16.mxu0 %v10861_v39  ;;  %10231 = vmatprep.subr.bf16.mxu1 %v10862_v35  ;;  %v10896_v30 = vld [vmem:[%s15021_s3 + $0x244] ss:$12 sps:$4 sm:$0xff]   ;;  %v10891_v39 = vld [vmem:[%s15020_s2 + $0xa80] ss:$12 sps:$4 sm:$0xff]  }
 0x10e   : > { %3876 = vmatmul.mubr.bf16.vlgmr.msra.gmra.mrb[40].mxu1 %v12606_v42 }
 0x10f   : > { %2572 = vmatpush1.bf16.msra.mxu0 %v10859_v38  ;;  %10232 = vmatpush3.bf16.msra.mxu1 %v10862_v35  ;;  %v10894_v38 = vld [vmem:[%s15021_s3 + $0x240] ss:$12 sps:$4 sm:$0xff]  }
 0x110   : > { %2573 = vmatprep.subr.bf16.mxu0 %v10865_v63  ;;  %10233 = vmatprep.subr.bf16.mxu1 %v10866_v8 }
 0x111   : > { %3883 = vmatprep.mubr.bf16.mxu1 %v12489_v55 }
 0x113   : > { %2574 = vmatpush1.bf16.msra.mxu0 %v10863_v43  ;;  %10234 = vmatpush3.bf16.msra.mxu1 %v10866_v8  ;;  %v4264_v43 = vor.u32 %v4263_v61, %v4259_v26  ;;  %v10929_v26 = vld [vmem:[%s15020_s2 + $0xb14] ss:$12 sps:$4 sm:$0xff]  }
 0x114   : > { %2575 = vmatprep.subr.bf16.mxu0 %v10869_v46  ;;  %10235 = vmatprep.subr.bf16.mxu1 %v10870_v47  ;;  %v4268_v46 = vrot.slane %v4266_v27, 1  ;;  %v10932_v61 = vld [vmem:[%s15021_s3 + $0x2d4] ss:$12 sps:$4 sm:$0xff]  }
 0x116   : > { %3884 = vmatmul.mubr.bf16.gmra.mrb[44].mxu1 %v12596_v32 }
 0x117   : > { %2576 = vmatpush1.bf16.msra.mxu0 %v10867_v51  ;;  %10236 = vmatpush3.bf16.msra.mxu1 %v10870_v47  ;;  %v10899_v47 = vld [vmem:[%s15020_s2 + $0xa9c] ss:$12 sps:$4 sm:$0xff]  }
 0x118   : > { %2577 = vmatprep.subr.bf16.mxu0 %v10873_v52  ;;  %10237 = vmatprep.subr.bf16.mxu1 %v10874_v53  ;;  %v10902_v52 = vld [vmem:[%s15021_s3 + $0x25c] ss:$12 sps:$4 sm:$0xff]  }
 0x119   : > { %10247 = vmatprep.mubr.bf16.mxu1 %v12641_v14 }
 0x11b   : > { %2578 = vmatpush1.bf16.msra.mxu0 %v10871_v56  ;;  %10238 = vmatpush3.bf16.msra.mxu1 %v10874_v53 }
 0x11c   : > { %2579 = vmatprep.subr.bf16.mxu0 %v10877_v60  ;;  %10239 = vmatprep.subr.bf16.mxu1 %v10878_v58  ;;  %v10897_v60 = vld [vmem:[%s15020_s2 + $0xa98] ss:$12 sps:$4 sm:$0xff]  }
 0x11f   : > { %2580 = vmatpush1.bf16.msra.mxu0 %v10875_v1  ;;  %10240 = vmatpush3.bf16.msra.mxu1 %v10878_v58  ;;  %v10900_v58 = vld [vmem:[%s15021_s3 + $0x258] ss:$12 sps:$4 sm:$0xff]   ;;  %v12745_v1 = vsel %vm553_vm0, %v4264_v43, %v4268_v46 }
 0x120   : > { %2581 = vmatprep.subr.bf16.mxu0 %v10881_v40  ;;  %10241 = vmatprep.subr.bf16.mxu1 %v10882_v6  ;;  %v10905_v40 = vld [vmem:[%s15020_s2 + $0xab4] ss:$12 sps:$4 sm:$0xff]   ;;  %v10938_v46 = vld [vmem:[%s15021_s3 + $0x2ec] ss:$12 sps:$4 sm:$0xff]  }
 0x121   : > { %v9720_v5 = vpop.f32.mrb[4].mxu1 }
 0x122   : > { %v9721_v13 = vpop.f32.mrb[5].mxu1 }
 0x123   : > { %v12696_v11 = vadd.f32 %v9721_v13, %v9720_v5  ;;  %v9723_v37 = vpop.f32.mrb[6].mxu1  ;;  %2582 = vmatpush1.bf16.msra.mxu0 %v10879_v34  ;;  %10242 = vmatpush3.bf16.msra.mxu1 %v10882_v6  ;;  %v10908_v6 = vld [vmem:[%s15021_s3 + $0x274] ss:$12 sps:$4 sm:$0xff]   ;;  %v10906_v34 = vld [vmem:[%s15021_s3 + $0x270] ss:$12 sps:$4 sm:$0xff]  }
 0x124   : > { %v9724_v18 = vpop.f32.mrb[7].mxu1  ;;  %2583 = vmatprep.subr.bf16.mxu0 %v10885_v10  ;;  %10243 = vmatprep.subr.bf16.mxu1 %v10886_v12  ;;  %v10911_v10 = vld [vmem:[%s15020_s2 + $0xacc] ss:$12 sps:$4 sm:$0xff]   ;;  %v10912_v5 = vld [vmem:[%s15021_s3 + $0x288] ss:$12 sps:$4 sm:$0xff]  }
 0x125   : > { %v12707_v22 = vadd.f32 %v9724_v18, %v9723_v37  ;;  %v10917_v13 = vld [vmem:[%s15020_s2 + $0xae4] ss:$12 sps:$4 sm:$0xff]   ;;  %v10918_v37 = vld [vmem:[%s15021_s3 + $0x2a0] ss:$12 sps:$4 sm:$0xff]   ;;  %v10926_v18 = vld [vmem:[%s15021_s3 + $0x2bc] ss:$12 sps:$4 sm:$0xff]  }
 0x127   : > { %2584 = vmatpush1.bf16.msra.mxu0 %v10883_v17  ;;  %10244 = vmatpush3.bf16.msra.mxu1 %v10886_v12  ;;  %v10909_v12 = vld [vmem:[%s15020_s2 + $0xac8] ss:$12 sps:$4 sm:$0xff]  }
 0x128   : > { %2585 = vmatprep.subr.bf16.mxu0 %v10889_v23  ;;  %10245 = vmatprep.subr.bf16.mxu1 %v10890_v44  ;;  %v10923_v17 = vld [vmem:[%s15020_s2 + $0xafc] ss:$12 sps:$4 sm:$0xff]   ;;  %v10921_v23 = vld [vmem:[%s15020_s2 + $0xaf8] ss:$12 sps:$4 sm:$0xff]  }
 0x129   : > { %v9726_v31 = vpop.f32.mrb[8].mxu1  ;;  %v12723_v35 = vpop.f32.mrb[4].mxu0 }
 0x12a   : > { %v9727_v63 = vpop.f32.mrb[9].mxu1  ;;  %v12728_v8 = vpop.f32.mrb[5].mxu0 }
 0x12b   : > { %2586 = vmatpush1.bf16.msra.mxu0 %v10887_v20  ;;  %10246 = vmatpush3.bf16.msra.mxu1 %v10890_v44  ;;  %v9728_v48 = vadd.f32 %v9727_v63, %v9726_v31  ;;  %v9729_v57 = vpop.f32.mrb[10].mxu1  ;;  %v1034_v51 = vpop.f32.mrb[6].mxu0  ;;  %v10924_v44 = vld [vmem:[%s15021_s3 + $0x2b8] ss:$12 sps:$4 sm:$0xff]   ;;  %v10927_v20 = vld [vmem:[%s15020_s2 + $0xb10] ss:$12 sps:$4 sm:$0xff]  }
 0x12c   : > { %2606 = vmatprep.subr.bf16.mxu0 %v10893_v29  ;;  %4678 = vmatprep.subr.bf16.mxu1 %v10896_v30  ;;  %v9730_v53 = vpop.f32.mrb[11].mxu1  ;;  %v1035_v56 = vpop.f32.mrb[7].mxu0  ;;  %v10930_v29 = vld [vmem:[%s15021_s3 + $0x2d0] ss:$12 sps:$4 sm:$0xff]   ;;  %v10935_v63 = vld [vmem:[%s15020_s2 + $0xb2c] ss:$12 sps:$4 sm:$0xff]  }
 0x12d   : > { %v10941_v57 = vld [vmem:[%s15020_s2 + $0x4] ss:$12 sps:$4 sm:$0xff]   ;;  %v10939_v51 = vld [vmem:[%s15020_s2] ss:$12 sps:$4 sm:$0xff]  }
 0x12e   : > { %10248 = vmatmul.mubr.bf16.vlgmr.msra.gmra.mrb[48].mxu1 %v12627_v49  ;;  %2588 = vmatmul.mubr.bf16.vlgmr.msra.gmra.mrb[0].mxu0 %v12213_v54  ;;  %v10903_v54 = vld [vmem:[%s15020_s2 + $0xab0] ss:$12 sps:$4 sm:$0xff]  }
 0x12f   : > { %2607 = vmatpush1.bf16.msra.mxu0 %v10891_v39  ;;  %4679 = vmatpush1.bf16.msra.mxu1 %v10894_v38 }
 0x130   : > { %2608 = vmatprep.subr.bf16.mxu0 %v10899_v47  ;;  %4680 = vmatprep.subr.bf16.mxu1 %v10902_v52 }
 0x131   : > { %2597 = vmatprep.mubr.bf16.mxu0 %v12149_v19  ;;  %4710 = vmatprep.mubr.bf16.mxu1 %v12745_v1  ;;  %v10914_v19 = vld [vmem:[%s15021_s3 + $0x28c] ss:$12 sps:$4 sm:$0xff]  }
 0x133   : > { %2609 = vmatpush1.bf16.msra.mxu0 %v10897_v60  ;;  %4681 = vmatpush1.bf16.msra.mxu1 %v10900_v58  ;;  %v10942_v60 = vld [vmem:[%s15021_s3 + $0x300] ss:$12 sps:$4 sm:$0xff]   ;;  %v10947_v58 = vld [vmem:[%s15020_s2 + $0x1c] ss:$12 sps:$4 sm:$0xff]  }
 0x134   : > { %2610 = vmatprep.subr.bf16.mxu0 %v10905_v40  ;;  %4682 = vmatprep.subr.bf16.mxu1 %v10908_v6 }
 0x136   : > { %2598 = vmatmul.mubr.bf16.gmra.mrb[28].mxu0 %v12200_v50  ;;  %v10915_v50 = vld [vmem:[%s15020_s2 + $0xae0] ss:$12 sps:$4 sm:$0xff]  }
 0x137   : > { %2611 = vmatpush1.bf16.msra.mxu0 %v10903_v54  ;;  %4683 = vmatpush1.bf16.msra.mxu1 %v10906_v34  ;;  %v10945_v34 = vld [vmem:[%s15020_s2 + $0x18] ss:$12 sps:$4 sm:$0xff]  }
 0x138   : > { %2612 = vmatprep.subr.bf16.mxu0 %v10911_v10  ;;  %4684 = vmatprep.subr.bf16.mxu1 %v10914_v19  ;;  %v10953_v10 = vld [vmem:[%s15020_s2 + $0x34] ss:$12 sps:$4 sm:$0xff]   ;;  %v10951_v19 = vld [vmem:[%s15020_s2 + $0x30] ss:$12 sps:$4 sm:$0xff]  }
 0x139   : > { %2638 = vmatprep.mubr.bf16.mxu0 %v11633_v33 }
 0x13b   : > { %2613 = vmatpush1.bf16.msra.mxu0 %v10909_v12  ;;  %4685 = vmatpush1.bf16.msra.mxu1 %v10912_v5  ;;  %v10954_v12 = vld [vmem:[%s15021_s3 + $0x330] ss:$12 sps:$4 sm:$0xff]   ;;  %v10959_v5 = vld [vmem:[%s15020_s2 + $0x4c] ss:$12 sps:$4 sm:$0xff]  }
 0x13c   : > { %2614 = vmatprep.subr.bf16.mxu0 %v10917_v13  ;;  %4686 = vmatprep.subr.bf16.mxu1 %v10920_v28  ;;  %v10962_v13 = vld [vmem:[%s15021_s3 + $0x34c] ss:$12 sps:$4 sm:$0xff]   ;;  %v10957_v28 = vld [vmem:[%s15020_s2 + $0x48] ss:$12 sps:$4 sm:$0xff]  }
 0x13f   : > { %2615 = vmatpush1.bf16.msra.mxu0 %v10915_v50  ;;  %4687 = vmatpush1.bf16.msra.mxu1 %v10918_v37  ;;  %v10960_v50 = vld [vmem:[%s15021_s3 + $0x348] ss:$12 sps:$4 sm:$0xff]   ;;  %v10965_v37 = vld [vmem:[%s15020_s2 + $0x64] ss:$12 sps:$4 sm:$0xff]  }
 0x140   : > { %2616 = vmatprep.subr.bf16.mxu0 %v10923_v17  ;;  %4688 = vmatprep.subr.bf16.mxu1 %v10926_v18  ;;  %v10968_v17 = vld [vmem:[%s15021_s3 + $0x364] ss:$12 sps:$4 sm:$0xff]   ;;  %v10966_v18 = vld [vmem:[%s15021_s3 + $0x360] ss:$12 sps:$4 sm:$0xff]  }
 0x141   : > { %v10189_v27 = vpop.f32.mrb[12].mxu1 }
 0x142   : > { %v12811_v30 = vadd.f32 %v10189_v27, %v9728_v48  ;;  %v2024_v39 = vpop.f32.mrb[13].mxu1  ;;  %v10936_v48 = vld [vmem:[%s15021_s3 + $0x2e8] ss:$12 sps:$4 sm:$0xff]  }
 0x143   : > { %v12814_v31 = vadd.f32 %v12696_v11, %v2024_v39  ;;  %v10190_v38 = vpop.f32.mrb[14].mxu1  ;;  %2617 = vmatpush1.bf16.msra.mxu0 %v10921_v23  ;;  %4689 = vmatpush1.bf16.msra.mxu1 %v10924_v44  ;;  %v10933_v11 = vld [vmem:[%s15020_s2 + $0xb28] ss:$12 sps:$4 sm:$0xff]   ;;  %v12906_v44 = vcombine.low %v12664_v59, %v12667_v4  ;;  %v12922_v4 = vcombine.low %v12683_v7, %v12683_v7 }
 0x144   : > { %v2027_v43 = vpop.f32.mrb[15].mxu1  ;;  %2618 = vmatprep.subr.bf16.mxu0 %v10929_v26  ;;  %4690 = vmatprep.subr.bf16.mxu1 %v10932_v61  ;;  %v10971_v23 = vld [vmem:[%s15020_s2 + $0x7c] ss:$12 sps:$4 sm:$0xff]   ;;  %v10969_v26 = vld [vmem:[%s15020_s2 + $0x78] ss:$12 sps:$4 sm:$0xff]  }
 0x145   : > { %v12823_v47 = vadd.f32 %v12707_v22, %v2027_v43  ;;  %v10944_v22 = vld [vmem:[%s15021_s3 + $0x304] ss:$12 sps:$4 sm:$0xff]   ;;  %v10977_v59 = vld [vmem:[%s15020_s2 + $0x94] ss:$12 sps:$4 sm:$0xff]   ;;  %v4249_v27 = vshll.u32 %v12906_v44, 16 }
 0x146   : > { %v10972_v61 = vld [vmem:[%s15021_s3 + $0x378] ss:$12 sps:$4 sm:$0xff]   ;;  %v10975_v38 = vld [vmem:[%s15020_s2 + $0x90] ss:$12 sps:$4 sm:$0xff]  }
 0x147   : > { %2619 = vmatpush1.bf16.msra.mxu0 %v10927_v20  ;;  %4691 = vmatpush1.bf16.msra.mxu1 %v10930_v29  ;;  %v10980_v20 = vld [vmem:[%s15021_s3 + $0x394] ss:$12 sps:$4 sm:$0xff]  }
 0x148   : > { %2620 = vmatprep.subr.bf16.mxu0 %v10935_v63  ;;  %4692 = vmatprep.subr.bf16.mxu1 %v10938_v46  ;;  %v10978_v63 = vld [vmem:[%s15021_s3 + $0x390] ss:$12 sps:$4 sm:$0xff]   ;;  %v10983_v46 = vld [vmem:[%s15020_s2 + $0xac] ss:$12 sps:$4 sm:$0xff]  }
 0x149   : > { %v1081_v52 = vpop.f32.mrb[8].mxu0 }
 0x14a   : > { %v12841_v53 = vadd.f32 %v1081_v52, %v12723_v35  ;;  %v1083_v56 = vpop.f32.mrb[9].mxu0  ;;  %v10950_v35 = vld [vmem:[%s15021_s3 + $0x31c] ss:$12 sps:$4 sm:$0xff]   ;;  %v4251_v52 = vrot.slane %v4249_v27, 1 }
 0x14b   : > { %2621 = vmatpush1.bf16.msra.mxu0 %v10933_v11  ;;  %4693 = vmatpush1.bf16.msra.mxu1 %v10936_v48  ;;  %v12850_v40 = vadd.f32 %v1083_v56, %v12728_v8  ;;  %v1085_v6 = vpop.f32.mrb[10].mxu0  ;;  %v10948_v8 = vld [vmem:[%s15021_s3 + $0x318] ss:$12 sps:$4 sm:$0xff]   ;;  %v4247_v11 = vshrl.u32 %v12906_v44, 16  ;;  %v4254_v56 = vshll.u32 %v12922_v4, 16 }
 0x14c   : > { %3143 = vmatprep.subr.bf16.mxu0 %v10941_v57  ;;  %4694 = vmatprep.subr.bf16.mxu1 %v10944_v22  ;;  %v1086_v54 = vpop.f32.mrb[11].mxu0  ;;  %v10986_v6 = vld [vmem:[%s15021_s3 + $0x3ac] ss:$12 sps:$4 sm:$0xff]  }
 0x14e   : > { %2639 = vmatmul.mubr.bf16.vlgmr.msra.gmra.mrb[0].mxu0 %v12257_v15  ;;  %v10956_v15 = vld [vmem:[%s15021_s3 + $0x334] ss:$12 sps:$4 sm:$0xff]  }
 0x14f   : > { %3144 = vmatpush1.bf16.msra.mxu0 %v10939_v51  ;;  %4695 = vmatpush1.bf16.msra.mxu1 %v10942_v60 }
 0x150   : > { %3145 = vmatprep.subr.bf16.mxu0 %v10947_v58  ;;  %4696 = vmatprep.subr.bf16.mxu1 %v10950_v35 }
 0x151   : > { %2648 = vmatprep.mubr.bf16.mxu0 %v11633_v33 }
 0x153   : > { %3146 = vmatpush1.bf16.msra.mxu0 %v10945_v34  ;;  %4697 = vmatpush1.bf16.msra.mxu1 %v10948_v8  ;;  %v10981_v8 = vld [vmem:[%s15020_s2 + $0xa8] ss:$12 sps:$4 sm:$0xff]  }
 0x154   : > { %3147 = vmatprep.subr.bf16.mxu0 %v10953_v10  ;;  %4698 = vmatprep.subr.bf16.mxu1 %v10956_v15  ;;  %v10984_v10 = vld [vmem:[%s15021_s3 + $0x3a8] ss:$12 sps:$4 sm:$0xff]  }
 0x156   : > { %2649 = vmatmul.mubr.bf16.gmra.mrb[32].mxu0 %v12238_v9  ;;  %v10963_v9 = vld [vmem:[%s15020_s2 + $0x60] ss:$12 sps:$4 sm:$0xff]  }
 0x157   : > { %3148 = vmatpush1.bf16.msra.mxu0 %v10951_v19  ;;  %4699 = vmatpush1.bf16.msra.mxu1 %v10954_v12  ;;  %v4252_v19 = vor.u32 %v4251_v52, %v4247_v11  ;;  %v4256_v12 = vrot.slane %v4254_v56, 1  ;;  %v4282_v11 = vshrl.u32 %v12922_v4, 16  ;;  %v4029_v52 = vld [vmem:[%s12651_s19 + $0x14] sm:$0xf] }
 0x158   : > { %3149 = vmatprep.subr.bf16.mxu0 %v10959_v5  ;;  %4700 = vmatprep.subr.bf16.mxu1 %v10962_v13  ;;  %v10994_v5 = vld [vmem:[%s15021_s3 + $0x3c4] ss:$12 sps:$4 sm:$0xff]   ;;  %v11009_v56 = vld [vmem:[%s15020_s2 + $0x108] ss:$12 sps:$4 sm:$0xff]  }
 0x159   : > { %3175 = vmatprep.mubr.bf16.mxu0 %v11915_v2  ;;  %v10974_v2 = vld [vmem:[%s15021_s3 + $0x37c] ss:$12 sps:$4 sm:$0xff]  }
 0x15b   : > { %3150 = vmatpush1.bf16.msra.mxu0 %v10957_v28  ;;  %4701 = vmatpush1.bf16.msra.mxu1 %v10960_v50 }
 0x15c   : > { %3151 = vmatprep.subr.bf16.mxu0 %v10965_v37  ;;  %4702 = vmatprep.subr.bf16.mxu1 %v10968_v17 }
 0x15f   : > { %3152 = vmatpush1.bf16.msra.mxu0 %v10963_v9  ;;  %4703 = vmatpush1.bf16.msra.mxu1 %v10966_v18  ;;  %v10992_v9 = vld [vmem:[%s15021_s3 + $0x3c0] ss:$12 sps:$4 sm:$0xff]   ;;  %v12971_v18 = vsel %vm553_vm0, %v4252_v19, %v4256_v12  ;;  %v11026_v19 = vld [vmem:[%s15021_s3 + $0x43c] ss:$12 sps:$4 sm:$0xff]  }
 0x160   : > { %3153 = vmatprep.subr.bf16.mxu0 %v10971_v23  ;;  %4704 = vmatprep.subr.bf16.mxu1 %v10974_v2  ;;  %v13045_v12 = vld [vmem:[%s12651_s19 + $0x20] ss:$0 sps:$4 sm:$0x11]  }
 0x161   : > { %v9682_v29 = vpop.f32.mrb[12].mxu0  ;;  %v9758_v39 = vpop.f32.mrb[16].mxu1 }
 0x162   : > { %v9683_v7 = vpop.f32.mrb[13].mxu0  ;;  %v9759_v43 = vpop.f32.mrb[17].mxu1 }
 0x163   : > { %v9684_v48 = vadd.f32 %v9683_v7, %v9682_v29  ;;  %v12938_v57 = vadd.f32 %v9759_v43, %v9758_v39  ;;  %v9685_v22 = vpop.f32.mrb[14].mxu0  ;;  %v9761_v51 = vpop.f32.mrb[18].mxu1  ;;  %3154 = vmatpush1.bf16.msra.mxu0 %v10969_v26  ;;  %4705 = vmatpush1.bf16.msra.mxu1 %v10972_v61  ;;  %v10999_v61 = vld [vmem:[%s15020_s2 + $0xdc] ss:$12 sps:$4 sm:$0xff]   ;;  %v4284_v39 = vshrl.u32 %v12693_v16, 16 }
 0x164   : > { %v9686_v60 = vpop.f32.mrb[15].mxu0  ;;  %v9762_v58 = vpop.f32.mrb[19].mxu1  ;;  %3155 = vmatprep.subr.bf16.mxu0 %v10977_v59  ;;  %4706 = vmatprep.subr.bf16.mxu1 %v10980_v20  ;;  %v11002_v59 = vld [vmem:[%s15021_s3 + $0x3dc] ss:$12 sps:$4 sm:$0xff]   ;;  %v11008_v7 = vld [vmem:[%s15021_s3 + $0x3f4] ss:$12 sps:$4 sm:$0xff]  }
 0x165   : > { %v12945_v35 = vadd.f32 %v9684_v48, %v12569_v25  ;;  %v9687_v54 = vadd.f32 %v9686_v60, %v9685_v22  ;;  %v12947_v34 = vadd.f32 %v9762_v58, %v9761_v51  ;;  %v10989_v25 = vld [vmem:[%s15020_s2 + $0xc4] ss:$12 sps:$4 sm:$0xff]   ;;  %v11011_v48 = vld [vmem:[%s15020_s2 + $0x10c] ss:$12 sps:$4 sm:$0xff]   ;;  %v4027_v51 = vld [vmem:[%s12651_s19 + $0x8] sm:$0xf] }
 0x166   : > { %v11003_v43 = vld [vmem:[%s15020_s2 + $0xf0] ss:$12 sps:$4 sm:$0xff]   ;;  %v11014_v22 = vld [vmem:[%s15021_s3 + $0x40c] ss:$12 sps:$4 sm:$0xff]   ;;  %v11012_v60 = vld [vmem:[%s15021_s3 + $0x408] ss:$12 sps:$4 sm:$0xff]  }
 0x167   : > { %v12956_v15 = vadd.f32 %v9687_v54, %v12580_v45  ;;  %3156 = vmatpush1.bf16.msra.mxu0 %v10975_v38  ;;  %4707 = vmatpush1.bf16.msra.mxu1 %v10978_v63  ;;  %v10987_v45 = vld [vmem:[%s15020_s2 + $0xc0] ss:$12 sps:$4 sm:$0xff]   ;;  %v10997_v38 = vld [vmem:[%s15020_s2 + $0xd8] ss:$12 sps:$4 sm:$0xff]  }
 0x168   : > { %3157 = vmatprep.subr.bf16.mxu0 %v10983_v46  ;;  %4708 = vmatprep.subr.bf16.mxu1 %v10986_v6  ;;  %v11000_v63 = vld [vmem:[%s15021_s3 + $0x3d8] ss:$12 sps:$4 sm:$0xff]   ;;  %v11006_v46 = vld [vmem:[%s15021_s3 + $0x3f0] ss:$12 sps:$4 sm:$0xff]   ;;  %v11015_v54 = vld [vmem:[%s15020_s2 + $0x120] ss:$12 sps:$4 sm:$0xff]  }
 0x169   : > { %v9688_v13 = vpop.f32.mrb[16].mxu0  ;;  %v9764_v28 = vpop.f32.mrb[20].mxu1  ;;  %v11017_v58 = vld [vmem:[%s15020_s2 + $0x124] ss:$12 sps:$4 sm:$0xff]  }
 0x16a   : > { %v9689_v50 = vpop.f32.mrb[17].mxu0  ;;  %v9765_v37 = vpop.f32.mrb[21].mxu1  ;;  %v11020_v6 = vld [vmem:[%s15021_s3 + $0x424] ss:$12 sps:$4 sm:$0xff]  }
 0x16b   : > { %v9690_v17 = vadd.f32 %v9689_v50, %v9688_v13  ;;  %3158 = vmatpush1.bf16.msra.mxu0 %v10981_v8  ;;  %4709 = vmatpush1.bf16.msra.mxu1 %v10984_v10  ;;  %v12973_v23 = vadd.f32 %v9765_v37, %v9764_v28  ;;  %v9767_v2 = vpop.f32.mrb[22].mxu1  ;;  %v9691_v26 = vpop.f32.mrb[18].mxu0  ;;  %v13033_v8 = vcombine.low %v4027_v51, %v4029_v52  ;;  %v11018_v10 = vld [vmem:[%s15021_s3 + $0x420] ss:$12 sps:$4 sm:$0xff]   ;;  %v11024_v28 = vld [vmem:[%s15021_s3 + $0x438] ss:$12 sps:$4 sm:$0xff]  }
 0x16c   : > { %3159 = vmatprep.subr.bf16.mxu0 %v10989_v25  ;;  %4729 = vmatprep.subr.bf16.mxu1 %v10994_v5  ;;  %v9768_v27 = vpop.f32.mrb[23].mxu1  ;;  %v9692_v20 = vpop.f32.mrb[19].mxu0  ;;  %v11023_v25 = vld [vmem:[%s15020_s2 + $0x13c] ss:$12 sps:$4 sm:$0xff]   ;;  %v11021_v5 = vld [vmem:[%s15020_s2 + $0x138] ss:$12 sps:$4 sm:$0xff]  }
 0x16d   : > { %v12982_v29 = vadd.f32 %v12567_v24, %v9690_v17  ;;  %v11005_v24 = vld [vmem:[%s15020_s2 + $0xf4] ss:$12 sps:$4 sm:$0xff]   ;;  %v4273_v13 = vshll.u32 %v13033_v8, 16  ;;  %v11027_v17 = vld [vmem:[%s15020_s2 + $0x150] ss:$12 sps:$4 sm:$0xff]   ;;  %v4271_v2 = vshrl.u32 %v13033_v8, 16 }
 0x16e   : > { %4711 = vmatmul.mubr.bf16.vlgmr.msra.gmra.mrb[52].mxu1 %v12971_v18  ;;  %v11029_v50 = vld [vmem:[%s15020_s2 + $0x154] ss:$12 sps:$4 sm:$0xff]  }
 0x16f   : > { %3160 = vmatpush1.bf16.msra.mxu0 %v10987_v45  ;;  %4730 = vmatpush1.bf16.msra.mxu1 %v10992_v9  ;;  %v11032_v45 = vld [vmem:[%s15021_s3 + $0x454] ss:$12 sps:$4 sm:$0xff]   ;;  %v11030_v9 = vld [vmem:[%s15021_s3 + $0x450] ss:$12 sps:$4 sm:$0xff]   ;;  %v4275_v26 = vrot.slane %v4273_v13, 1 }
 0x170   : > { %3161 = vmatprep.subr.bf16.mxu0 %v10999_v61  ;;  %4731 = vmatprep.subr.bf16.mxu1 %v11002_v59  ;;  %v4278_v61 = vshll.u32 %v13045_v12, 16  ;;  %v11039_v51 = vld [vmem:[%s15020_s2 + $0x180] ss:$12 sps:$4 sm:$0xff]   ;;  %v11059_v13 = vld [vmem:[%s15021_s3 + $0x350] ss:$12 sps:$4 sm:$0xff]  }
 0x171   : > { %4720 = vmatprep.mubr.bf16.mxu1 %v4284_v39 }
 0x173   : > { %3162 = vmatpush1.bf16.msra.mxu0 %v10997_v38  ;;  %4732 = vmatpush1.bf16.msra.mxu1 %v11000_v63 }
 0x174   : > { %3163 = vmatprep.subr.bf16.mxu0 %v11005_v24  ;;  %4733 = vmatprep.subr.bf16.mxu1 %v11008_v7  ;;  %v11035_v24 = vld [vmem:[%s15020_s2 + $0x16c] ss:$12 sps:$4 sm:$0xff]  }
 0x175   : > { %v11038_v7 = vld [vmem:[%s15021_s3 + $0x46c] ss:$12 sps:$4 sm:$0xff]  }
 0x176   : > { %4721 = vmatmul.mubr.bf16.gmra.mrb[56].mxu1 %v4282_v11 }
 0x177   : > { %3164 = vmatpush1.bf16.msra.mxu0 %v11003_v43  ;;  %4734 = vmatpush1.bf16.msra.mxu1 %v11006_v46  ;;  %v11036_v43 = vld [vmem:[%s15021_s3 + $0x468] ss:$12 sps:$4 sm:$0xff]   ;;  %v4280_v46 = vrot.slane %v4278_v61, 1 }
 0x178   : > { %3165 = vmatprep.subr.bf16.mxu0 %v11011_v48  ;;  %4735 = vmatprep.subr.bf16.mxu1 %v11014_v22  ;;  %v4276_v48 = vor.u32 %v4275_v26, %v4271_v2  ;;  %v11041_v22 = vld [vmem:[%s15020_s2 + $0x184] ss:$12 sps:$4 sm:$0xff]   ;;  %v11069_v2 = vld [vmem:[%s15021_s3 + $0x380] ss:$12 sps:$4 sm:$0xff]  }
 0x179   : > { %4761 = vmatprep.mubr.bf16.mxu1 %v11633_v33  ;;  %v11070_v26 = vld [vmem:[%s15021_s3 + $0x2c0] ss:$12 sps:$4 sm:$0xff]  }
 0x17a   : > { %v13099_v52 = vsel %vm553_vm0, %v4276_v48, %v4280_v46  ;;  %v11073_v61 = vld [vmem:[%s15020_s2 + $0x214] ss:$12 sps:$4 sm:$0xff]   ;;  %v11078_v48 = vld [vmem:[%s15020_s2 + $0x22c] ss:$12 sps:$4 sm:$0xff]  }
 0x17b   : > { %3166 = vmatpush1.bf16.msra.mxu0 %v11009_v56  ;;  %4736 = vmatpush1.bf16.msra.mxu1 %v11012_v60  ;;  %v11045_v56 = vld [vmem:[%s15021_s3 + $0x248] ss:$12 sps:$4 sm:$0xff]  }
 0x17c   : > { %3167 = vmatprep.subr.bf16.mxu0 %v11017_v58  ;;  %4737 = vmatprep.subr.bf16.mxu1 %v11020_v6  ;;  %v11048_v60 = vld [vmem:[%s15020_s2 + $0x19c] ss:$12 sps:$4 sm:$0xff]   ;;  %v11049_v58 = vld [vmem:[%s15021_s3 + $0x320] ss:$12 sps:$4 sm:$0xff]   ;;  %v11046_v6 = vld [vmem:[%s15020_s2 + $0x198] ss:$12 sps:$4 sm:$0xff]  }
 0x17f   : > { %3168 = vmatpush1.bf16.msra.mxu0 %v11015_v54  ;;  %4738 = vmatpush1.bf16.msra.mxu1 %v11018_v10  ;;  %v11050_v54 = vld [vmem:[%s15021_s3 + $0x260] ss:$12 sps:$4 sm:$0xff]  }
 0x180   : > { %3169 = vmatprep.subr.bf16.mxu0 %v11023_v25  ;;  %4739 = vmatprep.subr.bf16.mxu1 %v11026_v19  ;;  %v11053_v10 = vld [vmem:[%s15020_s2 + $0x1b4] ss:$12 sps:$4 sm:$0xff]   ;;  %v11054_v25 = vld [vmem:[%s15021_s3 + $0x338] ss:$12 sps:$4 sm:$0xff]  }
 0x181   : > { %v10209_v37 = vpop.f32.mrb[24].mxu1  ;;  %v11055_v19 = vld [vmem:[%s15021_s3 + $0x278] ss:$12 sps:$4 sm:$0xff]  }
 0x182   : > { %v13069_v59 = vadd.f32 %v10209_v37, %v12973_v23  ;;  %v2739_v27 = vpop.f32.mrb[25].mxu1  ;;  %v11064_v37 = vld [vmem:[%s15021_s3 + $0x368] ss:$12 sps:$4 sm:$0xff]  }
 0x183   : > { %v13072_v20 = vadd.f32 %v12938_v57, %v2739_v27  ;;  %v10210_v38 = vpop.f32.mrb[26].mxu1  ;;  %3170 = vmatpush1.bf16.msra.mxu0 %v11021_v5  ;;  %4740 = vmatpush1.bf16.msra.mxu1 %v11024_v28  ;;  %v11033_v57 = vld [vmem:[%s15020_s2 + $0x168] ss:$12 sps:$4 sm:$0xff]   ;;  %v4286_v5 = vshrl.u32 %v13045_v12, 16  ;;  %v11074_v27 = vld [vmem:[%s15021_s3 + $0x398] ss:$12 sps:$4 sm:$0xff]  }
 0x184   : > { %v2742_v63 = vpop.f32.mrb[27].mxu1  ;;  %3171 = vmatprep.subr.bf16.mxu0 %v11029_v50  ;;  %4741 = vmatprep.subr.bf16.mxu1 %v11032_v45  ;;  %v11056_v28 = vld [vmem:[%s15020_s2 + $0x1c8] ss:$12 sps:$4 sm:$0xff]   ;;  %v11060_v50 = vld [vmem:[%s15021_s3 + $0x290] ss:$12 sps:$4 sm:$0xff]  }
 0x185   : > { %v13081_v23 = vadd.f32 %v12947_v34, %v2742_v63  ;;  %v11044_v34 = vld [vmem:[%s15021_s3 + $0x308] ss:$12 sps:$4 sm:$0xff]   ;;  %v11063_v45 = vld [vmem:[%s15020_s2 + $0x1e4] ss:$12 sps:$4 sm:$0xff]  }
 0x186   : > { %v11130_v12 = vld [vmem:[%s15021_s3 + $0x6f4] ss:$12 sps:$4 sm:$0xff]  }
 0x187   : > { %3172 = vmatpush1.bf16.msra.mxu0 %v11027_v17  ;;  %4742 = vmatpush1.bf16.msra.mxu1 %v11030_v9  ;;  %v11061_v17 = vld [vmem:[%s15020_s2 + $0x1e0] ss:$12 sps:$4 sm:$0xff]   ;;  %v11068_v9 = vld [vmem:[%s15020_s2 + $0x1fc] ss:$12 sps:$4 sm:$0xff]  }
 0x188   : > { %3173 = vmatprep.subr.bf16.mxu0 %v11035_v24  ;;  %4743 = vmatprep.subr.bf16.mxu1 %v11038_v7 }
 0x18b   : > { %3174 = vmatpush1.bf16.msra.mxu0 %v11033_v57  ;;  %4744 = vmatpush1.bf16.msra.mxu1 %v11036_v43  ;;  %v11071_v57 = vld [vmem:[%s15020_s2 + $0x210] ss:$12 sps:$4 sm:$0xff]   ;;  %v11075_v43 = vld [vmem:[%s15021_s3 + $0x2d8] ss:$12 sps:$4 sm:$0xff]  }
 0x18c   : > { %3194 = vmatprep.subr.bf16.mxu0 %v11041_v22  ;;  %9856 = vmatprep.subr.bf16.mxu1 %v11044_v34  ;;  %v11079_v22 = vld [vmem:[%s15021_s3 + $0x3b0] ss:$12 sps:$4 sm:$0xff]  }
 0x18e   : > { %3176 = vmatmul.mubr.bf16.vlgmr.msra.gmra.mrb[0].mxu0 %v11954_v36  ;;  %4762 = vmatmul.mubr.bf16.vlgmr.msra.gmra.mrb[52].mxu1 %v13099_v52  ;;  %v11051_v36 = vld [vmem:[%s15020_s2 + $0x1b0] ss:$12 sps:$4 sm:$0xff]  }
 0x18f   : > { %3195 = vmatpush1.bf16.msra.mxu0 %v11039_v51  ;;  %9857 = vmatpush3.bf16.msra.mxu1 %v11045_v56  ;;  %v11076_v56 = vld [vmem:[%s15020_s2 + $0x228] ss:$12 sps:$4 sm:$0xff]  }
 0x190   : > { %3196 = vmatprep.subr.bf16.mxu0 %v11048_v60  ;;  %9858 = vmatprep.subr.bf16.mxu1 %v11049_v58  ;;  %v11080_v60 = vld [vmem:[%s15021_s3 + $0x2f0] ss:$12 sps:$4 sm:$0xff]  }
 0x191   : > { %3185 = vmatprep.mubr.bf16.mxu0 %v11917_v3  ;;  %4771 = vmatprep.mubr.bf16.mxu1 %v11633_v33  ;;  %v11058_v3 = vld [vmem:[%s15020_s2 + $0x1cc] ss:$12 sps:$4 sm:$0xff]  }
 0x193   : > { %3197 = vmatpush1.bf16.msra.mxu0 %v11046_v6  ;;  %9859 = vmatpush3.bf16.msra.mxu1 %v11050_v54  ;;  %v11084_v6 = vld [vmem:[%s15021_s3 + $0x3c8] ss:$12 sps:$4 sm:$0xff]  }
 0x194   : > { %3198 = vmatprep.subr.bf16.mxu0 %v11053_v10  ;;  %9860 = vmatprep.subr.bf16.mxu1 %v11054_v25 }
 0x196   : > { %3186 = vmatmul.mubr.bf16.gmra.mrb[36].mxu0 %v11958_v41  ;;  %4772 = vmatmul.mubr.bf16.gmra.mrb[60].mxu1 %v4286_v5  ;;  %v11065_v41 = vld [vmem:[%s15021_s3 + $0x2a8] ss:$12 sps:$4 sm:$0xff]  }
 0x197   : > { %3199 = vmatpush1.bf16.msra.mxu0 %v11051_v36  ;;  %9861 = vmatpush3.bf16.msra.mxu1 %v11055_v19  ;;  %v11081_v36 = vld [vmem:[%s15020_s2 + $0x480] ss:$12 sps:$4 sm:$0xff]  }
 0x198   : > { %3200 = vmatprep.subr.bf16.mxu0 %v11058_v3  ;;  %9862 = vmatprep.subr.bf16.mxu1 %v11059_v13 }
 0x199   : > { %3226 = vmatprep.mubr.bf16.mxu0 %v11633_v33  ;;  %4812 = vmatprep.mubr.bf16.mxu1 %v12745_v1  ;;  %v11066_v1 = vld [vmem:[%s15020_s2 + $0x1f8] ss:$12 sps:$4 sm:$0xff]  }
 0x19b   : > { %3201 = vmatpush1.bf16.msra.mxu0 %v11056_v28  ;;  %9863 = vmatpush3.bf16.msra.mxu1 %v11060_v50  ;;  %v11087_v28 = vld [vmem:[%s15020_s2 + $0x49c] ss:$12 sps:$4 sm:$0xff]   ;;  %v11088_v50 = vld [vmem:[%s15021_s3 + $0x3e0] ss:$12 sps:$4 sm:$0xff]  }
 0x19c   : > { %3202 = vmatprep.subr.bf16.mxu0 %v11063_v45  ;;  %9864 = vmatprep.subr.bf16.mxu1 %v11064_v37 }
 0x19f   : > { %3203 = vmatpush1.bf16.msra.mxu0 %v11061_v17  ;;  %9865 = vmatpush3.bf16.msra.mxu1 %v11065_v41  ;;  %v11085_v41 = vld [vmem:[%s15020_s2 + $0x498] ss:$12 sps:$4 sm:$0xff]  }
 0x1a0   : > { %3204 = vmatprep.subr.bf16.mxu0 %v11068_v9  ;;  %9866 = vmatprep.subr.bf16.mxu1 %v11069_v2  ;;  %v11091_v9 = vld [vmem:[%s15020_s2 + $0x4b4] ss:$12 sps:$4 sm:$0xff]   ;;  %v11096_v2 = vld [vmem:[%s15021_s3 + $0x410] ss:$12 sps:$4 sm:$0xff]  }
 0x1a1   : > { %v9796_v38 = vpop.f32.mrb[28].mxu1 }
 0x1a2   : > { %v9797_v63 = vpop.f32.mrb[29].mxu1 }
 0x1a3   : > { %v9798_v24 = vadd.f32 %v9797_v63, %v9796_v38  ;;  %3205 = vmatpush1.bf16.msra.mxu0 %v11066_v1  ;;  %v9799_v7 = vpop.f32.mrb[30].mxu1  ;;  %9867 = vmatpush3.bf16.msra.mxu1 %v11070_v26  ;;  %v11093_v1 = vld [vmem:[%s15020_s2 + $0x4c8] ss:$12 sps:$4 sm:$0xff]   ;;  %v11560_v26 = vld [vmem:[%s11784_s26 + $0x20] ss:$0 sps:$4 sm:$0x11]  }
 0x1a4   : > { %v9800_v46 = vpop.f32.mrb[31].mxu1  ;;  %3206 = vmatprep.subr.bf16.mxu0 %v11073_v61  ;;  %9868 = vmatprep.subr.bf16.mxu1 %v11074_v27  ;;  %v11100_v61 = vld [vmem:[%s15021_s3 + $0x428] ss:$12 sps:$4 sm:$0xff]   ;;  %v13260_v27 = vld [vmem:[%s12651_s19] sm:$0xee] }
 0x1a5   : > { %v9801_v34 = vadd.f32 %v9800_v46, %v9799_v7  ;;  %v13193_v51 = vadd.f32 %v9798_v24, %v12945_v35  ;;  %v11083_v35 = vld [vmem:[%s15020_s2 + $0x484] ss:$12 sps:$4 sm:$0xff]   ;;  %v13263_v38 = vld [vmem:[%s12651_s19 + $0x18] sm:$0x33]  ;;  %v11104_v24 = vld [vmem:[%s15021_s3 + $0x440] ss:$12 sps:$4 sm:$0xff]  }
 0x1a6   : > { %v11103_v63 = vld [vmem:[%s15020_s2 + $0x4fc] ss:$12 sps:$4 sm:$0xff]   ;;  %v13277_v7 = vld [vmem:[%s12651_s19 + $0xc] sm:$0xff]  ;;  %v11108_v46 = vld [vmem:[%s15021_s3 + $0x458] ss:$12 sps:$4 sm:$0xff]  }
 0x1a7   : > { %3207 = vmatpush1.bf16.msra.mxu0 %v11071_v57  ;;  %9869 = vmatpush3.bf16.msra.mxu1 %v11075_v43  ;;  %v13202_v58 = vadd.f32 %v9801_v34, %v12956_v15  ;;  %v11101_v57 = vld [vmem:[%s15020_s2 + $0x4f8] ss:$12 sps:$4 sm:$0xff]   ;;  %v11107_v43 = vld [vmem:[%s15020_s2 + $0x514] ss:$12 sps:$4 sm:$0xff]  }
 0x1a8   : > { %3208 = vmatprep.subr.bf16.mxu0 %v11078_v48  ;;  %9870 = vmatprep.subr.bf16.mxu1 %v11079_v22 }
 0x1a9   : > { %v9802_v54 = vpop.f32.mrb[32].mxu1  ;;  %v13210_v10 = vpop.f32.mrb[20].mxu0 }
 0x1aa   : > { %v9803_v25 = vpop.f32.mrb[33].mxu1  ;;  %v13215_v15 = vpop.f32.mrb[21].mxu0 }
 0x1ab   : > { %v9804_v19 = vadd.f32 %v9803_v25, %v9802_v54  ;;  %3209 = vmatpush1.bf16.msra.mxu0 %v11076_v56  ;;  %9871 = vmatpush3.bf16.msra.mxu1 %v11080_v60  ;;  %v9805_v3 = vpop.f32.mrb[34].mxu1  ;;  %v1888_v13 = vpop.f32.mrb[22].mxu0  ;;  %v11111_v25 = vld [vmem:[%s15020_s2 + $0x52c] ss:$12 sps:$4 sm:$0xff]  }
 0x1ac   : > { %3741 = vmatprep.subr.bf16.mxu0 %v11083_v35  ;;  %10251 = vmatprep.subr.bf16.mxu1 %v11084_v6  ;;  %v9806_v45 = vpop.f32.mrb[35].mxu1  ;;  %v1889_v37 = vpop.f32.mrb[23].mxu0  ;;  %v11105_v35 = vld [vmem:[%s15020_s2 + $0x510] ss:$12 sps:$4 sm:$0xff]  }
 0x1ad   : > { %v3288_v17 = vadd.f32 %v9804_v19, %v12982_v29  ;;  %v11092_v29 = vld [vmem:[%s15021_s3 + $0x3f8] ss:$12 sps:$4 sm:$0xff]   ;;  %v11112_v3 = vld [vmem:[%s15021_s3 + $0x470] ss:$12 sps:$4 sm:$0xff]  }
 0x1ae   : > { %3227 = vmatmul.mubr.bf16.vlgmr.msra.gmra.mrb[0].mxu0 %v11803_v21  ;;  %4813 = vmatmul.mubr.bf16.vlgmr.msra.gmra.mrb[64].mxu1 %v12971_v18  ;;  %v11089_v21 = vld [vmem:[%s15020_s2 + $0x4b0] ss:$12 sps:$4 sm:$0xff]   ;;  %v11095_v18 = vld [vmem:[%s15020_s2 + $0x4cc] ss:$12 sps:$4 sm:$0xff]  }
 0x1af   : > { %3742 = vmatpush1.bf16.msra.mxu0 %v11081_v36  ;;  %10252 = vmatpush3.bf16.msra.mxu1 %v11084_v6 }
 0x1b0   : > { %3743 = vmatprep.subr.bf16.mxu0 %v11087_v28  ;;  %10253 = vmatprep.subr.bf16.mxu1 %v11088_v50 }
 0x1b1   : > { %3236 = vmatprep.mubr.bf16.mxu0 %v11633_v33  ;;  %4820 = vmatprep.mubr.bf16.mxu1 %v4284_v39  ;;  %v11099_v39 = vld [vmem:[%s15020_s2 + $0x4e4] ss:$12 sps:$4 sm:$0xff]  }
 0x1b3   : > { %3744 = vmatpush1.bf16.msra.mxu0 %v11085_v41  ;;  %10254 = vmatpush3.bf16.msra.mxu1 %v11088_v50  ;;  %v11115_v41 = vld [vmem:[%s15020_s2 + $0x544] ss:$12 sps:$4 sm:$0xff]  }
 0x1b4   : > { %3745 = vmatprep.subr.bf16.mxu0 %v11091_v9  ;;  %10255 = vmatprep.subr.bf16.mxu1 %v11092_v29  ;;  %v11118_v9 = vld [vmem:[%s15021_s3 + $0x6c4] ss:$12 sps:$4 sm:$0xff]  }
 0x1b6   : > { %3237 = vmatmul.mubr.bf16.gmra.mrb[40].mxu0 %v11560_v26  ;;  %4821 = vmatmul.mubr.bf16.gmra.mrb[68].mxu1 %v4282_v11  ;;  %v11097_v11 = vld [vmem:[%s15020_s2 + $0x4e0] ss:$12 sps:$4 sm:$0xff]  }
 0x1b7   : > { %3746 = vmatpush1.bf16.msra.mxu0 %v11089_v21  ;;  %10256 = vmatpush3.bf16.msra.mxu1 %v11092_v29  ;;  %v11116_v26 = vld [vmem:[%s15021_s3 + $0x6c0] ss:$12 sps:$4 sm:$0xff]  }
 0x1b8   : > { %3747 = vmatprep.subr.bf16.mxu0 %v11095_v18  ;;  %10257 = vmatprep.subr.bf16.mxu1 %v11096_v2 }
 0x1b9   : > { %10267 = vmatprep.mubr.bf16.mxu1 %v13099_v52  ;;  %3773 = vmatprep.mubr.bf16.mxu0 %v12507_v0  ;;  %v13281_v0 = vcombine.high %v13260_v27, %v13277_v7  ;;  %v13285_v52 = vcombine.high %v13263_v38, %v13263_v38 }
 0x1bb   : > { %3748 = vmatpush1.bf16.msra.mxu0 %v11093_v1  ;;  %10258 = vmatpush3.bf16.msra.mxu1 %v11096_v2  ;;  %v5108_v48 = vshrl.u32 %v13281_v0, 16  ;;  %v5111_v22 = vshll.u32 %v13281_v0, 16  ;;  %v5116_v34 = vshrl.u32 %v13285_v52, 16  ;;  %v5119_v56 = vshll.u32 %v13285_v52, 16 }
 0x1bc   : > { %3749 = vmatprep.subr.bf16.mxu0 %v11099_v39  ;;  %10259 = vmatprep.subr.bf16.mxu1 %v11100_v61  ;;  %v11121_v39 = vld [vmem:[%s15020_s2 + $0x55c] ss:$12 sps:$4 sm:$0xff]  }
 0x1bd   : > { %v5110_v28 = vrot.slane %v5108_v48, 1  ;;  %v5113_v50 = vrot.slane %v5111_v22, 2  ;;  %v13314_v45 = vrot.slane %v5116_v34, 1  ;;  %v11133_v48 = vld [vmem:[%s15020_s2 + $0x58c] ss:$12 sps:$4 sm:$0xff]  }
 0x1be   : > { %v11136_v22 = vld [vmem:[%s15021_s3 + $0x70c] ss:$12 sps:$4 sm:$0xff]   ;;  %v11131_v34 = vld [vmem:[%s15020_s2 + $0x588] ss:$12 sps:$4 sm:$0xff]  }
 0x1bf   : > { %3750 = vmatpush1.bf16.msra.mxu0 %v11097_v11  ;;  %10260 = vmatpush3.bf16.msra.mxu1 %v11100_v61  ;;  %v5114_v2 = vor.u32 %v5113_v50, %v5110_v28  ;;  %v11146_v28 = vld [vmem:[%s15021_s3 + $0x738] ss:$12 sps:$4 sm:$0xff]   ;;  %v11151_v50 = vld [vmem:[%s15020_s2 + $0x5d4] ss:$12 sps:$4 sm:$0xff]  }
 0x1c0   : > { %3751 = vmatprep.subr.bf16.mxu0 %v11103_v63  ;;  %10261 = vmatprep.subr.bf16.mxu1 %v11104_v24 }
 0x1c1   : > { %v10229_v60 = vpop.f32.mrb[36].mxu1 }
 0x1c2   : > { %v13303_v6 = vadd.f32 %v10229_v60, %v3288_v17  ;;  %v3327_v54 = vpop.f32.mrb[37].mxu1  ;;  %v5121_v17 = vrot.slane %v5119_v56, 2  ;;  %v11134_v56 = vld [vmem:[%s15021_s3 + $0x708] ss:$12 sps:$4 sm:$0xff]   ;;  %v11139_v60 = vld [vmem:[%s15020_s2 + $0x5a4] ss:$12 sps:$4 sm:$0xff]  }
 0x1c3   : > { %v13309_v36 = vadd.f32 %v3327_v54, %v13193_v51  ;;  %v10230_v19 = vpop.f32.mrb[38].mxu1  ;;  %3752 = vmatpush1.bf16.msra.mxu0 %v11101_v57  ;;  %10262 = vmatpush3.bf16.msra.mxu1 %v11104_v24  ;;  %v11109_v51 = vld [vmem:[%s15020_s2 + $0x528] ss:$12 sps:$4 sm:$0xff]   ;;  %v11119_v24 = vld [vmem:[%s15020_s2 + $0x558] ss:$12 sps:$4 sm:$0xff]  }
 0x1c4   : > { %v3330_v13 = vpop.f32.mrb[39].mxu1  ;;  %3753 = vmatprep.subr.bf16.mxu0 %v11107_v43  ;;  %10263 = vmatprep.subr.bf16.mxu1 %v11108_v46  ;;  %v5122_v1 = vor.u32 %v5121_v17, %v13314_v45  ;;  %v11127_v43 = vld [vmem:[%s15020_s2 + $0x574] ss:$12 sps:$4 sm:$0xff]   ;;  %v11145_v19 = vld [vmem:[%s15020_s2 + $0x5bc] ss:$12 sps:$4 sm:$0xff]  }
 0x1c5   : > { %v13317_v37 = vadd.f32 %v3330_v13, %v13202_v58  ;;  %v11113_v58 = vld [vmem:[%s15020_s2 + $0x540] ss:$12 sps:$4 sm:$0xff]   ;;  %v11143_v13 = vld [vmem:[%s15020_s2 + $0x5b8] ss:$12 sps:$4 sm:$0xff]  }
 0x1c6   : > { %v13353_v57 = vsel %vm1398_vm1, %v5114_v2, %v5122_v1  ;;  %v11137_v54 = vld [vmem:[%s15020_s2 + $0x5a0] ss:$12 sps:$4 sm:$0xff]  }
 0x1c7   : > { %3754 = vmatpush1.bf16.msra.mxu0 %v11105_v35  ;;  %10264 = vmatpush3.bf16.msra.mxu1 %v11108_v46  ;;  %v11128_v46 = vld [vmem:[%s15021_s3 + $0x6f0] ss:$12 sps:$4 sm:$0xff]   ;;  %v11154_v17 = vld [vmem:[%s15021_s3 + $0x754] ss:$12 sps:$4 sm:$0xff]   ;;  %v11157_v2 = vld [vmem:[%s15020_s2 + $0x5ec] ss:$12 sps:$4 sm:$0xff]  }
 0x1c8   : > { %3755 = vmatprep.subr.bf16.mxu0 %v11111_v25  ;;  %10265 = vmatprep.subr.bf16.mxu1 %v11112_v3  ;;  %v11142_v35 = vld [vmem:[%s15021_s3 + $0x724] ss:$12 sps:$4 sm:$0xff]   ;;  %v11140_v25 = vld [vmem:[%s15021_s3 + $0x720] ss:$12 sps:$4 sm:$0xff]  }
 0x1c9   : > { %v1935_v29 = vpop.f32.mrb[24].mxu0 }
 0x1ca   : > { %v13332_v21 = vadd.f32 %v1935_v29, %v13210_v10  ;;  %v1937_v18 = vpop.f32.mrb[25].mxu0  ;;  %v11124_v10 = vld [vmem:[%s15021_s3 + $0x6dc] ss:$12 sps:$4 sm:$0xff]  }
 0x1cb   : > { %3756 = vmatpush1.bf16.msra.mxu0 %v11109_v51  ;;  %10266 = vmatpush3.bf16.msra.mxu1 %v11112_v3  ;;  %v13342_v61 = vadd.f32 %v1937_v18, %v13215_v15  ;;  %v1939_v11 = vpop.f32.mrb[26].mxu0  ;;  %v11122_v15 = vld [vmem:[%s15021_s3 + $0x6d8] ss:$12 sps:$4 sm:$0xff]   ;;  %v11148_v3 = vld [vmem:[%s15021_s3 + $0x73c] ss:$12 sps:$4 sm:$0xff]  }
 0x1cc   : > { %3757 = vmatprep.subr.bf16.mxu0 %v11115_v41  ;;  %5531 = vmatprep.subr.bf16.mxu1 %v11118_v9  ;;  %v1940_v63 = vpop.f32.mrb[27].mxu0  ;;  %v11149_v41 = vld [vmem:[%s15020_s2 + $0x5d0] ss:$12 sps:$4 sm:$0xff]   ;;  %v11155_v11 = vld [vmem:[%s15020_s2 + $0x5e8] ss:$12 sps:$4 sm:$0xff]  }
 0x1cd   : > { %v11152_v18 = vld [vmem:[%s15021_s3 + $0x750] ss:$12 sps:$4 sm:$0xff]  }
 0x1ce   : > { %10268 = vmatmul.mubr.bf16.vlgmr.msra.gmra.mrb[72].mxu1 %v4286_v5  ;;  %v11125_v5 = vld [vmem:[%s15020_s2 + $0x570] ss:$12 sps:$4 sm:$0xff]  }
 0x1cf   : > { %3758 = vmatpush1.bf16.msra.mxu0 %v11113_v58  ;;  %5532 = vmatpush1.bf16.msra.mxu1 %v11116_v26  ;;  %v11160_v26 = vld [vmem:[%s15021_s3 + $0x76c] ss:$12 sps:$4 sm:$0xff]  }
 0x1d0   : > { %3759 = vmatprep.subr.bf16.mxu0 %v11121_v39  ;;  %5533 = vmatprep.subr.bf16.mxu1 %v11124_v10  ;;  %v11158_v10 = vld [vmem:[%s15021_s3 + $0x768] ss:$12 sps:$4 sm:$0xff]  }
 0x1d1   : > { %5563 = vmatprep.mubr.bf16.mxu1 %v13353_v57 }
 0x1d3   : > { %3760 = vmatpush1.bf16.msra.mxu0 %v11119_v24  ;;  %5534 = vmatpush1.bf16.msra.mxu1 %v11122_v15  ;;  %v11163_v15 = vld [vmem:[%s15020_s2 + $0x604] ss:$12 sps:$4 sm:$0xff]  }
 0x1d4   : > { %3761 = vmatprep.subr.bf16.mxu0 %v11127_v43  ;;  %5535 = vmatprep.subr.bf16.mxu1 %v11130_v12  ;;  %v11166_v43 = vld [vmem:[%s15021_s3 + $0x784] ss:$12 sps:$4 sm:$0xff]  }
 0x1d7   : > { %3762 = vmatpush1.bf16.msra.mxu0 %v11125_v5  ;;  %5536 = vmatpush1.bf16.msra.mxu1 %v11128_v46 }
 0x1d8   : > { %3763 = vmatprep.subr.bf16.mxu0 %v11133_v48  ;;  %5537 = vmatprep.subr.bf16.mxu1 %v11136_v22  ;;  %v11169_v48 = vld [vmem:[%s15020_s2 + $0x61c] ss:$12 sps:$4 sm:$0xff]  }
 0x1db   : > { %3764 = vmatpush1.bf16.msra.mxu0 %v11131_v34  ;;  %5538 = vmatpush1.bf16.msra.mxu1 %v11134_v56  ;;  %v11172_v34 = vld [vmem:[%s15021_s3 + $0x79c] ss:$12 sps:$4 sm:$0xff]  }
 0x1dc   : > { %3765 = vmatprep.subr.bf16.mxu0 %v11139_v60  ;;  %5539 = vmatprep.subr.bf16.mxu1 %v11142_v35  ;;  %v11167_v60 = vld [vmem:[%s15020_s2 + $0x618] ss:$12 sps:$4 sm:$0xff]  }
 0x1df   : > { %3766 = vmatpush1.bf16.msra.mxu0 %v11137_v54  ;;  %5540 = vmatpush1.bf16.msra.mxu1 %v11140_v25  ;;  %v11170_v54 = vld [vmem:[%s15021_s3 + $0x798] ss:$12 sps:$4 sm:$0xff]   ;;  %v11175_v25 = vld [vmem:[%s15020_s2 + $0x634] ss:$12 sps:$4 sm:$0xff]  }
 0x1e0   : > { %3767 = vmatprep.subr.bf16.mxu0 %v11145_v19  ;;  %5541 = vmatprep.subr.bf16.mxu1 %v11148_v3  ;;  %v11178_v19 = vld [vmem:[%s15021_s3 + $0x7b4] ss:$12 sps:$4 sm:$0xff]   ;;  %v11181_v3 = vld [vmem:[%s15020_s2 + $0x64c] ss:$12 sps:$4 sm:$0xff]  }
 0x1e1   : > { %v9834_v51 = vpop.f32.mrb[40].mxu1 }
 0x1e2   : > { %v9835_v9 = vpop.f32.mrb[41].mxu1 }
 0x1e3   : > { %v9836_v58 = vadd.f32 %v9835_v9, %v9834_v51  ;;  %3768 = vmatpush1.bf16.msra.mxu0 %v11143_v13  ;;  %v9837_v29 = vpop.f32.mrb[42].mxu1  ;;  %5542 = vmatpush1.bf16.msra.mxu1 %v11146_v28  ;;  %v11179_v13 = vld [vmem:[%s15020_s2 + $0x648] ss:$12 sps:$4 sm:$0xff]   ;;  %v13497_v51 = vcombine.low %v13260_v27, %v13277_v7  ;;  %v11188_v9 = vld [vmem:[%s15021_s3 + $0x7e0] ss:$12 sps:$4 sm:$0xff]  }
 0x1e4   : > { %v9838_v1 = vpop.f32.mrb[43].mxu1  ;;  %3769 = vmatprep.subr.bf16.mxu0 %v11151_v50  ;;  %5543 = vmatprep.subr.bf16.mxu1 %v11154_v17  ;;  %v11182_v28 = vld [vmem:[%s15021_s3 + $0x7c8] ss:$12 sps:$4 sm:$0xff]   ;;  %v11187_v50 = vld [vmem:[%s15020_s2 + $0x664] ss:$12 sps:$4 sm:$0xff]  }
 0x1e5   : > { %v9839_v39 = vadd.f32 %v9838_v1, %v9837_v29  ;;  %v13432_v63 = vadd.f32 %v9836_v58, %v12814_v31  ;;  %v11161_v31 = vld [vmem:[%s15020_s2 + $0x600] ss:$12 sps:$4 sm:$0xff]   ;;  %v11190_v17 = vld [vmem:[%s15021_s3 + $0x7e4] ss:$12 sps:$4 sm:$0xff]   ;;  %v11193_v27 = vld [vmem:[%s15020_s2 + $0x67c] ss:$12 sps:$4 sm:$0xff]  }
 0x1e6   : > { %v5091_v7 = vshrl.u32 %v13497_v51, 16  ;;  %v5094_v58 = vshll.u32 %v13497_v51, 16 }
 0x1e7   : > { %3770 = vmatpush1.bf16.msra.mxu0 %v11149_v41  ;;  %5544 = vmatpush1.bf16.msra.mxu1 %v11152_v18  ;;  %v13435_v24 = vadd.f32 %v9839_v39, %v12823_v47  ;;  %v11164_v47 = vld [vmem:[%s15021_s3 + $0x780] ss:$12 sps:$4 sm:$0xff]   ;;  %v11191_v18 = vld [vmem:[%s15020_s2 + $0x678] ss:$12 sps:$4 sm:$0xff]  }
 0x1e8   : > { %3771 = vmatprep.subr.bf16.mxu0 %v11157_v2  ;;  %5545 = vmatprep.subr.bf16.mxu1 %v11160_v26  ;;  %v11185_v41 = vld [vmem:[%s15020_s2 + $0x660] ss:$12 sps:$4 sm:$0xff]   ;;  %v11194_v2 = vld [vmem:[%s15021_s3 + $0x7f8] ss:$12 sps:$4 sm:$0xff]  }
 0x1e9   : > { %v9840_v12 = vpop.f32.mrb[44].mxu1  ;;  %v11199_v26 = vld [vmem:[%s15020_s2 + $0x694] ss:$12 sps:$4 sm:$0xff]  }
 0x1ea   : > { %v9841_v5 = vpop.f32.mrb[45].mxu1  ;;  %v11202_v39 = vld [vmem:[%s15021_s3 + $0x814] ss:$12 sps:$4 sm:$0xff]  }
 0x1eb   : > { %v9842_v46 = vadd.f32 %v9841_v5, %v9840_v12  ;;  %3772 = vmatpush1.bf16.msra.mxu0 %v11155_v11  ;;  %5546 = vmatpush1.bf16.msra.mxu1 %v11158_v10  ;;  %v9843_v22 = vpop.f32.mrb[46].mxu1  ;;  %v5093_v11 = vrot.slane %v5091_v7, 1  ;;  %v5096_v10 = vrot.slane %v5094_v58, 2  ;;  %v11200_v12 = vld [vmem:[%s15021_s3 + $0x810] ss:$12 sps:$4 sm:$0xff]  }
 0x1ec   : > { %3792 = vmatprep.subr.bf16.mxu0 %v11163_v15  ;;  %5547 = vmatprep.subr.bf16.mxu1 %v11166_v43  ;;  %v9844_v56 = vpop.f32.mrb[47].mxu1  ;;  %v11197_v43 = vld [vmem:[%s15020_s2 + $0x690] ss:$12 sps:$4 sm:$0xff]  }
 0x1ed   : > { %v3886_v35 = vadd.f32 %v9842_v46, %v12811_v30  ;;  %v11176_v30 = vld [vmem:[%s15021_s3 + $0x7b0] ss:$12 sps:$4 sm:$0xff]  }
 0x1ee   : > { %3774 = vmatmul.mubr.bf16.vlgmr.msra.gmra.mrb[0].mxu0 %v12606_v42  ;;  %v11173_v42 = vld [vmem:[%s15020_s2 + $0x630] ss:$12 sps:$4 sm:$0xff]  }
 0x1ef   : > { %3793 = vmatpush1.bf16.msra.mxu0 %v11161_v31  ;;  %5548 = vmatpush1.bf16.msra.mxu1 %v11164_v47 }
 0x1f0   : > { %3794 = vmatprep.subr.bf16.mxu0 %v11169_v48  ;;  %5549 = vmatprep.subr.bf16.mxu1 %v11172_v34  ;;  %v332_v48 = vld [vmem:[%s15025_s7 + $0x40] sm:$0x1] }
 0x1f1   : > { %3783 = vmatprep.mubr.bf16.mxu0 %v12489_v55  ;;  %v11184_v55 = vld [vmem:[%s15021_s3 + $0x7cc] ss:$12 sps:$4 sm:$0xff]  }
 0x1f3   : > { %3795 = vmatpush1.bf16.msra.mxu0 %v11167_v60  ;;  %5550 = vmatpush1.bf16.msra.mxu1 %v11170_v54  ;;  %v326_v60 = vld [vmem:[%s15025_s7 + $0x10] sm:$0xff] }
 0x1f4   : > { %3796 = vmatprep.subr.bf16.mxu0 %v11175_v25  ;;  %5551 = vmatprep.subr.bf16.mxu1 %v11178_v19 }
 0x1f6   : > { %3784 = vmatmul.mubr.bf16.gmra.mrb[44].mxu0 %v12596_v32  ;;  %v13501_v32 = vcombine.low %v13263_v38, %v13263_v38  ;;  %v11196_v38 = vld [vmem:[%s15021_s3 + $0x7fc] ss:$12 sps:$4 sm:$0xff]  }
 0x1f7   : > { %3797 = vmatpush1.bf16.msra.mxu0 %v11173_v42  ;;  %5552 = vmatpush1.bf16.msra.mxu1 %v11176_v30  ;;  %v11206_v42 = vld [vmem:[%s15021_s3 + $0x828] ss:$12 sps:$4 sm:$0xff]  }
 0x1f8   : > { %3798 = vmatprep.subr.bf16.mxu0 %v11181_v3  ;;  %5553 = vmatprep.subr.bf16.mxu1 %v11184_v55  ;;  %v5099_v29 = vshrl.u32 %v13501_v32, 16  ;;  %v5102_v1 = vshll.u32 %v13501_v32, 16  ;;  %v5097_v3 = vor.u32 %v5096_v10, %v5093_v11  ;;  %v11222_v11 = vld [vmem:[%s15021_s3 + $0x6e0] ss:$12 sps:$4 sm:$0xff]  }
 0x1f9   : > { %3824 = vmatprep.mubr.bf16.mxu0 %v11633_v33  ;;  %v11225_v10 = vld [vmem:[%s15021_s3 + $0x874] ss:$12 sps:$4 sm:$0xff]  }
 0x1fa   : > { %v13538_v5 = vrot.slane %v5099_v29, 1  ;;  %v5104_v31 = vrot.slane %v5102_v1, 2 }
 0x1fb   : > { %3799 = vmatpush1.bf16.msra.mxu0 %v11179_v13  ;;  %5554 = vmatpush1.bf16.msra.mxu1 %v11182_v28  ;;  %v329_v28 = vld [vmem:[%s15025_s7 + $0x28] sm:$0xff] }
 0x1fc   : > { %3800 = vmatprep.subr.bf16.mxu0 %v11187_v50  ;;  %5555 = vmatprep.subr.bf16.mxu1 %v11190_v17  ;;  %v11211_v17 = vld [vmem:[%s15021_s3 + $0x840] ss:$12 sps:$4 sm:$0xff]  }
 0x1ff   : > { %3801 = vmatpush1.bf16.msra.mxu0 %v11185_v41  ;;  %5556 = vmatpush1.bf16.msra.mxu1 %v11188_v9 }
 0x200   : > { %3802 = vmatprep.subr.bf16.mxu0 %v11193_v27  ;;  %5557 = vmatprep.subr.bf16.mxu1 %v11196_v38 }
 0x201   : > { %v10249_v15 = vpop.f32.mrb[48].mxu1 }
 0x202   : > { %v3934_v46 = vadd.f32 %v10249_v15, %v3886_v35  ;;  %v3925_v47 = vpop.f32.mrb[49].mxu1  ;;  %v11205_v35 = vld [vmem:[%s15020_s2 + $0x6ac] ss:$12 sps:$4 sm:$0xff]  }
 0x203   : > { %v3926_v22 = vadd.f32 %v3925_v47, %v13432_v63  ;;  %3803 = vmatpush1.bf16.msra.mxu0 %v11191_v18  ;;  %v10250_v34 = vpop.f32.mrb[50].mxu1  ;;  %5558 = vmatpush1.bf16.msra.mxu1 %v11194_v2  ;;  %v11208_v63 = vld [vmem:[%s15021_s3 + $0x82c] ss:$12 sps:$4 sm:$0xff]   ;;  %v11220_v18 = vld [vmem:[%s15021_s3 + $0x85c] ss:$12 sps:$4 sm:$0xff]  }
 0x204   : > { %v3947_v56 = vadd.f32 %v3934_v46, %v13303_v6  ;;  %v3928_v54 = vpop.f32.mrb[51].mxu1  ;;  %3804 = vmatprep.subr.bf16.mxu0 %v11199_v26  ;;  %5559 = vmatprep.subr.bf16.mxu1 %v11202_v39  ;;  %v11203_v6 = vld [vmem:[%s15020_s2 + $0x6a8] ss:$12 sps:$4 sm:$0xff]   ;;  %v11221_v2 = vld [vmem:[%s15021_s3 + $0x7a0] ss:$12 sps:$4 sm:$0xff]  }
 0x205   : > { %v3941_v25 = vadd.f32 %v3926_v22, %v13309_v36  ;;  %v3929_v19 = vadd.f32 %v3928_v54, %v13435_v24  ;;  %v5105_v36 = vor.u32 %v5104_v31, %v13538_v5  ;;  %v11218_v39 = vld [vmem:[%s15021_s3 + $0x858] ss:$12 sps:$4 sm:$0xff]   ;;  %v11231_v31 = vld [vmem:[%s15021_s3 + $0x7d0] ss:$12 sps:$4 sm:$0xff]   ;;  %v11228_v46 = vld [vmem:[%s15021_s3 + $0x888] ss:$12 sps:$4 sm:$0xff]  }
 0x206   : > { %v3956_v30 = vadd.f32 %v3947_v56, %v13069_v59  ;;  %v11213_v59 = vld [vmem:[%s15021_s3 + $0x844] ss:$12 sps:$4 sm:$0xff]   ;;  %v4877_v22 = vld [vmem:[%s12651_s19 + $0x8] sm:$0xe]  ;;  %v13653_v54 = vld [vmem:[%s12651_s19 + $0x14] sm:$0xf] }
 0x207   : > { %v3950_v55 = vadd.f32 %v3941_v25, %v13072_v20  ;;  %v3944_v13 = vadd.f32 %v3929_v19, %v13317_v37  ;;  %3805 = vmatpush1.bf16.msra.mxu0 %v11197_v43  ;;  %5560 = vmatpush1.bf16.msra.mxu1 %v11200_v12  ;;  %v11214_v20 = vld [vmem:[%s15021_s3 + $0x788] ss:$12 sps:$4 sm:$0xff]   ;;  %v13585_v58 = vsel %vm1398_vm1, %v5097_v3, %v5105_v36  ;;  %v11226_v15 = vld [vmem:[%s15021_s3 + $0x7b8] ss:$12 sps:$4 sm:$0xff]   ;;  %v11232_v47 = vld [vmem:[%s15021_s3 + $0x710] ss:$12 sps:$4 sm:$0xff]  }
 0x208   : > { %v3965_v24 = vadd.f32 %v3956_v30, %v332_v48  ;;  %3806 = vmatprep.subr.bf16.mxu0 %v11205_v35  ;;  %5561 = vmatprep.subr.bf16.mxu1 %v11208_v63  ;;  %v11227_v43 = vld [vmem:[%s15021_s3 + $0x6f8] ss:$12 sps:$4 sm:$0xff]   ;;  %v11236_v34 = vld [vmem:[%s15021_s3 + $0x7e8] ss:$12 sps:$4 sm:$0xff]   ;;  %v13656_v35 = vcombine.low %v4877_v22, %v13653_v54  ;;  %v11241_v25 = vld [vmem:[%s15021_s3 + $0x800] ss:$12 sps:$4 sm:$0xff]  }
 0x209   : > { %v3959_v37 = vadd.f32 %v3950_v55, %v326_v60  ;;  %v3953_v50 = vadd.f32 %v3944_v13, %v13081_v23  ;;  %v13579_v41 = vpop.f32.mrb[28].mxu0  ;;  %v11217_v23 = vld [vmem:[%s15021_s3 + $0x6c8] ss:$12 sps:$4 sm:$0xff]   ;;  %v11230_v12 = vld [vmem:[%s15021_s3 + $0x88c] ss:$12 sps:$4 sm:$0xff]  }
 0x20a   : > { %v3985_v9 = vsel %vm3966_vm4, %v3965_v24, -inf  ;;  %v13582_v27 = vpop.f32.mrb[29].mxu0  ;;  %v11235_v48 = vld [vmem:[%s15021_s3 + $0x8a4] ss:$12 sps:$4 sm:$0xff]   ;;  %v11237_v56 = vld [vmem:[%s15021_s3 + $0x728] ss:$12 sps:$4 sm:$0xff]  }
 0x20b   : > { %v3986_v38 = vmax.f32 %v3959_v37, %v3985_v9  ;;  %v3962_v7 = vadd.f32 %v3953_v50, %v329_v28  ;;  %3807 = vmatpush1.bf16.msra.mxu0 %v11203_v6  ;;  %5562 = vmatpush1.bf16.msra.mxu1 %v11206_v42  ;;  %v2603_v29 = vpop.f32.mrb[30].mxu0  ;;  %v11240_v60 = vld [vmem:[%s15021_s3 + $0x8bc] ss:$12 sps:$4 sm:$0xff]   ;;  %v11254_v63 = vld [vmem:[%s12651_s19 + $0x20] ss:$0 sps:$4 sm:$0x33]  }
 0x20c   : > { %5582 = vmatprep.subr.bf16.mxu1 %v11213_v59  ;;  %9894 = vmatprep.subr.bf16.mxu0 %v11214_v20  ;;  %v2604_v1 = vpop.f32.mrb[31].mxu0  ;;  %v11242_v19 = vld [vmem:[%s15021_s3 + $0x740] ss:$12 sps:$4 sm:$0xff]   ;;  %v5125_v6 = vshrl.u32 %v13656_v35, 16  ;;  %v5128_v42 = vshll.u32 %v13656_v35, 16  ;;  %v5133_v30 = vshrl.u32 %v11254_v63, 16 }
 0x20d   : > { %v13596_v26 = vmax.f32 %v3986_v38, %v3962_v7  ;;  %v5136_v3 = vshll.u32 %v11254_v63, 16  ;;  %v11245_v55 = vld [vmem:[%s15021_s3 + $0x8d4] ss:$12 sps:$4 sm:$0xff]   ;;  %v11246_v13 = vld [vmem:[%s15021_s3 + $0x818] ss:$12 sps:$4 sm:$0xff]  }
 0x20e   : > { %3825 = vmatmul.mubr.bf16.vlgmr.msra.gmra.mrb[0].mxu0 %v12641_v14  ;;  %5564 = vmatmul.mubr.bf16.vlgmr.msra.gmra.mrb[52].mxu1 %v13585_v58  ;;  %v11223_v14 = vld [vmem:[%s15021_s3 + $0x870] ss:$12 sps:$4 sm:$0xff]   ;;  %v11247_v24 = vld [vmem:[%s15021_s3 + $0x758] ss:$12 sps:$4 sm:$0xff]   ;;  %v5127_v28 = vrot.slane %v5125_v6, 1  ;;  %v5130_v59 = vrot.slane %v5128_v42, 2 }
 0x20f   : > { %5583 = vmatpush1.bf16.msra.mxu1 %v11211_v17  ;;  %9895 = vmatpush3.bf16.msra.mxu0 %v11217_v23  ;;  %v11243_v36 = vld [vmem:[%s15021_s3 + $0x8d0] ss:$12 sps:$4 sm:$0xff]   ;;  %v13682_v20 = vrot.slane %v5133_v30, 1  ;;  %v5138_v37 = vrot.slane %v5136_v3, 2  ;;  %v11250_v50 = vld [vmem:[%s15021_s3 + $0x8ec] ss:$12 sps:$4 sm:$0xff]  }
 0x210   : > { %5584 = vmatprep.subr.bf16.mxu1 %v11220_v18  ;;  %9896 = vmatprep.subr.bf16.mxu0 %v11221_v2  ;;  %v11251_v17 = vld [vmem:[%s15021_s3 + $0x830] ss:$12 sps:$4 sm:$0xff]   ;;  %v11248_v9 = vld [vmem:[%s15021_s3 + $0x8e8] ss:$12 sps:$4 sm:$0xff]   ;;  %v5131_v7 = vor.u32 %v5130_v59, %v5127_v28  ;;  %v11256_v2 = vld [vmem:[%s15021_s3 + $0x900] ss:$12 sps:$4 sm:$0xff]  }
 0x211   : > { %3834 = vmatprep.mubr.bf16.mxu0 %v11633_v33  ;;  %5573 = vmatprep.mubr.bf16.mxu1 %v13314_v45  ;;  %v11252_v38 = vld [vmem:[%s15021_s3 + $0x770] ss:$12 sps:$4 sm:$0xff]   ;;  %v5139_v23 = vor.u32 %v5138_v37, %v13682_v20  ;;  %v11255_v29 = vld [vmem:[%s15021_s3 + $0x848] ss:$12 sps:$4 sm:$0xff]   ;;  %v11260_v22 = vld [vmem:[%s15021_s3 + $0x918] ss:$12 sps:$4 sm:$0xff]  }
 0x212   : > { %v11258_v18 = vld [vmem:[%s15021_s3 + $0x904] ss:$12 sps:$4 sm:$0xff]   ;;  %v11275_v42 = vld [vmem:[%s15021_s3 + $0x8c0] ss:$12 sps:$4 sm:$0xff]   ;;  %v11278_v30 = vld [vmem:[%s15021_s3 + $0x97c] ss:$12 sps:$4 sm:$0xff]  }
 0x213   : > { %5585 = vmatpush1.bf16.msra.mxu1 %v11218_v39  ;;  %9897 = vmatpush3.bf16.msra.mxu0 %v11222_v11  ;;  %v11259_v39 = vld [vmem:[%s15021_s3 + $0x860] ss:$12 sps:$4 sm:$0xff]   ;;  %v11267_v63 = vld [vmem:[%s15021_s3 + $0x890] ss:$12 sps:$4 sm:$0xff]   ;;  %v11276_v3 = vld [vmem:[%s15021_s3 + $0x978] ss:$12 sps:$4 sm:$0xff]  }
 0x214   : > { %5586 = vmatprep.subr.bf16.mxu1 %v11225_v10  ;;  %9898 = vmatprep.subr.bf16.mxu0 %v11226_v15  ;;  %v5140_v15 = vsel %vm1398_vm1, %v5131_v7, %v5139_v23  ;;  %v11274_v6 = vld [vmem:[%s15021_s3 + $0x964] ss:$12 sps:$4 sm:$0xff]   ;;  %v11286_v28 = vld [vmem:[%s15021_s3 + $0x9ac] ss:$12 sps:$4 sm:$0xff]   ;;  %v11284_v59 = vld [vmem:[%s15021_s3 + $0x9a8] ss:$12 sps:$4 sm:$0xff]  }
 0x215   : > { %v11289_v37 = vld [vmem:[%s15021_s3 + $0x9c4] ss:$12 sps:$4 sm:$0xff]   ;;  %v11291_v7 = vld [vmem:[%s15021_s3 + $0x908] ss:$12 sps:$4 sm:$0xff]  }
 0x216   : > { %3835 = vmatmul.mubr.bf16.gmra.mrb[48].mxu0 %v12627_v49  ;;  %5574 = vmatmul.mubr.bf16.gmra.mrb[76].mxu1 %v13538_v5  ;;  %v11233_v49 = vld [vmem:[%s15021_s3 + $0x8a0] ss:$12 sps:$4 sm:$0xff]  }
 0x217   : > { %5587 = vmatpush1.bf16.msra.mxu1 %v11223_v14  ;;  %9899 = vmatpush3.bf16.msra.mxu0 %v11227_v43 }
 0x218   : > { %5588 = vmatprep.subr.bf16.mxu1 %v11230_v12  ;;  %9900 = vmatprep.subr.bf16.mxu0 %v11231_v31  ;;  %v13717_v12 = vld [vmem:[%s12651_s19] sm:$0xcc]  ;;  %v13720_v31 = vld [vmem:[%s12651_s19 + $0x18] sm:$0x77] }
 0x219   : > { %5614 = vmatprep.mubr.bf16.mxu1 %v11633_v33  ;;  %5665 = vmatprep.mubr.bf16.mxu0 %v13353_v57  ;;  %v11238_v57 = vld [vmem:[%s15021_s3 + $0x8b8] ss:$12 sps:$4 sm:$0xff]  }
 0x21b   : > { %5589 = vmatpush1.bf16.msra.mxu1 %v11228_v46  ;;  %9901 = vmatpush3.bf16.msra.mxu0 %v11232_v47  ;;  %v13727_v47 = vld [vmem:[%s12651_s19 + $0xc] sm:$0xff] }
 0x21c   : > { %5590 = vmatprep.subr.bf16.mxu1 %v11235_v48  ;;  %9902 = vmatprep.subr.bf16.mxu0 %v11236_v34  ;;  %v9445_v48 = vcombine.high %v13720_v31, %v13720_v31  ;;  %v11263_v34 = vld [vmem:[%s15021_s3 + $0x878] ss:$12 sps:$4 sm:$0xff]  }
 0x21f   : > { %5591 = vmatpush1.bf16.msra.mxu1 %v11233_v49  ;;  %9903 = vmatpush3.bf16.msra.mxu0 %v11237_v56  ;;  %v13744_v56 = vrot.slane %v9445_v48, 2  ;;  %v11306_v48 = vld [vmem:[%s15021_s3 + $0x950] ss:$12 sps:$4 sm:$0xff]  }
 0x220   : > { %5592 = vmatprep.subr.bf16.mxu1 %v11240_v60  ;;  %9904 = vmatprep.subr.bf16.mxu0 %v11241_v25  ;;  %v11264_v60 = vld [vmem:[%s15021_s3 + $0x930] ss:$12 sps:$4 sm:$0xff]   ;;  %v11270_v25 = vld [vmem:[%s15021_s3 + $0x94c] ss:$12 sps:$4 sm:$0xff]  }
 0x223   : > { %5593 = vmatpush1.bf16.msra.mxu1 %v11238_v57  ;;  %9905 = vmatpush3.bf16.msra.mxu0 %v11242_v19  ;;  %v11268_v57 = vld [vmem:[%s15021_s3 + $0x948] ss:$12 sps:$4 sm:$0xff]  }
 0x224   : > { %5594 = vmatprep.subr.bf16.mxu1 %v11245_v55  ;;  %9906 = vmatprep.subr.bf16.mxu0 %v11246_v13  ;;  %v11271_v19 = vld [vmem:[%s15021_s3 + $0x8a8] ss:$12 sps:$4 sm:$0xff]   ;;  %v11279_v55 = vld [vmem:[%s15021_s3 + $0x8d8] ss:$12 sps:$4 sm:$0xff]  }
 0x225   : > { %v11282_v13 = vld [vmem:[%s15021_s3 + $0x994] ss:$12 sps:$4 sm:$0xff]  }
 0x227   : > { %5595 = vmatpush1.bf16.msra.mxu1 %v11243_v36  ;;  %9907 = vmatpush3.bf16.msra.mxu0 %v11247_v24  ;;  %v11280_v36 = vld [vmem:[%s15021_s3 + $0x990] ss:$12 sps:$4 sm:$0xff]  }
 0x228   : > { %5596 = vmatprep.subr.bf16.mxu1 %v11250_v50  ;;  %9908 = vmatprep.subr.bf16.mxu0 %v11251_v17  ;;  %v11283_v24 = vld [vmem:[%s15021_s3 + $0x8f0] ss:$12 sps:$4 sm:$0xff]   ;;  %v11290_v50 = vld [vmem:[%s15021_s3 + $0x9c8] ss:$12 sps:$4 sm:$0xff]  }
 0x229   : > { %v2650_v1 = vpop.f32.mrb[32].mxu0 }
 0x22a   : > { %v13710_v11 = vadd.f32 %v2650_v1, %v13579_v41  ;;  %v2652_v10 = vpop.f32.mrb[33].mxu0  ;;  %v11262_v41 = vld [vmem:[%s15021_s3 + $0x91c] ss:$12 sps:$4 sm:$0xff]   ;;  %v11292_v1 = vld [vmem:[%s15021_s3 + $0x9d8] ss:$12 sps:$4 sm:$0xff]  }
 0x22b   : > { %5597 = vmatpush1.bf16.msra.mxu1 %v11248_v9  ;;  %9909 = vmatpush3.bf16.msra.mxu0 %v11252_v38  ;;  %v13714_v14 = vadd.f32 %v2652_v10, %v13582_v27  ;;  %v2654_v43 = vpop.f32.mrb[34].mxu0  ;;  %v9442_v27 = vcombine.high %v13717_v12, %v13727_v47  ;;  %v11287_v38 = vld [vmem:[%s15021_s3 + $0x9c0] ss:$12 sps:$4 sm:$0xff]  }
 0x22c   : > { %10271 = vmatprep.subr.bf16.mxu0 %v11255_v29  ;;  %6245 = vmatprep.subr.bf16.mxu1 %v11258_v18  ;;  %v2655_v46 = vpop.f32.mrb[35].mxu0  ;;  %v11295_v18 = vld [vmem:[%s15021_s3 + $0x9e0] ss:$12 sps:$4 sm:$0xff]   ;;  %v11301_v43 = vld [vmem:[%s15021_s3 + $0x938] ss:$12 sps:$4 sm:$0xff]  }
 0x22d   : > { %v5849_v49 = vrot.slane %v9442_v27, 2  ;;  %v11299_v10 = vld [vmem:[%s15021_s3 + $0x9f4] ss:$12 sps:$4 sm:$0xff]   ;;  %v11305_v46 = vld [vmem:[%s15021_s3 + $0xa10] ss:$12 sps:$4 sm:$0xff]  }
 0x22e   : > { %5615 = vmatmul.mubr.bf16.vlgmr.msra.gmra.mrb[52].mxu1 %v5140_v15  ;;  %5666 = vmatmul.mubr.bf16.vlgmr.msra.gmra.mrb[52].mxu0 %v13585_v58  ;;  %v11266_v58 = vld [vmem:[%s15021_s3 + $0x934] ss:$12 sps:$4 sm:$0xff]  }
 0x22f   : > { %10272 = vmatpush3.bf16.msra.mxu0 %v11255_v29  ;;  %6246 = vmatpush1.bf16.msra.mxu1 %v11256_v2  ;;  %v11294_v29 = vld [vmem:[%s15021_s3 + $0x9dc] ss:$12 sps:$4 sm:$0xff]  }
 0x230   : > { %10273 = vmatprep.subr.bf16.mxu0 %v11259_v39  ;;  %6247 = vmatprep.subr.bf16.mxu1 %v11262_v41  ;;  %v11304_v41 = vld [vmem:[%s15021_s3 + $0xa0c] ss:$12 sps:$4 sm:$0xff]   ;;  %v11302_v27 = vld [vmem:[%s15021_s3 + $0xa08] ss:$12 sps:$4 sm:$0xff]  }
 0x231   : > { %5624 = vmatprep.mubr.bf16.mxu1 %v11633_v33  ;;  %5673 = vmatprep.mubr.bf16.mxu0 %v13314_v45  ;;  %v5851_v45 = vsel %vm2155_vm2, %v5849_v49, %v13744_v56  ;;  %v11311_v49 = vld [vmem:[%s15021_s3 + $0x968] ss:$12 sps:$4 sm:$0xff]  }
 0x233   : > { %10274 = vmatpush3.bf16.msra.mxu0 %v11259_v39  ;;  %6248 = vmatpush1.bf16.msra.mxu1 %v11260_v22  ;;  %v11296_v39 = vld [vmem:[%s15021_s3 + $0x920] ss:$12 sps:$4 sm:$0xff]   ;;  %v11309_v22 = vld [vmem:[%s15021_s3 + $0xa24] ss:$12 sps:$4 sm:$0xff]  }
 0x234   : > { %10275 = vmatprep.subr.bf16.mxu0 %v11263_v34  ;;  %6249 = vmatprep.subr.bf16.mxu1 %v11266_v58  ;;  %v11307_v58 = vld [vmem:[%s15021_s3 + $0xa20] ss:$12 sps:$4 sm:$0xff]  }
 0x236   : > { %5625 = vmatmul.mubr.bf16.gmra.mrb[80].mxu1 %v13682_v20  ;;  %5674 = vmatmul.mubr.bf16.gmra.mrb[56].mxu0 %v13538_v5  ;;  %v11272_v5 = vld [vmem:[%s15021_s3 + $0x960] ss:$12 sps:$4 sm:$0xff]  }
 0x237   : > { %10276 = vmatpush3.bf16.msra.mxu0 %v11263_v34  ;;  %6250 = vmatpush1.bf16.msra.mxu1 %v11264_v60  ;;  %v11310_v34 = vld [vmem:[%s15021_s3 + $0xa28] ss:$12 sps:$4 sm:$0xff]  }
 0x238   : > { %10277 = vmatprep.subr.bf16.mxu0 %v11267_v63  ;;  %6251 = vmatprep.subr.bf16.mxu1 %v11270_v25  ;;  %v11314_v60 = vld [vmem:[%s15021_s3 + $0xa3c] ss:$12 sps:$4 sm:$0xff]   ;;  %v11312_v25 = vld [vmem:[%s15021_s3 + $0xa38] ss:$12 sps:$4 sm:$0xff]  }
 0x239   : > { %10287 = vmatprep.mubr.bf16.mxu0 %v5140_v15  ;;  %6277 = vmatprep.mubr.bf16.mxu1 %v5851_v45  ;;  %v11297_v15 = vld [vmem:[%s15021_s3 + $0x9f0] ss:$12 sps:$4 sm:$0xff]  }
 0x23b   : > { %10278 = vmatpush3.bf16.msra.mxu0 %v11267_v63  ;;  %6252 = vmatpush1.bf16.msra.mxu1 %v11268_v57  ;;  %v11315_v63 = vld [vmem:[%s15021_s3 + $0xa40] ss:$12 sps:$4 sm:$0xff]  }
 0x23c   : > { %10279 = vmatprep.subr.bf16.mxu0 %v11271_v19  ;;  %6253 = vmatprep.subr.bf16.mxu1 %v11274_v6  ;;  %v11319_v57 = vld [vmem:[%s15021_s3 + $0xa54] ss:$12 sps:$4 sm:$0xff]   ;;  %v11317_v6 = vld [vmem:[%s15021_s3 + $0xa50] ss:$12 sps:$4 sm:$0xff]  }
 0x23f   : > { %10280 = vmatpush3.bf16.msra.mxu0 %v11271_v19  ;;  %6254 = vmatpush1.bf16.msra.mxu1 %v11272_v5  ;;  %v11320_v19 = vld [vmem:[%s15021_s3 + $0xa58] ss:$12 sps:$4 sm:$0xff]  }
 0x240   : > { %10281 = vmatprep.subr.bf16.mxu0 %v11275_v42  ;;  %6255 = vmatprep.subr.bf16.mxu1 %v11278_v30  ;;  %v11321_v5 = vld [vmem:[%s15021_s3 + $0x998] ss:$12 sps:$4 sm:$0xff]   ;;  %v9444_v30 = vcombine.low %v13720_v31, %v13720_v31 }
 0x243   : > { %10282 = vmatpush3.bf16.msra.mxu0 %v11275_v42  ;;  %6256 = vmatpush1.bf16.msra.mxu1 %v11276_v3  ;;  %v9441_v42 = vcombine.low %v13717_v12, %v13727_v47  ;;  %v11324_v3 = vld [vmem:[%s15021_s3 + $0xa6c] ss:$12 sps:$4 sm:$0xff]   ;;  %v11326_v12 = vld [vmem:[%s15021_s3 + $0x9b0] ss:$12 sps:$4 sm:$0xff]   ;;  %v5847_v47 = vrot.slane %v9444_v30, 2 }
 0x244   : > { %10283 = vmatprep.subr.bf16.mxu0 %v11279_v55  ;;  %6257 = vmatprep.subr.bf16.mxu1 %v11282_v13  ;;  %v11322_v13 = vld [vmem:[%s15021_s3 + $0xa68] ss:$12 sps:$4 sm:$0xff]  }
 0x245   : > { %v5846_v31 = vrot.slane %v9441_v42, 2 }
 0x247   : > { %10284 = vmatpush3.bf16.msra.mxu0 %v11279_v55  ;;  %6258 = vmatpush1.bf16.msra.mxu1 %v11280_v36  ;;  %v11325_v55 = vld [vmem:[%s15021_s3 + $0xa70] ss:$12 sps:$4 sm:$0xff]  }
 0x248   : > { %10285 = vmatprep.subr.bf16.mxu0 %v11283_v24  ;;  %6259 = vmatprep.subr.bf16.mxu1 %v11286_v28  ;;  %v11333_v36 = vld [vmem:[%s15021_s3 + $0xa84] ss:$12 sps:$4 sm:$0xff]  }
 0x249   : > { %v13804_v17 = vpop.f32.mrb[56].mxu1 }
 0x24a   : > { %v13806_v9 = vpop.f32.mrb[57].mxu1 }
 0x24b   : > { %10286 = vmatpush3.bf16.msra.mxu0 %v11283_v24  ;;  %6260 = vmatpush1.bf16.msra.mxu1 %v11284_v59  ;;  %v4726_v23 = vpop.f32.mrb[58].mxu1  ;;  %v11334_v24 = vld [vmem:[%s15021_s3 + $0xa88] ss:$12 sps:$4 sm:$0xff]  }
 0x24c   : > { %6261 = vmatprep.subr.bf16.mxu1 %v11289_v37  ;;  %9932 = vmatprep.subr.bf16.mxu0 %v11290_v50  ;;  %v4727_v2 = vpop.f32.mrb[59].mxu1 }
 0x24e   : > { %10288 = vmatmul.mubr.bf16.vlgmr.msra.gmra.mrb[60].mxu0 %v13682_v20  ;;  %v11300_v20 = vld [vmem:[%s15021_s3 + $0x9f8] ss:$12 sps:$4 sm:$0xff]  }
 0x24f   : > { %6262 = vmatpush1.bf16.msra.mxu1 %v11287_v38  ;;  %9933 = vmatpush3.bf16.msra.mxu0 %v11291_v7 }
 0x250   : > { %6263 = vmatprep.subr.bf16.mxu1 %v11294_v29  ;;  %9934 = vmatprep.subr.bf16.mxu0 %v11295_v18  ;;  %v11331_v18 = vld [vmem:[%s15021_s3 + $0xa80] ss:$12 sps:$4 sm:$0xff]  }
 0x251   : > { %6379 = vmatprep.mubr.bf16.mxu0 %v5851_v45  ;;  %v11316_v45 = vld [vmem:[%s15021_s3 + $0x980] ss:$12 sps:$4 sm:$0xff]  }
 0x253   : > { %6264 = vmatpush1.bf16.msra.mxu1 %v11292_v1  ;;  %9935 = vmatpush3.bf16.msra.mxu0 %v11296_v39  ;;  %v5730_v1 = vld [vmem:[%s12651_s19 + $0x8] sm:$0xc] }
 0x254   : > { %6265 = vmatprep.subr.bf16.mxu1 %v11299_v10  ;;  %9936 = vmatprep.subr.bf16.mxu0 %v11300_v20  ;;  %v9443_v20 = vcombine.low %v5730_v1, %v13653_v54  ;;  %v11369_v1 = vld [vmem:[%s15021_s3 + $0x8] ss:$12 sps:$4 sm:$0xff]  }
 0x256   : > { %v5852_v54 = vrot.slane %v9443_v20, 2 }
 0x257   : > { %6266 = vmatpush1.bf16.msra.mxu1 %v11297_v15  ;;  %9937 = vmatpush3.bf16.msra.mxu0 %v11301_v43  ;;  %v11364_v15 = vld [vmem:[%s12651_s19 + $0x20] ss:$0 sps:$4 sm:$0x77]   ;;  %v11335_v43 = vld [vmem:[%s15021_s3 + $0xa98] ss:$12 sps:$4 sm:$0xff]  }
 0x258   : > { %6267 = vmatprep.subr.bf16.mxu1 %v11304_v41  ;;  %9938 = vmatprep.subr.bf16.mxu0 %v11305_v46  ;;  %v11341_v41 = vld [vmem:[%s15021_s3 + $0xab4] ss:$12 sps:$4 sm:$0xff]   ;;  %v11342_v46 = vld [vmem:[%s15021_s3 + $0xab8] ss:$12 sps:$4 sm:$0xff]  }
 0x25b   : > { %6268 = vmatpush1.bf16.msra.mxu1 %v11302_v27  ;;  %9939 = vmatpush3.bf16.msra.mxu0 %v11306_v48  ;;  %v13945_v27 = vrot.slane %v11364_v15, 2  ;;  %v11339_v48 = vld [vmem:[%s15021_s3 + $0xab0] ss:$12 sps:$4 sm:$0xff]   ;;  %v11370_v15 = vld [vmem:[%s15021_s3 + $0x18] ss:$12 sps:$4 sm:$0xff]  }
 0x25c   : > { %6269 = vmatprep.subr.bf16.mxu1 %v11309_v22  ;;  %9940 = vmatprep.subr.bf16.mxu0 %v11310_v34  ;;  %v11345_v22 = vld [vmem:[%s15021_s3 + $0xacc] ss:$12 sps:$4 sm:$0xff]   ;;  %v11346_v34 = vld [vmem:[%s15021_s3 + $0xad0] ss:$12 sps:$4 sm:$0xff]  }
 0x25f   : > { %6270 = vmatpush1.bf16.msra.mxu1 %v11307_v58  ;;  %9941 = vmatpush3.bf16.msra.mxu0 %v11311_v49  ;;  %v11343_v58 = vld [vmem:[%s15021_s3 + $0xac8] ss:$12 sps:$4 sm:$0xff]   ;;  %v11349_v49 = vld [vmem:[%s15021_s3 + $0xae4] ss:$12 sps:$4 sm:$0xff]  }
 0x260   : > { %6271 = vmatprep.subr.bf16.mxu1 %v11314_v60  ;;  %9942 = vmatprep.subr.bf16.mxu0 %v11315_v63  ;;  %v11350_v60 = vld [vmem:[%s15021_s3 + $0xae8] ss:$12 sps:$4 sm:$0xff]   ;;  %v11347_v63 = vld [vmem:[%s15021_s3 + $0xae0] ss:$12 sps:$4 sm:$0xff]  }
 0x263   : > { %6272 = vmatpush1.bf16.msra.mxu1 %v11312_v25  ;;  %9943 = vmatpush3.bf16.msra.mxu0 %v11316_v45  ;;  %v11353_v25 = vld [vmem:[%s15021_s3 + $0xafc] ss:$12 sps:$4 sm:$0xff]   ;;  %v11354_v45 = vld [vmem:[%s15021_s3 + $0xb00] ss:$12 sps:$4 sm:$0xff]  }
 0x264   : > { %6273 = vmatprep.subr.bf16.mxu1 %v11319_v57  ;;  %9944 = vmatprep.subr.bf16.mxu0 %v11320_v19  ;;  %v11351_v57 = vld [vmem:[%s15021_s3 + $0xaf8] ss:$12 sps:$4 sm:$0xff]   ;;  %v11357_v19 = vld [vmem:[%s15021_s3 + $0xb14] ss:$12 sps:$4 sm:$0xff]  }
 0x267   : > { %6274 = vmatpush1.bf16.msra.mxu1 %v11317_v6  ;;  %9945 = vmatpush3.bf16.msra.mxu0 %v11321_v5  ;;  %v11358_v6 = vld [vmem:[%s15021_s3 + $0xb18] ss:$12 sps:$4 sm:$0xff]  }
 0x268   : > { %6275 = vmatprep.subr.bf16.mxu1 %v11324_v3  ;;  %9946 = vmatprep.subr.bf16.mxu0 %v11325_v55  ;;  %v11355_v55 = vld [vmem:[%s15021_s3 + $0xb10] ss:$12 sps:$4 sm:$0xff]  }
 0x269   : > { %v3187_v28 = vpop.f32.mrb[36].mxu0  ;;  %v4773_v59 = vpop.f32.mrb[60].mxu1 }
 0x26a   : > { %v13910_v37 = vadd.f32 %v3187_v28, %v12841_v53  ;;  %v13913_v50 = vadd.f32 %v4773_v59, %v13804_v17  ;;  %v3189_v38 = vpop.f32.mrb[37].mxu0  ;;  %v4775_v7 = vpop.f32.mrb[61].mxu1  ;;  %v5848_v53 = vsel %vm2155_vm2, %v5846_v31, %v5847_v47  ;;  %v11362_v31 = vld [vmem:[%s15021_s3 + $0xb30] ss:$12 sps:$4 sm:$0xff]   ;;  %v11368_v28 = vld [vmem:[%s15021_s3 + $0xc8] ss:$12 sps:$4 sm:$0xff]  }
 0x26b   : > { %v13916_v23 = vadd.f32 %v3189_v38, %v12850_v40  ;;  %v13919_v29 = vadd.f32 %v4775_v7, %v13806_v9  ;;  %6276 = vmatpush1.bf16.msra.mxu1 %v11322_v13  ;;  %9947 = vmatpush3.bf16.msra.mxu0 %v11326_v12  ;;  %v4777_v2 = vpop.f32.mrb[62].mxu1  ;;  %v3191_v17 = vpop.f32.mrb[38].mxu0  ;;  %v11337_v40 = vld [vmem:[%s15021_s3 + $0xa9c] ss:$12 sps:$4 sm:$0xff]   ;;  %v11338_v9 = vld [vmem:[%s15021_s3 + $0xaa0] ss:$12 sps:$4 sm:$0xff]  }
 0x26c   : > { %6296 = vmatprep.subr.bf16.mxu1 %v11333_v36  ;;  %10291 = vmatprep.subr.bf16.mxu0 %v11334_v24  ;;  %v4778_v39 = vpop.f32.mrb[63].mxu1  ;;  %v3192_v10 = vpop.f32.mrb[39].mxu0  ;;  %v11361_v12 = vld [vmem:[%s15021_s3 + $0xb2c] ss:$12 sps:$4 sm:$0xff]   ;;  %v11359_v36 = vld [vmem:[%s15021_s3 + $0xb28] ss:$12 sps:$4 sm:$0xff]  }
 0x26d   : > { %v11365_v17 = vld [vmem:[%s15021_s3] ss:$12 sps:$4 sm:$0xff]  }
 0x26e   : > { %6278 = vmatmul.mubr.bf16.vlgmr.msra.gmra.mrb[52].mxu1 %v5848_v53  ;;  %6380 = vmatmul.mubr.bf16.vlgmr.msra.gmra.mrb[64].mxu0 %v5848_v53 }
 0x26f   : > { %6297 = vmatpush1.bf16.msra.mxu1 %v11331_v18  ;;  %10292 = vmatpush3.bf16.msra.mxu0 %v11334_v24  ;;  %v11367_v24 = vld [vmem:[%s15021_s3 + $0x4] ss:$12 sps:$4 sm:$0xff]  }
 0x270   : > { %6298 = vmatprep.subr.bf16.mxu1 %v11337_v40  ;;  %10293 = vmatprep.subr.bf16.mxu0 %v11338_v9 }
 0x271   : > { %6287 = vmatprep.mubr.bf16.mxu1 %v13744_v56  ;;  %6387 = vmatprep.mubr.bf16.mxu0 %v13744_v56  ;;  %v5854_v56 = vsel %vm2155_vm2, %v5852_v54, %v13945_v27  ;;  %v11375_v54 = vld [vmem:[%s15021_s3 + $0x30] ss:$12 sps:$4 sm:$0xff]  }
 0x273   : > { %6299 = vmatpush1.bf16.msra.mxu1 %v11335_v43  ;;  %10294 = vmatpush3.bf16.msra.mxu0 %v11338_v9  ;;  %v11374_v43 = vld [vmem:[%s15021_s3 + $0x20] ss:$12 sps:$4 sm:$0xff]  }
 0x274   : > { %6300 = vmatprep.subr.bf16.mxu1 %v11341_v41  ;;  %10295 = vmatprep.subr.bf16.mxu0 %v11342_v46  ;;  %v11377_v41 = vld [vmem:[%s15021_s3 + $0x34] ss:$12 sps:$4 sm:$0xff]  }
 0x276   : > { %6288 = vmatmul.mubr.bf16.gmra.mrb[84].mxu1 %v5847_v47  ;;  %6388 = vmatmul.mubr.bf16.gmra.mrb[68].mxu0 %v5847_v47 }
 0x277   : > { %6301 = vmatpush1.bf16.msra.mxu1 %v11339_v48  ;;  %10296 = vmatpush3.bf16.msra.mxu0 %v11342_v46  ;;  %v11378_v46 = vld [vmem:[%s15021_s3 + $0xf8] ss:$12 sps:$4 sm:$0xff]  }
 0x278   : > { %6302 = vmatprep.subr.bf16.mxu1 %v11345_v22  ;;  %10297 = vmatprep.subr.bf16.mxu0 %v11346_v34  ;;  %v11379_v48 = vld [vmem:[%s15021_s3 + $0x38] ss:$12 sps:$4 sm:$0xff]  }
 0x279   : > { %6328 = vmatprep.mubr.bf16.mxu1 %v11633_v33  ;;  %10307 = vmatprep.mubr.bf16.mxu0 %v5854_v56  ;;  %v11382_v22 = vld [vmem:[%s15021_s3 + $0x4c] ss:$12 sps:$4 sm:$0xff]  }
 0x27b   : > { %6303 = vmatpush1.bf16.msra.mxu1 %v11343_v58  ;;  %10298 = vmatpush3.bf16.msra.mxu0 %v11346_v34  ;;  %v11383_v34 = vld [vmem:[%s15021_s3 + $0x110] ss:$12 sps:$4 sm:$0xff]  }
 0x27c   : > { %6304 = vmatprep.subr.bf16.mxu1 %v11349_v49  ;;  %10299 = vmatprep.subr.bf16.mxu0 %v11350_v60  ;;  %v11384_v58 = vld [vmem:[%s15021_s3 + $0x50] ss:$12 sps:$4 sm:$0xff]  }
 0x27d   : > { %v11387_v49 = vld [vmem:[%s15021_s3 + $0x64] ss:$12 sps:$4 sm:$0xff]  }
 0x27f   : > { %6305 = vmatpush1.bf16.msra.mxu1 %v11347_v63  ;;  %10300 = vmatpush3.bf16.msra.mxu0 %v11350_v60  ;;  %v11385_v60 = vld [vmem:[%s15021_s3 + $0x60] ss:$12 sps:$4 sm:$0xff]   ;;  %v11389_v63 = vld [vmem:[%s15021_s3 + $0x68] ss:$12 sps:$4 sm:$0xff]  }
 0x280   : > { %6306 = vmatprep.subr.bf16.mxu1 %v11353_v25  ;;  %10301 = vmatprep.subr.bf16.mxu0 %v11354_v45  ;;  %v11392_v25 = vld [vmem:[%s15021_s3 + $0x7c] ss:$12 sps:$4 sm:$0xff]  }
 0x281   : > { %v9872_v5 = vpop.f32.mrb[64].mxu1 }
 0x282   : > { %v9873_v42 = vpop.f32.mrb[65].mxu1 }
 0x283   : > { %v13986_v30 = vadd.f32 %v9873_v42, %v9872_v5  ;;  %v9875_v3 = vpop.f32.mrb[66].mxu1  ;;  %6307 = vmatpush1.bf16.msra.mxu1 %v11351_v57  ;;  %10302 = vmatpush3.bf16.msra.mxu0 %v11354_v45  ;;  %v11390_v45 = vld [vmem:[%s15021_s3 + $0x78] ss:$12 sps:$4 sm:$0xff]   ;;  %v11394_v57 = vld [vmem:[%s15021_s3 + $0x80] ss:$12 sps:$4 sm:$0xff]  }
 0x284   : > { %v9876_v13 = vpop.f32.mrb[67].mxu1  ;;  %6308 = vmatprep.subr.bf16.mxu1 %v11357_v19  ;;  %10303 = vmatprep.subr.bf16.mxu0 %v11358_v6  ;;  %v11397_v19 = vld [vmem:[%s15021_s3 + $0x94] ss:$12 sps:$4 sm:$0xff]  }
 0x285   : > { %v13997_v47 = vadd.f32 %v9876_v13, %v9875_v3 }
 0x287   : > { %6309 = vmatpush1.bf16.msra.mxu1 %v11355_v55  ;;  %10304 = vmatpush3.bf16.msra.mxu0 %v11358_v6  ;;  %v11398_v6 = vld [vmem:[%s15021_s3 + $0x158] ss:$12 sps:$4 sm:$0xff]  }
 0x288   : > { %6310 = vmatprep.subr.bf16.mxu1 %v11361_v12  ;;  %10305 = vmatprep.subr.bf16.mxu0 %v11362_v31  ;;  %v11395_v12 = vld [vmem:[%s15021_s3 + $0x90] ss:$12 sps:$4 sm:$0xff]  }
 0x289   : > { %v3238_v59 = vpop.f32.mrb[40].mxu0  ;;  %v9878_v38 = vpop.f32.mrb[68].mxu1 }
 0x28a   : > { %v14009_v7 = vadd.f32 %v3238_v59, %v13910_v37  ;;  %v3240_v18 = vpop.f32.mrb[41].mxu0  ;;  %v9879_v53 = vpop.f32.mrb[69].mxu1  ;;  %v11372_v37 = vld [vmem:[%s15021_s3 + $0x1c] ss:$12 sps:$4 sm:$0xff]  }
 0x28b   : > { %v14012_v2 = vadd.f32 %v3240_v18, %v13916_v23  ;;  %6311 = vmatpush1.bf16.msra.mxu1 %v11359_v36  ;;  %10306 = vmatpush3.bf16.msra.mxu0 %v11362_v31  ;;  %v9880_v40 = vadd.f32 %v9879_v53, %v9878_v38  ;;  %v9881_v9 = vpop.f32.mrb[70].mxu1  ;;  %v3242_v39 = vpop.f32.mrb[42].mxu0  ;;  %v11373_v23 = vld [vmem:[%s15021_s3 + $0xe0] ss:$12 sps:$4 sm:$0xff]   ;;  %v11399_v31 = vld [vmem:[%s15021_s3 + $0x98] ss:$12 sps:$4 sm:$0xff]  }
 0x28c   : > { %6833 = vmatprep.subr.bf16.mxu1 %v11367_v24  ;;  %9970 = vmatprep.subr.bf16.mxu0 %v11368_v28  ;;  %v9882_v10 = vpop.f32.mrb[71].mxu1  ;;  %v3243_v20 = vpop.f32.mrb[43].mxu0  ;;  %v11402_v24 = vld [vmem:[%s15021_s3 + $0xac] ss:$12 sps:$4 sm:$0xff]   ;;  %v11400_v59 = vld [vmem:[%s15021_s3 + $0xa8] ss:$12 sps:$4 sm:$0xff]  }
 0x28d   : > { %v11404_v38 = vld [vmem:[%s15021_s3 + $0xb0] ss:$12 sps:$4 sm:$0xff]   ;;  %v11405_v53 = vld [vmem:[%s15021_s3 + $0xc0] ss:$12 sps:$4 sm:$0xff]   ;;  %v11416_v39 = vld [vmem:[%s15021_s3 + $0x1b8] ss:$12 sps:$4 sm:$0xff]  }
 0x28e   : > { %6329 = vmatmul.mubr.bf16.vlgmr.msra.gmra.mrb[52].mxu1 %v5854_v56  ;;  %10308 = vmatmul.mubr.bf16.vlgmr.msra.gmra.mrb[72].mxu0 %v13945_v27  ;;  %v11380_v56 = vld [vmem:[%s15021_s3 + $0x48] ss:$12 sps:$4 sm:$0xff]   ;;  %v11407_v18 = vld [vmem:[%s15021_s3 + $0xc4] ss:$12 sps:$4 sm:$0xff]  }
 0x28f   : > { %6834 = vmatpush1.bf16.msra.mxu1 %v11365_v17  ;;  %9971 = vmatpush3.bf16.msra.mxu0 %v11369_v1  ;;  %v11411_v17 = vld [vmem:[%s15021_s3 + $0xdc] ss:$12 sps:$4 sm:$0xff]   ;;  %v11412_v1 = vld [vmem:[%s15021_s3 + $0x1a0] ss:$12 sps:$4 sm:$0xff]  }
 0x290   : > { %6835 = vmatprep.subr.bf16.mxu1 %v11372_v37  ;;  %9972 = vmatprep.subr.bf16.mxu0 %v11373_v23  ;;  %v11415_v9 = vld [vmem:[%s15021_s3 + $0xf4] ss:$12 sps:$4 sm:$0xff]   ;;  %v11413_v37 = vld [vmem:[%s15021_s3 + $0xf0] ss:$12 sps:$4 sm:$0xff]   ;;  %v11419_v23 = vld [vmem:[%s15021_s3 + $0x10c] ss:$12 sps:$4 sm:$0xff]  }
 0x291   : > { %6338 = vmatprep.mubr.bf16.mxu1 %v11633_v33  ;;  %6967 = vmatprep.mubr.bf16.mxu0 %v12680_v62  ;;  %v11420_v10 = vld [vmem:[%s15021_s3 + $0x1d0] ss:$12 sps:$4 sm:$0xff]   ;;  %v11417_v20 = vld [vmem:[%s15021_s3 + $0x108] ss:$12 sps:$4 sm:$0xff]  }
 0x293   : > { %6836 = vmatpush1.bf16.msra.mxu1 %v11370_v15  ;;  %9973 = vmatpush3.bf16.msra.mxu0 %v11374_v43  ;;  %v11423_v15 = vld [vmem:[%s15021_s3 + $0x124] ss:$12 sps:$4 sm:$0xff]   ;;  %v11424_v43 = vld [vmem:[%s15021_s3 + $0x1e8] ss:$12 sps:$4 sm:$0xff]  }
 0x294   : > { %6837 = vmatprep.subr.bf16.mxu1 %v11377_v41  ;;  %9974 = vmatprep.subr.bf16.mxu0 %v11378_v46  ;;  %v11421_v41 = vld [vmem:[%s15021_s3 + $0x120] ss:$12 sps:$4 sm:$0xff]   ;;  %v11427_v46 = vld [vmem:[%s15021_s3 + $0x13c] ss:$12 sps:$4 sm:$0xff]  }
 0x296   : > { %6339 = vmatmul.mubr.bf16.gmra.mrb[88].mxu1 %v13945_v27  ;;  %v11388_v27 = vld [vmem:[%s15021_s3 + $0x128] ss:$12 sps:$4 sm:$0xff]  }
 0x297   : > { %6838 = vmatpush1.bf16.msra.mxu1 %v11375_v54  ;;  %9975 = vmatpush3.bf16.msra.mxu0 %v11379_v48  ;;  %v11428_v54 = vld [vmem:[%s15021_s3 + $0x200] ss:$12 sps:$4 sm:$0xff]   ;;  %v11425_v48 = vld [vmem:[%s15021_s3 + $0x138] ss:$12 sps:$4 sm:$0xff]  }
 0x298   : > { %6839 = vmatprep.subr.bf16.mxu1 %v11382_v22  ;;  %9976 = vmatprep.subr.bf16.mxu0 %v11383_v34  ;;  %v11431_v22 = vld [vmem:[%s15021_s3 + $0x154] ss:$12 sps:$4 sm:$0xff]   ;;  %v11432_v34 = vld [vmem:[%s15021_s3 + $0x218] ss:$12 sps:$4 sm:$0xff]  }
 0x299   : > { %6865 = vmatprep.mubr.bf16.mxu1 %v12680_v62  ;;  %v11393_v62 = vld [vmem:[%s15021_s3 + $0x140] ss:$12 sps:$4 sm:$0xff]  }
 0x29b   : > { %6840 = vmatpush1.bf16.msra.mxu1 %v11380_v56  ;;  %9977 = vmatpush3.bf16.msra.mxu0 %v11384_v58  ;;  %v11429_v56 = vld [vmem:[%s15021_s3 + $0x150] ss:$12 sps:$4 sm:$0xff]   ;;  %v11435_v58 = vld [vmem:[%s15021_s3 + $0x16c] ss:$12 sps:$4 sm:$0xff]  }
 0x29c   : > { %6841 = vmatprep.subr.bf16.mxu1 %v11387_v49  ;;  %9978 = vmatprep.subr.bf16.mxu0 %v11388_v27  ;;  %v11436_v49 = vld [vmem:[%s15021_s3 + $0x230] ss:$12 sps:$4 sm:$0xff]   ;;  %v11433_v27 = vld [vmem:[%s15021_s3 + $0x168] ss:$12 sps:$4 sm:$0xff]  }
 0x29f   : > { %6842 = vmatpush1.bf16.msra.mxu1 %v11385_v60  ;;  %9979 = vmatpush3.bf16.msra.mxu0 %v11389_v63  ;;  %v11439_v60 = vld [vmem:[%s15021_s3 + $0x184] ss:$12 sps:$4 sm:$0xff]   ;;  %v11440_v63 = vld [vmem:[%s15021_s3 + $0x548] ss:$12 sps:$4 sm:$0xff]  }
 0x2a0   : > { %6843 = vmatprep.subr.bf16.mxu1 %v11392_v25  ;;  %9980 = vmatprep.subr.bf16.mxu0 %v11393_v62 }
 0x2a1   : > { %v10269_v5 = vpop.f32.mrb[72].mxu1 }
 0x2a2   : > { %v14091_v42 = vadd.f32 %v10269_v5, %v9880_v40  ;;  %v4862_v3 = vpop.f32.mrb[73].mxu1  ;;  %v11409_v40 = vld [vmem:[%s15021_s3 + $0xd8] ss:$12 sps:$4 sm:$0xff]   ;;  %v11437_v5 = vld [vmem:[%s15021_s3 + $0x180] ss:$12 sps:$4 sm:$0xff]  }
 0x2a3   : > { %v14094_v55 = vadd.f32 %v13986_v30, %v4862_v3  ;;  %v10270_v13 = vpop.f32.mrb[74].mxu1  ;;  %6844 = vmatpush1.bf16.msra.mxu1 %v11390_v45  ;;  %9981 = vmatpush3.bf16.msra.mxu0 %v11394_v57  ;;  %v11403_v30 = vld [vmem:[%s15021_s3 + $0x170] ss:$12 sps:$4 sm:$0xff]   ;;  %v7034_v57 = vrot.slane %v13281_v0, 1 }
 0x2a4   : > { %v4865_v36 = vpop.f32.mrb[75].mxu1  ;;  %6845 = vmatprep.subr.bf16.mxu1 %v11397_v19  ;;  %9982 = vmatprep.subr.bf16.mxu0 %v11398_v6  ;;  %v14204_v19 = vrot.slane %v13285_v52, 1  ;;  %v11444_v0 = vld [vmem:[%s15021_s3 + $0x19c] ss:$12 sps:$4 sm:$0xff]   ;;  %v11445_v52 = vld [vmem:[%s15021_s3 + $0x560] ss:$12 sps:$4 sm:$0xff]  }
 0x2a5   : > { %v14109_v28 = vadd.f32 %v13997_v47, %v4865_v36  ;;  %v11408_v47 = vld [vmem:[%s15021_s3 + $0x188] ss:$12 sps:$4 sm:$0xff]   ;;  %v14223_v13 = vld [vmem:[%s12651_s19 + $0x20] ss:$0 sps:$4 sm:$0x11]  }
 0x2a6   : > { %v11446_v36 = vld [vmem:[%s15021_s3 + $0x4a0] ss:$12 sps:$4 sm:$0xff]  }
 0x2a7   : > { %6846 = vmatpush1.bf16.msra.mxu1 %v11395_v12  ;;  %9983 = vmatpush3.bf16.msra.mxu0 %v11399_v31  ;;  %v14228_v12 = vsel %vm3341_vm3, %v7034_v57, %v14204_v19  ;;  %v11442_v31 = vld [vmem:[%s15021_s3 + $0x198] ss:$12 sps:$4 sm:$0xff]  }
 0x2a8   : > { %6847 = vmatprep.subr.bf16.mxu1 %v11402_v24  ;;  %9984 = vmatprep.subr.bf16.mxu0 %v11403_v30  ;;  %v11450_v24 = vld [vmem:[%s15021_s3 + $0x578] ss:$12 sps:$4 sm:$0xff]   ;;  %v11447_v30 = vld [vmem:[%s15021_s3 + $0x1b0] ss:$12 sps:$4 sm:$0xff]  }
 0x2ab   : > { %6848 = vmatpush1.bf16.msra.mxu1 %v11400_v59  ;;  %9985 = vmatpush3.bf16.msra.mxu0 %v11404_v38  ;;  %v11451_v59 = vld [vmem:[%s15021_s3 + $0x4b8] ss:$12 sps:$4 sm:$0xff]  }
 0x2ac   : > { %6849 = vmatprep.subr.bf16.mxu1 %v11407_v18  ;;  %10311 = vmatprep.subr.bf16.mxu0 %v11408_v47  ;;  %v11454_v38 = vld [vmem:[%s15021_s3 + $0x1cc] ss:$12 sps:$4 sm:$0xff]   ;;  %v11452_v18 = vld [vmem:[%s15021_s3 + $0x1c8] ss:$12 sps:$4 sm:$0xff]  }
 0x2ae   : > { %6968 = vmatmul.mubr.bf16.vlgmr.msra.gmra.mrb[76].mxu0 %v12906_v44 }
 0x2af   : > { %6850 = vmatpush1.bf16.msra.mxu1 %v11405_v53  ;;  %10312 = vmatpush3.bf16.msra.mxu0 %v11408_v47  ;;  %v11456_v47 = vld [vmem:[%s15021_s3 + $0x4d0] ss:$12 sps:$4 sm:$0xff]  }
 0x2b0   : > { %6851 = vmatprep.subr.bf16.mxu1 %v11411_v17  ;;  %10313 = vmatprep.subr.bf16.mxu0 %v11412_v1  ;;  %v11459_v53 = vld [vmem:[%s15021_s3 + $0x1e4] ss:$12 sps:$4 sm:$0xff]   ;;  %v11457_v17 = vld [vmem:[%s15021_s3 + $0x1e0] ss:$12 sps:$4 sm:$0xff]  }
 0x2b1   : > { %6975 = vmatprep.mubr.bf16.mxu0 %v12693_v16 }
 0x2b3   : > { %6852 = vmatpush1.bf16.msra.mxu1 %v11409_v40  ;;  %10314 = vmatpush3.bf16.msra.mxu0 %v11412_v1  ;;  %v11461_v1 = vld [vmem:[%s15021_s3 + $0x4e8] ss:$12 sps:$4 sm:$0xff]  }
 0x2b4   : > { %6853 = vmatprep.subr.bf16.mxu1 %v11415_v9  ;;  %10315 = vmatprep.subr.bf16.mxu0 %v11416_v39  ;;  %v11464_v40 = vld [vmem:[%s15021_s3 + $0x1fc] ss:$12 sps:$4 sm:$0xff]   ;;  %v11465_v9 = vld [vmem:[%s15021_s3 + $0x5c0] ss:$12 sps:$4 sm:$0xff]  }
 0x2b6   : > { %6976 = vmatmul.mubr.bf16.gmra.mrb[80].mxu0 %v12922_v4 }
 0x2b7   : > { %6854 = vmatpush1.bf16.msra.mxu1 %v11413_v37  ;;  %10316 = vmatpush3.bf16.msra.mxu0 %v11416_v39  ;;  %v11462_v39 = vld [vmem:[%s15021_s3 + $0x1f8] ss:$12 sps:$4 sm:$0xff]   ;;  %v11466_v37 = vld [vmem:[%s15021_s3 + $0x500] ss:$12 sps:$4 sm:$0xff]  }
 0x2b8   : > { %6855 = vmatprep.subr.bf16.mxu1 %v11419_v23  ;;  %10317 = vmatprep.subr.bf16.mxu0 %v11420_v10  ;;  %v11469_v23 = vld [vmem:[%s15021_s3 + $0x214] ss:$12 sps:$4 sm:$0xff]  }
 0x2b9   : > { %10327 = vmatprep.mubr.bf16.mxu0 %v13033_v8 }
 0x2bb   : > { %6856 = vmatpush1.bf16.msra.mxu1 %v11417_v20  ;;  %10318 = vmatpush3.bf16.msra.mxu0 %v11420_v10  ;;  %v11470_v10 = vld [vmem:[%s15021_s3 + $0x5d8] ss:$12 sps:$4 sm:$0xff]  }
 0x2bc   : > { %6857 = vmatprep.subr.bf16.mxu1 %v11423_v15  ;;  %10319 = vmatprep.subr.bf16.mxu0 %v11424_v43 }
 0x2bf   : > { %6858 = vmatpush1.bf16.msra.mxu1 %v11421_v41  ;;  %10320 = vmatpush3.bf16.msra.mxu0 %v11424_v43  ;;  %v11467_v41 = vld [vmem:[%s15021_s3 + $0x210] ss:$12 sps:$4 sm:$0xff]  }
 0x2c0   : > { %6859 = vmatprep.subr.bf16.mxu1 %v11427_v46  ;;  %10321 = vmatprep.subr.bf16.mxu0 %v11428_v54  ;;  %v11471_v46 = vld [vmem:[%s15021_s3 + $0x518] ss:$12 sps:$4 sm:$0xff]  }
 0x2c3   : > { %6860 = vmatpush1.bf16.msra.mxu1 %v11425_v48  ;;  %10322 = vmatpush3.bf16.msra.mxu0 %v11428_v54  ;;  %v11474_v48 = vld [vmem:[%s15021_s3 + $0x22c] ss:$12 sps:$4 sm:$0xff]  }
 0x2c4   : > { %6861 = vmatprep.subr.bf16.mxu1 %v11431_v22  ;;  %10323 = vmatprep.subr.bf16.mxu0 %v11432_v34  ;;  %v11475_v22 = vld [vmem:[%s15021_s3 + $0x5f0] ss:$12 sps:$4 sm:$0xff]  }
 0x2c7   : > { %6862 = vmatpush1.bf16.msra.mxu1 %v11429_v56  ;;  %10324 = vmatpush3.bf16.msra.mxu0 %v11432_v34  ;;  %v11472_v34 = vld [vmem:[%s15021_s3 + $0x228] ss:$12 sps:$4 sm:$0xff]   ;;  %v11476_v56 = vld [vmem:[%s15021_s3 + $0x530] ss:$12 sps:$4 sm:$0xff]  }
 0x2c8   : > { %6863 = vmatprep.subr.bf16.mxu1 %v11435_v58  ;;  %10325 = vmatprep.subr.bf16.mxu0 %v11436_v49  ;;  %v7031_v58 = vrot.slane %v13497_v51, 1 }
 0x2c9   : > { %v3785_v25 = vpop.f32.mrb[44].mxu0 }
 0x2ca   : > { %v14200_v62 = vadd.f32 %v3785_v25, %v13332_v21  ;;  %v3787_v45 = vpop.f32.mrb[45].mxu0  ;;  %v11441_v21 = vld [vmem:[%s15021_s3 + $0x488] ss:$12 sps:$4 sm:$0xff]  }
 0x2cb   : > { %v14207_v6 = vadd.f32 %v3787_v45, %v13342_v61  ;;  %6864 = vmatpush1.bf16.msra.mxu1 %v11433_v27  ;;  %10326 = vmatpush3.bf16.msra.mxu0 %v11436_v49  ;;  %v3789_v3 = vpop.f32.mrb[46].mxu0  ;;  %v14320_v49 = vrot.slane %v13501_v32, 1  ;;  %v11479_v27 = vld [vmem:[%s15021_s3 + $0x484] ss:$12 sps:$4 sm:$0xff]  }
 0x2cc   : > { %6884 = vmatprep.subr.bf16.mxu1 %v11439_v60  ;;  %10008 = vmatprep.subr.bf16.mxu0 %v11440_v63  ;;  %v3790_v61 = vpop.f32.mrb[47].mxu0  ;;  %v11480_v60 = vld [vmem:[%s15021_s3 + $0x608] ss:$12 sps:$4 sm:$0xff]  }
 0x2ce   : > { %6866 = vmatmul.mubr.bf16.vlgmr.msra.gmra.mrb[52].mxu1 %v12906_v44  ;;  %10328 = vmatmul.mubr.bf16.vlgmr.msra.gmra.mrb[84].mxu0 %v14223_v13  ;;  %v11449_v44 = vld [vmem:[%s15021_s3 + $0x1b4] ss:$12 sps:$4 sm:$0xff]  }
 0x2cf   : > { %6885 = vmatpush1.bf16.msra.mxu1 %v11437_v5  ;;  %10009 = vmatpush3.bf16.msra.mxu0 %v11441_v21  ;;  %v11477_v5 = vld [vmem:[%s15021_s3 + $0x480] ss:$12 sps:$4 sm:$0xff]   ;;  %v14339_v21 = vsel %vm3341_vm3, %v7031_v58, %v14320_v49 }
 0x2d0   : > { %6886 = vmatprep.subr.bf16.mxu1 %v11444_v0  ;;  %10010 = vmatprep.subr.bf16.mxu0 %v11445_v52 }
 0x2d1   : > { %6875 = vmatprep.mubr.bf16.mxu1 %v12693_v16  ;;  %7564 = vmatprep.mubr.bf16.mxu0 %v14228_v12  ;;  %v11455_v16 = vld [vmem:[%s15021_s3 + $0x590] ss:$12 sps:$4 sm:$0xff]  }
 0x2d3   : > { %6887 = vmatpush1.bf16.msra.mxu1 %v11442_v31  ;;  %10011 = vmatpush3.bf16.msra.mxu0 %v11446_v36  ;;  %v3988_v36 = vrot.slane %v13596_v26, 4 }
 0x2d4   : > { %6888 = vmatprep.subr.bf16.mxu1 %v11449_v44  ;;  %10012 = vmatprep.subr.bf16.mxu0 %v11450_v24  ;;  %v14352_v44 = vld [vmem:[%s15025_s7 + $0x30] sm:$0x1]  ;;  %v14358_v24 = vld [vmem:[%s15025_s7] sm:$0xff] }
 0x2d6   : > { %6876 = vmatmul.mubr.bf16.gmra.mrb[92].mxu1 %v12922_v4  ;;  %v11460_v4 = vld [vmem:[%s15021_s3 + $0x5a8] ss:$12 sps:$4 sm:$0xff]  }
 0x2d7   : > { %6889 = vmatpush1.bf16.msra.mxu1 %v11447_v30  ;;  %10013 = vmatpush3.bf16.msra.mxu0 %v11451_v59  ;;  %v14364_v59 = vld [vmem:[%s15025_s7 + $0x38] sm:$0x1] }
 0x2d8   : > { %6890 = vmatprep.subr.bf16.mxu1 %v11454_v38  ;;  %10014 = vmatprep.subr.bf16.mxu0 %v11455_v16 }
 0x2d9   : > { %6916 = vmatprep.mubr.bf16.mxu1 %v11633_v33 }
 0x2db   : > { %6891 = vmatpush1.bf16.msra.mxu1 %v11452_v18  ;;  %10015 = vmatpush3.bf16.msra.mxu0 %v11456_v47  ;;  %v11488_v18 = vld [vmem:[%s15021_s3 + $0x638] ss:$12 sps:$4 sm:$0xff]   ;;  %v3989_v47 = vmax.f32 %v13596_v26, %v3988_v36  ;;  %v7037_v26 = vrot.slane %v13656_v35, 1 }
 0x2dc   : > { %6892 = vmatprep.subr.bf16.mxu1 %v11459_v53  ;;  %10016 = vmatprep.subr.bf16.mxu0 %v11460_v4  ;;  %v14394_v4 = vld [vmem:[%s15025_s7 + $0x20] sm:$0xff]  ;;  %v11491_v35 = vld [vmem:[%s15021_s3 + $0x4cc] ss:$12 sps:$4 sm:$0xff]  }
 0x2df   : > { %6893 = vmatpush1.bf16.msra.mxu1 %v11457_v17  ;;  %10017 = vmatpush3.bf16.msra.mxu0 %v11461_v1 }
 0x2e0   : > { %6894 = vmatprep.subr.bf16.mxu1 %v11464_v40  ;;  %10018 = vmatprep.subr.bf16.mxu0 %v11465_v9  ;;  %v11565_v9 = vld [vmem:[%s12651_s19 + $0x20] ss:$0 sps:$4 sm:$0x33]   ;;  %s8066_s19 = sshll.u32 %s312_s10, 4  ;;  %s14978_s19 = int_to_ptr.vmem [resolvable:$true] %s8066_s19 }
 0x2e1   : > { %v3826_v20 = vpop.f32.mrb[0].mxu0  ;;  %s11569_s26 = scalar_lea.vmem %s14978_s19, 16  ;;  %p11576_p0 = scmp.lt.s32.totalorder %s14978_s19, %s11574_s20 }
 0x2e2   : > { %v14294_v15 = vpop.f32.mrb[1].mxu0  ;;  %v3957_v53 = vadd.f32 %v3826_v20, %v14358_v24  ;;  %v11485_v20 = vld [vmem:[%s15021_s3 + $0x4b0] ss:$12 sps:$4 sm:$0xff]   ;;  %p11570_p11 = scmp.ne.s32.totalorder %s14978_s19, %s11569_s26  ;;  %p11577_p1 = scmp.lt.s32.totalorder %s11575_s21, %s11569_s26 }
 0x2e3   : > { %v14296_v43 = vpop.f32.mrb[2].mxu0  ;;  %6895 = vmatpush1.bf16.msra.mxu1 %v11462_v39  ;;  %10019 = vmatpush3.bf16.msra.mxu0 %v11466_v37  ;;  %v14404_v39 = vrot.slane %v11565_v9, 1 }
 0x2e4   : > { %v14304_v54 = vpop.f32.mrb[3].mxu0  ;;  %6896 = vmatprep.subr.bf16.mxu1 %v11469_v23  ;;  %10020 = vmatprep.subr.bf16.mxu0 %v11470_v10  ;;  %p11571_p12 = pnand %p11570_p11, %p11719_p5  ;;  %p11578_p2 = por %p11577_p1, %p11576_p0 }
 0x2e6   : > { %p11572_p13 = pneg %p11571_p12 }
 0x2e7   : > { %6897 = vmatpush1.bf16.msra.mxu1 %v11467_v41  ;;  %10021 = vmatpush3.bf16.msra.mxu0 %v11471_v46 }
 0x2e8   : > { %6898 = vmatprep.subr.bf16.mxu1 %v11474_v48  ;;  %10022 = vmatprep.subr.bf16.mxu0 %v11475_v22  ;;  %v3990_v48 = vrot.slane %v3989_v47, 2  ;;  %p11579_p3 = pnand %p11578_p2, %p11572_p13 }
 0x2e9   : > { %v3836_v63 = vpop.f32.mrb[48].mxu0  ;;  %v14328_v25 = vpop.f32.mrb[76].mxu1 }
 0x2ea   : > { %v3837_v45 = vadd.f32 %v3836_v63, %v14200_v62  ;;  %v3838_v57 = vpop.f32.mrb[49].mxu0  ;;  %v14331_v51 = vpop.f32.mrb[77].mxu1  ;;  %v11483_v62 = vld [vmem:[%s15021_s3 + $0x49c] ss:$12 sps:$4 sm:$0xff]   ;;  %v3991_v63 = vmax.f32 %v3989_v47, %v3990_v48 }
 0x2eb   : > { %v3839_v32 = vadd.f32 %v3838_v57, %v14207_v6  ;;  %6899 = vmatpush1.bf16.msra.mxu1 %v11472_v34  ;;  %10023 = vmatpush3.bf16.msra.mxu0 %v11476_v56  ;;  %v5579_v3 = vpop.f32.mrb[78].mxu1  ;;  %v3840_v0 = vpop.f32.mrb[50].mxu0  ;;  %v11484_v6 = vld [vmem:[%s15021_s3 + $0x620] ss:$12 sps:$4 sm:$0xff]   ;;  %v11489_v56 = vld [vmem:[%s15021_s3 + $0x4c8] ss:$12 sps:$4 sm:$0xff]  }
 0x2ec   : > { %v3945_v52 = vadd.f32 %v3837_v45, %v14009_v7  ;;  %7430 = vmatprep.subr.bf16.mxu1 %v11479_v27  ;;  %10331 = vmatprep.subr.bf16.mxu0 %v11480_v60  ;;  %v5580_v61 = vpop.f32.mrb[79].mxu1  ;;  %v3841_v31 = vpop.f32.mrb[51].mxu0  ;;  %v11496_v27 = vld [vmem:[%s15021_s3 + $0x668] ss:$12 sps:$4 sm:$0xff]   ;;  %v11634_v45 = vmov 1966171168  }
 0x2ed   : > { %v3946_v7 = vadd.f32 %v3839_v32, %v14012_v2  ;;  %v14371_v2 = vld [vmem:[%s15025_s7 + $0x8] sm:$0xff]  ;;  %v3999_v57 = vunpack.c.l.s4 %v11634_v45  ;;  %v4001_v32 = vlaneseq  ;;  %v3992_v61 = vrot.slane %v3991_v63, 1 }
 0x2ee   : > { %v3954_v30 = vadd.f32 %v3945_v52, %v13710_v11  ;;  %6917 = vmatmul.mubr.bf16.vlgmr.msra.gmra.mrb[52].mxu1 %v13033_v8  ;;  %7565 = vmatmul.mubr.bf16.vlgmr.msra.gmra.mrb[88].mxu0 %v14339_v21  ;;  %v11481_v11 = vld [vmem:[%s15021_s3 + $0x498] ss:$12 sps:$4 sm:$0xff]   ;;  %v3958_v1 = vadd.f32 %v14294_v15, %v14371_v2  ;;  %v3961_v15 = vadd.f32 %v14304_v54, %v14394_v4  ;;  %v11493_v0 = vld [vmem:[%s15021_s3 + $0x4e0] ss:$12 sps:$4 sm:$0xff]  }
 0x2ef   : > { %v3955_v38 = vadd.f32 %v3946_v7, %v13714_v14  ;;  %7431 = vmatpush1.bf16.msra.mxu1 %v11477_v5  ;;  %10332 = vmatpush3.bf16.msra.mxu0 %v11480_v60  ;;  %v14380_v8 = vld [vmem:[%s15025_s7 + $0x18] sm:$0xff]  ;;  %v11487_v14 = vld [vmem:[%s15021_s3 + $0x4b4] ss:$12 sps:$4 sm:$0xff]   ;;  %v14424_v54 = vsel %vm3341_vm3, %v7037_v26, %v14404_v39  ;;  %v4000_v31 = vunpack.c.0.s8 %v3999_v57  ;;  %v14446_v36 = vshrl.u32 %v4001_v32, 7 }
 0x2f0   : > { %v3963_v16 = vadd.f32 %v3954_v30, %v14352_v44  ;;  %7432 = vmatprep.subr.bf16.mxu1 %v11483_v62  ;;  %10333 = vmatprep.subr.bf16.mxu0 %v11484_v6  ;;  %v3960_v37 = vadd.f32 %v14296_v43, %v14380_v8  ;;  %v11492_v43 = vld [vmem:[%s15021_s3 + $0x650] ss:$12 sps:$4 sm:$0xff]   ;;  %vm14479_vm5 = vcmp.lt.s32.totalorder %v4001_v32, 384  ;;  %v11509_v57 = vld [vmem:[%s15021_s3 + $0x540] ss:$12 sps:$4 sm:$0xff]  }
 0x2f1   : > { %v3964_v17 = vadd.f32 %v3955_v38, %v14364_v59  ;;  %6926 = vmatprep.mubr.bf16.mxu1 %v11633_v33  ;;  %7572 = vmatprep.mubr.bf16.mxu0 %v14204_v19  ;;  %v11499_v62 = vld [vmem:[%s15021_s3 + $0x4fc] ss:$12 sps:$4 sm:$0xff]   ;;  %v11497_v38 = vld [vmem:[%s15021_s3 + $0x4f8] ss:$12 sps:$4 sm:$0xff]  }
 0x2f2   : > { %v3967_v40 = vsel %vm3966_vm4, %v3963_v16, -inf  ;;  %v11503_v16 = vld [vmem:[%s15021_s3 + $0x514] ss:$12 sps:$4 sm:$0xff]   ;;  %v11501_v26 = vld [vmem:[%s15021_s3 + $0x510] ss:$12 sps:$4 sm:$0xff]  }
 0x2f3   : > { %v3968_v23 = vmax.f32 %v3957_v53, %v3967_v40  ;;  %v3976_v10 = vsel %vm3966_vm4, %v3964_v17, -inf  ;;  %7433 = vmatpush1.bf16.msra.mxu1 %v11481_v11  ;;  %10334 = vmatpush3.bf16.msra.mxu0 %v11484_v6  ;;  %v3993_v53 = vmax.f32 %v3991_v63, %v3992_v61  ;;  %v14458_v17 = vsub.s32 %v4000_v31, %v14446_v36  ;;  %v11518_v61 = vld [vmem:[%s15021_s3 + $0x588] ss:$12 sps:$4 sm:$0xff]   ;;  %v11523_v31 = vld [vmem:[%s15021_s3 + $0x5a4] ss:$12 sps:$4 sm:$0xff]  }
 0x2f4   : > { %v3977_v41 = vmax.f32 %v3958_v1, %v3976_v10  ;;  %7434 = vmatprep.subr.bf16.mxu1 %v11487_v14  ;;  %10335 = vmatprep.subr.bf16.mxu0 %v11488_v18  ;;  %v11504_v14 = vld [vmem:[%s15021_s3 + $0x698] ss:$12 sps:$4 sm:$0xff]  }
 0x2f5   : > { %v3969_v46 = vmax.f32 %v3968_v23, %v3960_v37  ;;  %v11507_v10 = vld [vmem:[%s15021_s3 + $0x52c] ss:$12 sps:$4 sm:$0xff]  }
 0x2f6   : > { %v3978_v22 = vmax.f32 %v3977_v41, %v3961_v15  ;;  %6927 = vmatmul.mubr.bf16.gmra.mrb[96].mxu1 %v14223_v13  ;;  %7573 = vmatmul.mubr.bf16.gmra.mrb[92].mxu0 %v14320_v49  ;;  %v11495_v13 = vld [vmem:[%s15021_s3 + $0x4e4] ss:$12 sps:$4 sm:$0xff]  }
 0x2f7   : > { %v3970_v34 = vrot.slane %v3969_v46, 4  ;;  %7435 = vmatpush1.bf16.msra.mxu1 %v11485_v20  ;;  %10336 = vmatpush3.bf16.msra.mxu0 %v11488_v18  ;;  %v11508_v20 = vld [vmem:[%s15021_s3 + $0x6b0] ss:$12 sps:$4 sm:$0xff]  }
 0x2f8   : > { %v3979_v58 = vrot.slane %v3978_v22, 4  ;;  %7436 = vmatprep.subr.bf16.mxu1 %v11491_v35  ;;  %10337 = vmatprep.subr.bf16.mxu0 %v11492_v43  ;;  %v4011_v35 = vrot.slane %v3993_v53, %v14458_v17 }
 0x2f9   : > { %v3971_v60 = vmax.f32 %v3969_v46, %v3970_v34  ;;  %10347 = vmatprep.mubr.bf16.mxu0 %v14424_v54  ;;  %7462 = vmatprep.mubr.bf16.mxu1 %v14228_v12  ;;  %v11500_v12 = vld [vmem:[%s15021_s3 + $0x680] ss:$12 sps:$4 sm:$0xff]   ;;  %v11505_v46 = vld [vmem:[%s15021_s3 + $0x528] ss:$12 sps:$4 sm:$0xff]  }
 0x2fa   : > { %v3980_v5 = vmax.f32 %v3978_v22, %v3979_v58  ;;  %v11511_v22 = vld [vmem:[%s15021_s3 + $0x544] ss:$12 sps:$4 sm:$0xff]  }
 0x2fb   : > { %v3972_v3 = vrot.slane %v3971_v60, 2  ;;  %7437 = vmatpush1.bf16.msra.mxu1 %v11489_v56  ;;  %10338 = vmatpush3.bf16.msra.mxu0 %v11492_v43 }
 0x2fc   : > { %v3981_v52 = vrot.slane %v3980_v5, 2  ;;  %7438 = vmatprep.subr.bf16.mxu1 %v11495_v13  ;;  %10339 = vmatprep.subr.bf16.mxu0 %v11496_v27 }
 0x2fd   : > { %v3973_v6 = vmax.f32 %v3971_v60, %v3972_v3 }
 0x2fe   : > { %v3982_v7 = vmax.f32 %v3980_v5, %v3981_v52  ;;  %v11512_v52 = vld [vmem:[%s15021_s3 + $0x558] ss:$12 sps:$4 sm:$0xff]  }
 0x2ff   : > { %v3974_v30 = vrot.slane %v3973_v6, 1  ;;  %7439 = vmatpush1.bf16.msra.mxu1 %v11493_v0  ;;  %10340 = vmatpush3.bf16.msra.mxu0 %v11496_v27 }
 0x300   : > { %v3983_v11 = vrot.slane %v3982_v7, 1  ;;  %7440 = vmatprep.subr.bf16.mxu1 %v11499_v62  ;;  %10341 = vmatprep.subr.bf16.mxu0 %v11500_v12  ;;  %v11517_v62 = vld [vmem:[%s15021_s3 + $0x574] ss:$12 sps:$4 sm:$0xff]  }
 0x301   : > { %v3975_v18 = vmax.f32 %v3973_v6, %v3974_v30  ;;  %v9910_v47 = vpop.f32.mrb[52].mxu0  ;;  %v11520_v6 = vld [vmem:[%s15021_s3 + $0x58c] ss:$12 sps:$4 sm:$0xff]   ;;  %v11526_v30 = vld [vmem:[%s15021_s3 + $0x5bc] ss:$12 sps:$4 sm:$0xff]  }
 0x302   : > { %v3984_v1 = vmax.f32 %v3982_v7, %v3983_v11  ;;  %v9911_v40 = vpop.f32.mrb[53].mxu0  ;;  %v11521_v7 = vld [vmem:[%s15021_s3 + $0x5a0] ss:$12 sps:$4 sm:$0xff]  }
 0x303   : > { %7441 = vmatpush1.bf16.msra.mxu1 %v11497_v38  ;;  %10342 = vmatpush3.bf16.msra.mxu0 %v11500_v12  ;;  %v14463_v9 = vadd.f32 %v9911_v40, %v9910_v47  ;;  %v9913_v37 = vpop.f32.mrb[54].mxu0  ;;  %v11515_v12 = vld [vmem:[%s15021_s3 + $0x570] ss:$12 sps:$4 sm:$0xff]   ;;  %v11524_v38 = vld [vmem:[%s15021_s3 + $0x5b8] ss:$12 sps:$4 sm:$0xff]  }
 0x304   : > { %v3997_v23 = vcombine.low %v3975_v18, %v3984_v1  ;;  %7442 = vmatprep.subr.bf16.mxu1 %v11503_v16  ;;  %10343 = vmatprep.subr.bf16.mxu0 %v11504_v14  ;;  %v9914_v15 = vpop.f32.mrb[55].mxu0  ;;  %v11529_v11 = vld [vmem:[%s15021_s3 + $0x5d4] ss:$12 sps:$4 sm:$0xff]   ;;  %v11527_v47 = vld [vmem:[%s15021_s3 + $0x5d0] ss:$12 sps:$4 sm:$0xff]  }
 0x305   : > { %v9915_v41 = vadd.f32 %v9914_v15, %v9913_v37  ;;  %v11532_v40 = vld [vmem:[%s15021_s3 + $0x5ec] ss:$12 sps:$4 sm:$0xff]  }
 0x306   : > { %v4004_v43 = vrot.slane %v3997_v23, %v14458_v17  ;;  %v11530_v23 = vld [vmem:[%s15021_s3 + $0x5e8] ss:$12 sps:$4 sm:$0xff]   ;;  %v11536_v15 = vld [vmem:[%s15021_s3 + $0x618] ss:$12 sps:$4 sm:$0xff]  }
 0x307   : > { %7443 = vmatpush1.bf16.msra.mxu1 %v11501_v26  ;;  %10344 = vmatpush3.bf16.msra.mxu0 %v11504_v14 }
 0x308   : > { %v4012_v48 = vcombine.low %v4004_v43, %v4011_v35  ;;  %7444 = vmatprep.subr.bf16.mxu1 %v11507_v10  ;;  %10345 = vmatprep.subr.bf16.mxu0 %v11508_v20  ;;  %v11533_v10 = vld [vmem:[%s15021_s3 + $0x600] ss:$12 sps:$4 sm:$0xff]   ;;  %v11539_v35 = vld [vmem:[%s15021_s3 + $0x630] ss:$12 sps:$4 sm:$0xff]  }
 0x309   : > { %v5626_v56 = vpop.f32.mrb[80].mxu1  ;;  %v9916_v58 = vpop.f32.mrb[56].mxu0  ;;  %v11547_v43 = vld [vmem:[%s15021_s3 + $0x664] ss:$12 sps:$4 sm:$0xff]  }
 0x30a   : > { %v4019_v13 = vrot.slane %v4012_v48, %v14458_v17  ;;  %v14485_v27 = vadd.f32 %v5626_v56, %v14328_v25  ;;  %v5628_v60 = vpop.f32.mrb[81].mxu1  ;;  %v9917_v63 = vpop.f32.mrb[57].mxu0  ;;  %v11514_v25 = vld [vmem:[%s15021_s3 + $0x55c] ss:$12 sps:$4 sm:$0xff]   ;;  %v11548_v48 = vld [vmem:[%s15021_s3 + $0x678] ss:$12 sps:$4 sm:$0xff]  }
 0x30b   : > { %v14488_v45 = vadd.f32 %v5628_v60, %v14331_v51  ;;  %7445 = vmatpush1.bf16.msra.mxu1 %v11505_v46  ;;  %10346 = vmatpush3.bf16.msra.mxu0 %v11508_v20  ;;  %v5630_v32 = vpop.f32.mrb[82].mxu1  ;;  %v9918_v5 = vadd.f32 %v9917_v63, %v9916_v58  ;;  %v9919_v3 = vpop.f32.mrb[58].mxu0  ;;  %v11538_v20 = vld [vmem:[%s15021_s3 + $0x61c] ss:$12 sps:$4 sm:$0xff]   ;;  %v11545_v46 = vld [vmem:[%s15021_s3 + $0x660] ss:$12 sps:$4 sm:$0xff]  }
 0x30c   : > { %4025 = vst.msk [vmem:[#allocation2] sm:$0x7] %vm14479_vm5, %v4019_v13  ;;  %7446 = vmatprep.subr.bf16.mxu1 %v11511_v22  ;;  %v5631_v0 = vpop.f32.mrb[83].mxu1  ;;  %v9920_v51 = vpop.f32.mrb[59].mxu0  ;;  %v11553_v22 = vld [vmem:[%s15021_s3 + $0x694] ss:$12 sps:$4 sm:$0xff]  }
 0x30d   : > { %v11551_v13 = vld [vmem:[%s15021_s3 + $0x690] ss:$12 sps:$4 sm:$0xff]   ;;  %v11554_v3 = vld [vmem:[%s15021_s3 + $0x6a8] ss:$12 sps:$4 sm:$0xff]  }
 0x30e   : > { %10348 = vmatmul.mubr.bf16.vlgmr.msra.gmra.mrb[96].mxu0 %v14404_v39 }
 0x30f   : > { %7447 = vmatpush1.bf16.msra.mxu1 %v11509_v57  ;;  %v11556_v57 = vld [vmem:[%s15021_s3 + $0x6ac] ss:$12 sps:$4 sm:$0xff]  }
 0x310   : > { %7448 = vmatprep.subr.bf16.mxu1 %v11514_v25 }
 0x313   : > { %7449 = vmatpush1.bf16.msra.mxu1 %v11512_v52 }
 0x314   : > { %7450 = vmatprep.subr.bf16.mxu1 %v11517_v62 }
 0x317   : > { %7451 = vmatpush1.bf16.msra.mxu1 %v11515_v12 }
 0x318   : > { %7452 = vmatprep.subr.bf16.mxu1 %v11520_v6 }
 0x31b   : > { %7453 = vmatpush1.bf16.msra.mxu1 %v11518_v61 }
 0x31c   : > { %7454 = vmatprep.subr.bf16.mxu1 %v11523_v31 }
 0x31f   : > { %7455 = vmatpush1.bf16.msra.mxu1 %v11521_v7 }
 0x320   : > { %7456 = vmatprep.subr.bf16.mxu1 %v11526_v30 }
 0x321   : > { %v10289_v16 = vpop.f32.mrb[60].mxu0 }
 0x322   : > { %v14529_v14 = vadd.f32 %v10289_v16, %v9918_v5  ;;  %v5715_v18 = vpop.f32.mrb[61].mxu0 }
 0x323   : > { %7457 = vmatpush1.bf16.msra.mxu1 %v11524_v38  ;;  %v14535_v53 = vadd.f32 %v14463_v9, %v5715_v18  ;;  %v10290_v1 = vpop.f32.mrb[62].mxu0  ;;  %v11535_v9 = vld [vmem:[%s15021_s3 + $0x604] ss:$12 sps:$4 sm:$0xff]  }
 0x324   : > { %7458 = vmatprep.subr.bf16.mxu1 %v11529_v11  ;;  %v5718_v26 = vpop.f32.mrb[63].mxu0 }
 0x325   : > { %v14540_v37 = vadd.f32 %v9915_v41, %v5718_v26  ;;  %v11541_v41 = vld [vmem:[%s15021_s3 + $0x634] ss:$12 sps:$4 sm:$0xff]  }
 0x327   : > { %7459 = vmatpush1.bf16.msra.mxu1 %v11527_v47 }
 0x328   : > { %7460 = vmatprep.subr.bf16.mxu1 %v11532_v40 }
 0x32b   : > { %7461 = vmatpush1.bf16.msra.mxu1 %v11530_v23 }
 0x32c   : > { %7481 = vmatprep.subr.bf16.mxu1 %v11535_v9 }
 0x32e   : > { %7463 = vmatmul.mubr.bf16.vlgmr.msra.gmra.mrb[52].mxu1 %v14339_v21  ;;  %v11544_v21 = vld [vmem:[%s15021_s3 + $0x64c] ss:$12 sps:$4 sm:$0xff]  }
 0x32f   : > { %7482 = vmatpush1.bf16.msra.mxu1 %v11533_v10  ;;  %7472 = vmatprep.mubr.bf16.mxu1 %v14204_v19  ;;  %v11542_v19 = vld [vmem:[%s15021_s3 + $0x648] ss:$12 sps:$4 sm:$0xff]  }
 0x330   : > { %7483 = vmatprep.subr.bf16.mxu1 %v11538_v20 }
 0x333   : > { %7484 = vmatpush1.bf16.msra.mxu1 %v11536_v15 }
 0x334   : > { %7485 = vmatprep.subr.bf16.mxu1 %v11541_v41 }
 0x336   : > { %7473 = vmatmul.mubr.bf16.gmra.mrb[100].mxu1 %v14320_v49  ;;  %v11550_v49 = vld [vmem:[%s15021_s3 + $0x67c] ss:$12 sps:$4 sm:$0xff]  }
 0x337   : > { %7486 = vmatpush1.bf16.msra.mxu1 %v11539_v35  ;;  %7513 = vmatprep.mubr.bf16.mxu1 %v11633_v33 }
 0x338   : > { %7487 = vmatprep.subr.bf16.mxu1 %v11544_v21 }
 0x33b   : > { %7488 = vmatpush1.bf16.msra.mxu1 %v11542_v19 }
 0x33c   : > { %7489 = vmatprep.subr.bf16.mxu1 %v11547_v43 }
 0x33f   : > { %7490 = vmatpush1.bf16.msra.mxu1 %v11545_v46 }
 0x340   : > { %7491 = vmatprep.subr.bf16.mxu1 %v11550_v49 }
 0x341   : > { %v9948_v56 = vpop.f32.mrb[64].mxu0 }
 0x342   : > { %v9949_v58 = vpop.f32.mrb[65].mxu0 }
 0x343   : > { %7492 = vmatpush1.bf16.msra.mxu1 %v11548_v48  ;;  %v9950_v60 = vadd.f32 %v9949_v58, %v9948_v56  ;;  %v9951_v63 = vpop.f32.mrb[66].mxu0 }
 0x344   : > { %7493 = vmatprep.subr.bf16.mxu1 %v11553_v22  ;;  %v9952_v32 = vpop.f32.mrb[67].mxu0 }
 0x345   : > { %v9953_v5 = vadd.f32 %v9952_v32, %v9951_v63 }
 0x347   : > { %7494 = vmatpush1.bf16.msra.mxu1 %v11551_v13 }
 0x348   : > { %7495 = vmatprep.subr.bf16.mxu1 %v11556_v57 }
 0x349   : > { %v6289_v25 = vpop.f32.mrb[84].mxu1  ;;  %v9954_v0 = vpop.f32.mrb[68].mxu0 }
 0x34a   : > { %v6291_v51 = vpop.f32.mrb[85].mxu1  ;;  %v9955_v52 = vpop.f32.mrb[69].mxu0 }
 0x34b   : > { %7496 = vmatpush1.bf16.msra.mxu1 %v11554_v3  ;;  %v6293_v62 = vpop.f32.mrb[86].mxu1  ;;  %v9956_v12 = vadd.f32 %v9955_v52, %v9954_v0  ;;  %v9957_v6 = vpop.f32.mrb[70].mxu0 }
 0x34c   : > { %v6294_v61 = vpop.f32.mrb[87].mxu1  ;;  %v9958_v31 = vpop.f32.mrb[71].mxu0  ;;  %v7714_v62 = vld [vmem:[%s15023_s5] sm:$0xff]  ;;  %v7733_v6 = vld [vmem:[%s15023_s5 + $0x98] sm:$0xff] }
 0x34d   : > { %v7716_v31 = vld [vmem:[%s15023_s5 + $0x10] sm:$0xff] }
 0x34e   : > { %7514 = vmatmul.mubr.bf16.vlgmr.msra.gmra.mrb[52].mxu1 %v14424_v54 }
 0x34f   : > { %7523 = vmatprep.mubr.bf16.mxu1 %v11633_v33 }
 0x356   : > { %7524 = vmatmul.mubr.bf16.gmra.mrb[104].mxu1 %v14404_v39 }
 0x361   : > { %v10309_v7 = vpop.f32.mrb[72].mxu0 }
 0x362   : > { %v14600_v30 = vadd.f32 %v10309_v7, %v9956_v12  ;;  %v6429_v38 = vpop.f32.mrb[73].mxu0  ;;  %v7732_v12 = vld [vmem:[%s15023_s5 + $0x90] sm:$0xff]  ;;  %v7717_v7 = vld [vmem:[%s15023_s5 + $0x18] sm:$0xff] }
 0x363   : > { %v14602_v11 = vadd.f32 %v9950_v60, %v6429_v38  ;;  %v10310_v16 = vpop.f32.mrb[74].mxu0  ;;  %v10355_v61 = vpack.c.bf16 %v7733_v6, %v7732_v12  ;;  %v10357_v38 = vpack.c.bf16 %v7717_v7, %v7716_v31  ;;  %v7741_v12 = vld [vmem:[%s15023_s5 + $0xd8] sm:$0xff]  ;;  %v7742_v7 = vld [vmem:[%s15023_s5 + $0xe0] sm:$0xff] }
 0x364   : > { %v6432_v18 = vpop.f32.mrb[75].mxu0  ;;  %v7734_v16 = vld [vmem:[%s15023_s5 + $0xa0] sm:$0xff]  ;;  %v7725_v31 = vld [vmem:[%s15023_s5 + $0x58] sm:$0xff] }
 0x365   : > { %v14604_v47 = vadd.f32 %v9953_v5, %v6432_v18  ;;  %v7735_v18 = vld [vmem:[%s15023_s5 + $0xa8] sm:$0xff] }
 0x369   : > { %v6340_v1 = vpop.f32.mrb[88].mxu1 }
 0x36a   : > { %v14606_v40 = vadd.f32 %v6340_v1, %v6289_v25  ;;  %v6342_v26 = vpop.f32.mrb[89].mxu1  ;;  %v10359_v1 = vpack.c.bf16 %v7735_v18, %v7734_v16  ;;  %v7743_v18 = vld [vmem:[%s15023_s5 + $0xe8] sm:$0xff] }
 0x36b   : > { %v14608_v23 = vadd.f32 %v6342_v26, %v6291_v51  ;;  %v6344_v54 = vpop.f32.mrb[90].mxu1  ;;  %v7731_v51 = vld [vmem:[%s15023_s5 + $0x88] sm:$0xff]  ;;  %v7718_v26 = vld [vmem:[%s15023_s5 + $0x20] sm:$0xff] }
 0x36c   : > { %v6345_v33 = vpop.f32.mrb[91].mxu1  ;;  %v7719_v54 = vld [vmem:[%s15023_s5 + $0x28] sm:$0xff] }
 0x381   : > { %v9986_v9 = vpop.f32.mrb[76].mxu0 }
 0x382   : > { %v9987_v39 = vpop.f32.mrb[77].mxu0 }
 0x383   : > { %v9988_v10 = vadd.f32 %v9987_v39, %v9986_v9  ;;  %v9989_v20 = vpop.f32.mrb[78].mxu0  ;;  %v10361_v9 = vpack.c.bf16 %v7719_v54, %v7718_v26  ;;  %v7727_v26 = vld [vmem:[%s15023_s5 + $0x68] sm:$0xff]  ;;  %v10375_v54 = vpack.c.bf16 %v7743_v18, %v7742_v7 }
 0x384   : > { %v9990_v15 = vpop.f32.mrb[79].mxu0 }
 0x385   : > { %v9991_v41 = vadd.f32 %v9990_v15, %v9989_v20  ;;  %v6970_v35 = vadd.f32 %v9988_v10, %v14094_v55  ;;  %v7736_v15 = vld [vmem:[%s15023_s5 + $0xb0] sm:$0xff] }
 0x387   : > { %v6973_v21 = vadd.f32 %v9991_v41, %v14109_v28  ;;  %v7737_v41 = vld [vmem:[%s15023_s5 + $0xb8] sm:$0xff] }
 0x389   : > { %v9992_v19 = vpop.f32.mrb[80].mxu0 }
 0x38a   : > { %v9993_v43 = vpop.f32.mrb[81].mxu0 }
 0x38b   : > { %v9994_v46 = vadd.f32 %v9993_v43, %v9992_v19  ;;  %v9995_v49 = vpop.f32.mrb[82].mxu0  ;;  %v7720_v19 = vld [vmem:[%s15023_s5 + $0x30] sm:$0xff]  ;;  %v7721_v43 = vld [vmem:[%s15023_s5 + $0x38] sm:$0xff] }
 0x38c   : > { %v9996_v48 = vpop.f32.mrb[83].mxu0 }
 0x38d   : > { %v6978_v22 = vadd.f32 %v9994_v46, %v14091_v42  ;;  %v7730_v42 = vld [vmem:[%s15023_s5 + $0x80] sm:$0xff]  ;;  %v10365_v48 = vpack.c.bf16 %v7721_v43, %v7720_v19 }
 0x38e   : > { %v10351_v52 = vpack.c.bf16 %v7731_v51, %v7730_v42 }
 0x390   : > { %10352 = vmatprep.subr.bf16.mxu0 %v10351_v52 }
 0x3a1   : > { %v10329_v56 = vpop.f32.mrb[84].mxu0 }
 0x3a2   : > { %v14613_v58 = vadd.f32 %v10329_v56, %v6978_v22  ;;  %v7017_v13 = vpop.f32.mrb[85].mxu0  ;;  %v7738_v56 = vld [vmem:[%s15023_s5 + $0xc0] sm:$0xff] }
 0x3a3   : > { %v14615_v60 = vadd.f32 %v7017_v13, %v6970_v35  ;;  %v10330_v63 = vpop.f32.mrb[86].mxu0  ;;  %v7739_v13 = vld [vmem:[%s15023_s5 + $0xc8] sm:$0xff] }
 0x3a4   : > { %v7020_v57 = vpop.f32.mrb[87].mxu0  ;;  %v10367_v63 = vpack.c.bf16 %v7739_v13, %v7738_v56 }
 0x3a5   : > { %v14617_v32 = vadd.f32 %v7020_v57, %v6973_v21  ;;  %v10363_v21 = vpack.c.bf16 %v7737_v41, %v7736_v15  ;;  %v7722_v57 = vld [vmem:[%s15023_s5 + $0x40] sm:$0xff] }
 0x3a6   : > { %v7762_v41 = vld [vmem:[%s15023_s5 + $0x180] sm:$0xff] }
 0x3a9   : > { %v6877_v55 = vpop.f32.mrb[92].mxu1 }
 0x3aa   : > { %v6878_v28 = vadd.f32 %v6877_v55, %v13913_v50  ;;  %v6879_v5 = vpop.f32.mrb[93].mxu1  ;;  %v7715_v50 = vld [vmem:[%s15023_s5 + $0x8] sm:$0xff] }
 0x3ab   : > { %v6880_v3 = vadd.f32 %v6879_v5, %v13919_v29  ;;  %v6881_v25 = vpop.f32.mrb[94].mxu1  ;;  %v10353_v29 = vpack.c.bf16 %v7715_v50, %v7714_v62 }
 0x3ac   : > { %v6882_v0 = vpop.f32.mrb[95].mxu1 }
 0x3ad   : > { %10354 = vmatpush3.bf16.msra.mxu0 %v10353_v29  ;;  %v7740_v29 = vld [vmem:[%s15023_s5 + $0xd0] sm:$0xff] }
 0x3ae   : > { %10356 = vmatprep.subr.bf16.mxu0 %v10355_v61  ;;  %v10371_v61 = vpack.c.bf16 %v7741_v12, %v7740_v29 }
 0x3b1   : > { %10358 = vmatpush3.bf16.msra.mxu0 %v10357_v38 }
 0x3b2   : > { %10360 = vmatprep.subr.bf16.mxu0 %v10359_v1  ;;  %v7726_v1 = vld [vmem:[%s15023_s5 + $0x60] sm:$0xff] }
 0x3b5   : > { %10362 = vmatpush3.bf16.msra.mxu0 %v10361_v9  ;;  %v10377_v9 = vpack.c.bf16 %v7727_v26, %v7726_v1 }
 0x3b6   : > { %10364 = vmatprep.subr.bf16.mxu0 %v10363_v21 }
 0x3b9   : > { %10366 = vmatpush3.bf16.msra.mxu0 %v10365_v48 }
 0x3ba   : > { %10368 = vmatprep.subr.bf16.mxu0 %v10367_v63 }
 0x3c1   : > { %v10024_v33 = vpop.f32.mrb[88].mxu0 }
 0x3c2   : > { %v10025_v39 = vpop.f32.mrb[89].mxu0 }
 0x3c3   : > { %v10026_v10 = vadd.f32 %v10025_v39, %v10024_v33  ;;  %v10027_v20 = vpop.f32.mrb[90].mxu0  ;;  %v7744_v33 = vld [vmem:[%s15023_s5 + $0xf0] sm:$0xff] }
 0x3c4   : > { %v10028_v35 = vpop.f32.mrb[91].mxu0 }
 0x3c5   : > { %v10029_v46 = vadd.f32 %v10028_v35, %v10027_v20  ;;  %v7567_v49 = vadd.f32 %v10026_v10, %v14535_v53  ;;  %v7723_v53 = vld [vmem:[%s15023_s5 + $0x48] sm:$0xff]  ;;  %v7728_v10 = vld [vmem:[%s15023_s5 + $0x70] sm:$0xff]  ;;  %v7729_v20 = vld [vmem:[%s15023_s5 + $0x78] sm:$0xff] }
 0x3c6   : > { %v10369_v5 = vpack.c.bf16 %v7723_v53, %v7722_v57  ;;  %v10381_v15 = vpack.c.bf16 %v7729_v20, %v7728_v10  ;;  %v7763_v35 = vld [vmem:[%s15023_s5 + $0x188] sm:$0xff] }
 0x3c7   : > { %v7570_v22 = vadd.f32 %v10029_v46, %v14540_v37  ;;  %v10383_v21 = vpack.c.bf16 %v7763_v35, %v7762_v41 }
 0x3c8   : > { %10370 = vmatpush3.bf16.msra.mxu0 %v10369_v5 }
 0x3c9   : > { %v6928_v55 = vpop.f32.mrb[96].mxu1  ;;  %v10030_v37 = vpop.f32.mrb[92].mxu0  ;;  %10372 = vmatprep.subr.bf16.mxu0 %v10371_v61 }
 0x3ca   : > { %v14683_v25 = vadd.f32 %v6928_v55, %v6878_v28  ;;  %v6930_v0 = vpop.f32.mrb[97].mxu1  ;;  %v10031_v42 = vpop.f32.mrb[93].mxu0 }
 0x3cb   : > { %v14685_v51 = vadd.f32 %v6930_v0, %v6880_v3  ;;  %v10032_v52 = vadd.f32 %v10031_v42, %v10030_v37  ;;  %v10033_v62 = vpop.f32.mrb[94].mxu0  ;;  %v6932_v50 = vpop.f32.mrb[98].mxu1  ;;  %v7724_v3 = vld [vmem:[%s15023_s5 + $0x50] sm:$0xff]  ;;  %v11566_v0 = vld [vmem:[%s15025_s7 + $0x40] sm:$0x1] }
 0x3cc   : > { %v10034_v6 = vpop.f32.mrb[95].mxu0  ;;  %v6933_v28 = vpop.f32.mrb[99].mxu1  ;;  %v10373_v16 = vpack.c.bf16 %v7725_v31, %v7724_v3 }
 0x3cd   : > { %v7575_v38 = vadd.f32 %v10032_v52, %v14529_v14  ;;  %v7745_v14 = vld [vmem:[%s15023_s5 + $0xf8] sm:$0xff] }
 0x3ce   : > { %10374 = vmatpush3.bf16.msra.mxu0 %v10373_v16  ;;  %v10379_v39 = vpack.c.bf16 %v7745_v14, %v7744_v33 }
 0x3cf   : > { %10376 = vmatprep.subr.bf16.mxu0 %v10375_v54 }
 0x3d2   : > { %10378 = vmatpush3.bf16.msra.mxu0 %v10377_v9 }
 0x3d3   : > { %10380 = vmatprep.subr.bf16.mxu0 %v10379_v39 }
 0x3d6   : > { %10382 = vmatpush3.bf16.msra.mxu0 %v10381_v15 }
 0x3d7   : > { %10384 = vmatprep.subr.bf16.mxu0 %v10383_v21 }
 0x3e1   : > { %v10349_v19 = vpop.f32.mrb[96].mxu0 }
 0x3e2   : > { %v7623_v43 = vadd.f32 %v10349_v19, %v7575_v38  ;;  %v7614_v46 = vpop.f32.mrb[97].mxu0 }
 0x3e3   : > { %v7615_v48 = vadd.f32 %v7614_v46, %v7567_v49  ;;  %v10350_v56 = vpop.f32.mrb[98].mxu0  ;;  %v11567_v49 = vld [vmem:[%s15025_s7 + $0x10] sm:$0xff] }
 0x3e4   : > { %v7636_v13 = vadd.f32 %v7623_v43, %v14613_v58  ;;  %v7617_v63 = vpop.f32.mrb[99].mxu0 }
 0x3e5   : > { %v7630_v57 = vadd.f32 %v7615_v48, %v14615_v60  ;;  %v7618_v53 = vadd.f32 %v7617_v63, %v7570_v22 }
 0x3e6   : > { %v7645_v55 = vadd.f32 %v7636_v13, %v14600_v30  ;;  %v11568_v30 = vld [vmem:[%s15025_s7 + $0x28] sm:$0xff] }
 0x3e7   : > { %v7639_v37 = vadd.f32 %v7630_v57, %v14602_v11  ;;  %v7633_v5 = vadd.f32 %v7618_v53, %v14617_v32 }
 0x3e8   : > { %v7654_v42 = vadd.f32 %v11566_v0, %v7645_v55 }
 0x3e9   : > { %v7648_v58 = vadd.f32 %v11567_v49, %v7639_v37  ;;  %v7642_v52 = vadd.f32 %v7633_v5, %v14604_v47 }
 0x3ea   : > { %v7673_v60 = vsel %vm3966_vm4, %v7654_v42, -inf }
 0x3eb   : > { %v7674_v22 = vmax.f32 %v7648_v58, %v7673_v60  ;;  %v7651_v11 = vadd.f32 %v11568_v30, %v7642_v52  ;;  %v7711_v52 = vld [vmem:[%s15022_s4] sm:$0x3f]  ;;  %v7818_v30 = vsub.s32 1, %v14446_v36 }
 0x3ed   : > { %v7675_v32 = vmax.f32 %v7674_v22, %v7651_v11  ;;  %v7814_v11 = vsub.s32 0, %v14446_v36 }
 0x409   : > { %v7474_v62 = vpop.f32.mrb[100].mxu1 }
 0x40a   : > { %v7475_v50 = vadd.f32 %v7474_v62, %v14485_v27  ;;  %v7476_v29 = vpop.f32.mrb[101].mxu1  ;;  %v7676_v27 = vrot.slane %v7675_v32, 4  ;;  %v7826_v62 = vsub.s32 3, %v14446_v36 }
 0x40b   : > { %v7477_v12 = vadd.f32 %v7476_v29, %v14488_v45  ;;  %v7478_v6 = vpop.f32.mrb[102].mxu1  ;;  %v7765_v29 = vld [vmem:[%s15023_s5 + $0x198] sm:$0xff] }
 0x40c   : > { %v7479_v28 = vpop.f32.mrb[103].mxu1  ;;  %v7677_v20 = vmax.f32 %v7675_v32, %v7676_v27  ;;  %v7746_v32 = vld [vmem:[%s15023_s5 + $0x100] sm:$0xff] }
 0x40e   : > { %v7678_v19 = vrot.slane %v7677_v20, 2 }
 0x421   : > { %v7515_v61 = vpop.f32.mrb[52].mxu1 }
 0x422   : > { %v7517_v3 = vpop.f32.mrb[53].mxu1  ;;  %v7646_v39 = vadd.f32 %v7515_v61, %v14358_v24 }
 0x423   : > { %v7519_v47 = vpop.f32.mrb[54].mxu1  ;;  %v7647_v15 = vadd.f32 %v7517_v3, %v14371_v2  ;;  %v7748_v3 = vld [vmem:[%s15023_s5 + $0x110] sm:$0xff] }
 0x424   : > { %v7521_v31 = vpop.f32.mrb[55].mxu1 }
 0x429   : > { %v7525_v7 = vpop.f32.mrb[104].mxu1 }
 0x42a   : > { %v7526_v38 = vadd.f32 %v7525_v7, %v7475_v50  ;;  %v7527_v16 = vpop.f32.mrb[105].mxu1  ;;  %v7764_v50 = vld [vmem:[%s15023_s5 + $0x190] sm:$0xff]  ;;  %v7766_v7 = vld [vmem:[%s15023_s5 + $0x1a0] sm:$0xff] }
 0x42b   : > { %v7528_v18 = vadd.f32 %v7527_v16, %v7477_v12  ;;  %v7529_v1 = vpop.f32.mrb[106].mxu1  ;;  %v10387_v61 = vpack.c.bf16 %v7765_v29, %v7764_v50  ;;  %v7799_v50 = vld [vmem:[%s15023_s5 + $0x2a8] sm:$0xff] }
 0x42c   : > { %v7634_v26 = vadd.f32 %v7526_v38, %v14683_v25  ;;  %v7530_v54 = vpop.f32.mrb[107].mxu1  ;;  %v7649_v25 = vadd.f32 %v7519_v47, %v14380_v8  ;;  %v7749_v47 = vld [vmem:[%s15023_s5 + $0x118] sm:$0xff]  ;;  %v7767_v38 = vld [vmem:[%s15023_s5 + $0x1a8] sm:$0xff]  ;;  %v7750_v1 = vld [vmem:[%s15023_s5 + $0x120] sm:$0xff] }
 0x42d   : > { %v7635_v33 = vadd.f32 %v7528_v18, %v14685_v51  ;;  %v10389_v16 = vpack.c.bf16 %v7749_v47, %v7748_v3  ;;  %v10391_v18 = vpack.c.bf16 %v7767_v38, %v7766_v7  ;;  %v7768_v54 = vld [vmem:[%s15023_s5 + $0x1b0] sm:$0xff]  ;;  %v7801_v3 = vld [vmem:[%s15023_s5 + $0x2b8] sm:$0xff] }
 0x42e   : > { %v7643_v14 = vadd.f32 %v7634_v26, %v14606_v40  ;;  %v7650_v40 = vadd.f32 %v7521_v31, %v14394_v4  ;;  %v7751_v26 = vld [vmem:[%s15023_s5 + $0x128] sm:$0xff]  ;;  %v7784_v7 = vld [vmem:[%s15023_s5 + $0x230] sm:$0xff]  ;;  %v7785_v38 = vld [vmem:[%s15023_s5 + $0x238] sm:$0xff] }
 0x42f   : > { %v7644_v45 = vadd.f32 %v7635_v33, %v14608_v23  ;;  %v7769_v33 = vld [vmem:[%s15023_s5 + $0x1b8] sm:$0xff]  ;;  %v10393_v27 = vpack.c.bf16 %v7751_v26, %v7750_v1  ;;  %v10429_v1 = vpack.c.bf16 %v7785_v38, %v7784_v7 }
 0x430   : > { %v7652_v9 = vadd.f32 %v7643_v14, %v14352_v44  ;;  %v10395_v14 = vpack.c.bf16 %v7769_v33, %v7768_v54  ;;  %v7786_v54 = vld [vmem:[%s15023_s5 + $0x240] sm:$0xff]  ;;  %v7787_v33 = vld [vmem:[%s15023_s5 + $0x248] sm:$0xff] }
 0x431   : > { %v7653_v10 = vadd.f32 %v7644_v45, %v14364_v59  ;;  %v7679_v59 = vmax.f32 %v7677_v20, %v7678_v19  ;;  %v7752_v45 = vld [vmem:[%s15023_s5 + $0x130] sm:$0xff]  ;;  %v7757_v19 = vld [vmem:[%s15023_s5 + $0x158] sm:$0xff] }
 0x432   : > { %v7655_v41 = vsel %vm3966_vm4, %v7652_v9, -inf  ;;  %v7753_v9 = vld [vmem:[%s15023_s5 + $0x138] sm:$0xff] }
 0x433   : > { %v7656_v35 = vmax.f32 %v7646_v39, %v7655_v41  ;;  %v7664_v51 = vsel %vm3966_vm4, %v7653_v10, -inf  ;;  %v7680_v63 = vrot.slane %v7679_v59, 1  ;;  %v7770_v39 = vld [vmem:[%s15023_s5 + $0x1c0] sm:$0xff]  ;;  %v7771_v10 = vld [vmem:[%s15023_s5 + $0x1c8] sm:$0xff]  ;;  %v10397_v20 = vpack.c.bf16 %v7753_v9, %v7752_v45 }
 0x434   : > { %v7665_v21 = vmax.f32 %v7647_v15, %v7664_v51  ;;  %v10399_v15 = vpack.c.bf16 %v7771_v10, %v7770_v39  ;;  %v7754_v41 = vld [vmem:[%s15023_s5 + $0x140] sm:$0xff]  ;;  %v7773_v51 = vld [vmem:[%s15023_s5 + $0x1d8] sm:$0xff]  ;;  %v10433_v45 = vpack.c.bf16 %v7787_v33, %v7786_v54  ;;  %v7788_v39 = vld [vmem:[%s15023_s5 + $0x250] sm:$0xff] }
 0x435   : > { %v7657_v23 = vmax.f32 %v7656_v35, %v7649_v25  ;;  %v7681_v37 = vmax.f32 %v7679_v59, %v7680_v63  ;;  %v7755_v25 = vld [vmem:[%s15023_s5 + $0x148] sm:$0xff]  ;;  %v7772_v35 = vld [vmem:[%s15023_s5 + $0x1d0] sm:$0xff]  ;;  %v7758_v59 = vld [vmem:[%s15023_s5 + $0x160] sm:$0xff] }
 0x436   : > { %v7666_v44 = vmax.f32 %v7665_v21, %v7650_v40  ;;  %v10401_v40 = vpack.c.bf16 %v7755_v25, %v7754_v41  ;;  %v10403_v21 = vpack.c.bf16 %v7773_v51, %v7772_v35  ;;  %v7789_v10 = vld [vmem:[%s15023_s5 + $0x258] sm:$0xff]  ;;  %v7790_v35 = vld [vmem:[%s15023_s5 + $0x260] sm:$0xff]  ;;  %v7791_v51 = vld [vmem:[%s15023_s5 + $0x268] sm:$0xff] }
 0x437   : > { %v7658_v43 = vrot.slane %v7657_v23, 4  ;;  %v7699_v0 = vrot.slane %v7681_v37, %v14458_v17  ;;  %v10437_v41 = vpack.c.bf16 %v7789_v10, %v7788_v39 }
 0x438   : > { %v7667_v24 = vrot.slane %v7666_v44, 4 }
 0x439   : > { %v7659_v46 = vmax.f32 %v7657_v23, %v7658_v43  ;;  %v7756_v23 = vld [vmem:[%s15023_s5 + $0x150] sm:$0xff]  ;;  %v7775_v43 = vld [vmem:[%s15023_s5 + $0x1e8] sm:$0xff] }
 0x43a   : > { %v7668_v48 = vmax.f32 %v7666_v44, %v7667_v24  ;;  %v7774_v44 = vld [vmem:[%s15023_s5 + $0x1e0] sm:$0xff]  ;;  %v10405_v24 = vpack.c.bf16 %v7757_v19, %v7756_v23  ;;  %v10441_v23 = vpack.c.bf16 %v7791_v51, %v7790_v35 }
 0x43b   : > { %v7660_v56 = vrot.slane %v7659_v46, 2 }
 0x43c   : > { %v7669_v2 = vrot.slane %v7668_v48, 2 }
 0x43d   : > { %v7661_v13 = vmax.f32 %v7659_v46, %v7660_v56  ;;  %v10407_v46 = vpack.c.bf16 %v7775_v43, %v7774_v44  ;;  %v7776_v56 = vld [vmem:[%s15023_s5 + $0x1f0] sm:$0xff]  ;;  %v7793_v43 = vld [vmem:[%s15023_s5 + $0x278] sm:$0xff] }
 0x43e   : > { %v7670_v57 = vmax.f32 %v7668_v48, %v7669_v2  ;;  %v7759_v48 = vld [vmem:[%s15023_s5 + $0x168] sm:$0xff]  ;;  %v7777_v2 = vld [vmem:[%s15023_s5 + $0x1f8] sm:$0xff]  ;;  %v7792_v44 = vld [vmem:[%s15023_s5 + $0x270] sm:$0xff] }
 0x43f   : > { %v7662_v8 = vrot.slane %v7661_v13, 1  ;;  %v10411_v63 = vpack.c.bf16 %v7777_v2, %v7776_v56 }
 0x440   : > { %v7671_v53 = vrot.slane %v7670_v57, 1 }
 0x441   : > { %v7663_v55 = vmax.f32 %v7661_v13, %v7662_v8  ;;  %v10409_v13 = vpack.c.bf16 %v7759_v48, %v7758_v59  ;;  %v7761_v8 = vld [vmem:[%s15023_s5 + $0x178] sm:$0xff] }
 0x442   : > { %v7672_v5 = vmax.f32 %v7670_v57, %v7671_v53  ;;  %v7760_v57 = vld [vmem:[%s15023_s5 + $0x170] sm:$0xff]  ;;  %v7794_v53 = vld [vmem:[%s15023_s5 + $0x280] sm:$0xff] }
 0x443   : > { %v10413_v37 = vpack.c.bf16 %v7761_v8, %v7760_v57 }
 0x444   : > { %v7685_v4 = vcombine.low %v7663_v55, %v7672_v5  ;;  %v7795_v55 = vld [vmem:[%s15023_s5 + $0x288] sm:$0xff]  ;;  %v7822_v5 = vsub.s32 2, %v14446_v36 }
 0x446   : > { %v7692_v42 = vrot.slane %v7685_v4, %v14458_v17  ;;  %v10415_v4 = vpack.c.bf16 %v7795_v55, %v7794_v53 }
 0x448   : > { %v7700_v49 = vcombine.low %v7692_v42, %v7699_v0  ;;  %v7778_v0 = vld [vmem:[%s15023_s5 + $0x200] sm:$0xff]  ;;  %v7779_v42 = vld [vmem:[%s15023_s5 + $0x208] sm:$0xff] }
 0x44a   : > { %v7707_v58 = vrot.slane %v7700_v49, %v14458_v17  ;;  %v7747_v17 = vld [vmem:[%s15023_s5 + $0x108] sm:$0xff]  ;;  %v7834_v49 = vsub.s32 5, %v14446_v36 }
 0x44b   : > { %v10385_v28 = vpack.c.bf16 %v7747_v17, %v7746_v32  ;;  %v7781_v32 = vld [vmem:[%s15023_s5 + $0x218] sm:$0xff] }
 0x44c   : > { %7709 = vst.msk [vmem:[#allocation2 + $0x3] sm:$0x7] %vm14479_vm5, %v7707_v58  ;;  %v7796_v58 = vld [vmem:[%s15023_s5 + $0x290] sm:$0xff] }
 0x453   : > { %v7710_v60 = vld [vmem:[#allocation2] sm:$0x3f] }
 0x454   : > { %v7712_v22 = vadd.f32 %v7711_v52, %v7710_v60  ;;  %v7797_v52 = vld [vmem:[%s15023_s5 + $0x298] sm:$0xff]  ;;  %v10417_v60 = vpack.c.bf16 %v7779_v42, %v7778_v0 }
 0x456   : > { %v14776_v34 = vmax.f32 %v7712_v22, 0.0 }
 0x458   : > { %v7819_v12 = vrot.slane %v14776_v34, %v7818_v30  ;;  %v7815_v6 = vrot.slane %v14776_v34, %v7814_v11  ;;  %v7827_v31 = vrot.slane %v14776_v34, %v7826_v62  ;;  %v7823_v22 = vrot.slane %v14776_v34, %v7822_v5  ;;  %v7780_v11 = vld [vmem:[%s15023_s5 + $0x210] sm:$0xff]  ;;  %v7798_v62 = vld [vmem:[%s15023_s5 + $0x2a0] sm:$0xff] }
 0x459   : > { %v10419_v30 = vpack.c.bf16 %v7797_v52, %v7796_v58  ;;  %v7835_v17 = vrot.slane %v14776_v34, %v7834_v49  ;;  %v10421_v29 = vpack.c.bf16 %v7781_v32, %v7780_v11 }
 0x45a   : > { %7906 = vmatprep.mubr.f32.mxu0 %v7819_v12  ;;  %v10423_v12 = vpack.c.bf16 %v7799_v50, %v7798_v62 }
 0x45b   : > { %7907 = vmatmul.mubr.f32.vlgmr.msra.gmra.mrb[100].mxu0 %v7815_v6  ;;  %v7782_v6 = vld [vmem:[%s15023_s5 + $0x220] sm:$0xff] }
 0x45c   : > { %10386 = vmatpush3.bf16.msra.mxu0 %v10385_v28  ;;  %7976 = vmatprep.mubr.f32.mxu0 %v7827_v31  ;;  %v7783_v28 = vld [vmem:[%s15023_s5 + $0x228] sm:$0xff] }
 0x45d   : > { %10388 = vmatprep.subr.bf16.mxu0 %v10387_v61  ;;  %v7800_v61 = vld [vmem:[%s15023_s5 + $0x2b0] sm:$0xff]  ;;  %v10425_v47 = vpack.c.bf16 %v7783_v28, %v7782_v6 }
 0x45e   : > { %v10427_v31 = vpack.c.bf16 %v7801_v3, %v7800_v61 }
 0x460   : > { %10390 = vmatpush3.bf16.msra.mxu0 %v10389_v16  ;;  %v7802_v16 = vld [vmem:[%s15023_s5 + $0x2c0] sm:$0xff] }
 0x461   : > { %10392 = vmatprep.subr.bf16.mxu0 %v10391_v18  ;;  %v7803_v18 = vld [vmem:[%s15023_s5 + $0x2c8] sm:$0xff] }
 0x462   : > { %v10431_v26 = vpack.c.bf16 %v7803_v18, %v7802_v16 }
 0x464   : > { %10394 = vmatpush3.bf16.msra.mxu0 %v10393_v27  ;;  %v7804_v27 = vld [vmem:[%s15023_s5 + $0x2d0] sm:$0xff] }
 0x465   : > { %10396 = vmatprep.subr.bf16.mxu0 %v10395_v14  ;;  %v7805_v14 = vld [vmem:[%s15023_s5 + $0x2d8] sm:$0xff] }
 0x466   : > { %v10435_v9 = vpack.c.bf16 %v7805_v14, %v7804_v27 }
 0x468   : > { %10398 = vmatpush3.bf16.msra.mxu0 %v10397_v20  ;;  %v7806_v20 = vld [vmem:[%s15023_s5 + $0x2e0] sm:$0xff] }
 0x469   : > { %10400 = vmatprep.subr.bf16.mxu0 %v10399_v15  ;;  %v7807_v15 = vld [vmem:[%s15023_s5 + $0x2e8] sm:$0xff] }
 0x46a   : > { %v10439_v25 = vpack.c.bf16 %v7807_v15, %v7806_v20 }
 0x46c   : > { %10402 = vmatpush3.bf16.msra.mxu0 %v10401_v40  ;;  %v7808_v40 = vld [vmem:[%s15023_s5 + $0x2f0] sm:$0xff] }
 0x46d   : > { %10404 = vmatprep.subr.bf16.mxu0 %v10403_v21  ;;  %v7809_v21 = vld [vmem:[%s15023_s5 + $0x2f8] sm:$0xff] }
 0x46e   : > { %v10443_v19 = vpack.c.bf16 %v7809_v21, %v7808_v40 }
 0x470   : > { %10406 = vmatpush3.bf16.msra.mxu0 %v10405_v24  ;;  %v10445_v24 = vpack.c.bf16 %v7793_v43, %v7792_v44 }
 0x471   : > { %10408 = vmatprep.subr.bf16.mxu0 %v10407_v46  ;;  %v7830_v46 = vsub.s32 4, %v14446_v36 }
 0x473   : > { %v7831_v59 = vrot.slane %v14776_v34, %v7830_v46 }
 0x474   : > { %10410 = vmatpush3.bf16.msra.mxu0 %v10409_v13  ;;  %v7810_v13 = vld [vmem:[%s15024_s6] sm:$0x1] }
 0x475   : > { %10412 = vmatprep.subr.bf16.mxu0 %v10411_v63 }
 0x478   : > { %10414 = vmatpush3.bf16.msra.mxu0 %v10413_v37 }
 0x479   : > { %10416 = vmatprep.subr.bf16.mxu0 %v10415_v4 }
 0x47b   : > { %7977 = vmatmul.mubr.f32.vlgmr.msra.gmra.mrb[102].mxu0 %v7823_v22 }
 0x47c   : > { %10418 = vmatpush3.bf16.msra.mxu0 %v10417_v60  ;;  %8046 = vmatprep.mubr.f32.mxu0 %v7835_v17 }
 0x47d   : > { %10420 = vmatprep.subr.bf16.mxu0 %v10419_v30 }
 0x480   : > { %10422 = vmatpush3.bf16.msra.mxu0 %v10421_v29 }
 0x481   : > { %10424 = vmatprep.subr.bf16.mxu0 %v10423_v12 }
 0x484   : > { %10426 = vmatpush3.bf16.msra.mxu0 %v10425_v47 }
 0x485   : > { %10428 = vmatprep.subr.bf16.mxu0 %v10427_v31 }
 0x488   : > { %10430 = vmatpush3.bf16.msra.mxu0 %v10429_v1 }
 0x489   : > { %10432 = vmatprep.subr.bf16.mxu0 %v10431_v26 }
 0x48c   : > { %10434 = vmatpush3.bf16.msra.mxu0 %v10433_v45 }
 0x48d   : > { %10436 = vmatprep.subr.bf16.mxu0 %v10435_v9 }
 0x490   : > { %10438 = vmatpush3.bf16.msra.mxu0 %v10437_v41 }
 0x491   : > { %10440 = vmatprep.subr.bf16.mxu0 %v10439_v25 }
 0x494   : > { %10442 = vmatpush3.bf16.msra.mxu0 %v10441_v23 }
 0x495   : > { %10444 = vmatprep.subr.bf16.mxu0 %v10443_v19 }
 0x498   : > { %10446 = vmatpush3.bf16.msra.mxu0 %v10445_v24 }
 0x49b   : > { %8047 = vmatmul.mubr.f32.vlgmr.msra.gmra.mrb[104].mxu0 %v7831_v59 }
 0x52e   : > { %v10078_v48 = vpop.f32.mrb[100].mxu0 }
 0x52f   : > { %v10079_v56 = vpop.f32.mrb[101].mxu0 }
 0x530   : > { %v10080_v2 = vadd.f32 %v10079_v56, %v10078_v48 }
 0x532   : > { %v7909_v8 = vadd.f32 %v10080_v2, %v7810_v13 }
 0x54e   : > { %v10113_v63 = vpop.f32.mrb[102].mxu0 }
 0x54f   : > { %v10114_v57 = vpop.f32.mrb[103].mxu0 }
 0x550   : > { %v10115_v53 = vadd.f32 %v10114_v57, %v10113_v63 }
 0x552   : > { %v7979_v55 = vadd.f32 %v10115_v53, %v7909_v8 }
 0x56e   : > { %v10148_v36 = vpop.f32.mrb[104].mxu0 }
 0x56f   : > { %v10149_v37 = vpop.f32.mrb[105].mxu0 }
 0x570   : > { %v10150_v34 = vadd.f32 %v10149_v37, %v10148_v36 }
 0x572   : > { %v8049_v5 = vadd.f32 %v10150_v34, %v7979_v55 }
 0x574   : > { %8052 = vst [vmem:[%s312_s10] sm:$0x1] %v8049_v5 }
 0x575   : > { %11582 = shalt.err (!%p11579_p3)
}
 0x576   : > { %s11583_s23 = scalar_lea.hbm %s14976_s17, 16  ;;  %s11587_s22 = scalar_lea.hbm %s15026_s8, 32 }
 0x577   : > { %p11584_p4 = scmp.ne.s32.totalorder %s14976_s17, %s11583_s23  ;;  %p11588_p9 = scmp.lt.u32.totalorder %s14976_s17, %s15026_s8 }
 0x578   : > { %p11589_p10 = scmp.lt.u32.totalorder %s11587_s22, %s11583_s23  ;;  %p11591_p12 = scmp.lt.u32.totalorder %s11583_s23, %s14976_s17 }
 0x579   : > { %p11585_p7 = pnand %p11584_p4, %p11719_p5 }
 0x57a   : > { %p11590_p11 = por %p11589_p10, %p11588_p9 }
 0x57b   : > { %p11586_p8 = pneg %p11585_p7 }
 0x57c   : > { %p11592_p13 = por %p11591_p12, %p11590_p11 }
 0x57e   : > { %p11593_p0 = pnand %p11592_p13, %p11586_p8 }
 0x580   : > { %11596 = shalt.err (!%p11593_p0)
}
 0x581   : > { %10520 = dma.vmem_to_hbm [thread:$0]  (%p11719_p5), %s14978_s19, 16, %s14976_s17, %s8054_s18  }
 0x582 PF: > { %p10526_p1 = scmp.ge.s32.totalorder %s11631_s30, 2  ;;  %s8078_s13 = sand.u32 1, %s11619_s27  }
 0x583   : > { %s8079_s26 = scalar_lea.sflag [#allocation4], %s8078_s13 }
 0x584   : > { %p10523_p2 = pnand %p10526_p1, %p11723_p6 }
 0x586   : > { %11614 = dma.done.wait (!%p10523_p2), %s8079_s26, 16  }
 0x587   : > { %11616 = vsyncadd (!%p10523_p2), %s8079_s26, 4294967280  ;;  %p18_p3 = scmp.ge.s32.totalorder %s11706_s11, 4   ;;  %s15031_s27 = smov %s11623_s28 }
 0x588   : > { %s15032_s28 = smov %s11627_s29  ;;  %s15033_s29 = smov %s11717_s14 }
 0x589   : > { %s15034_s30 = smov %s11706_s11  ;;  %20 = sbr.rel (!%p18_p3) target bundleno = 3 (0x3), region = 98 }
 0x590   :  { %8083 = vsyncpa [#allocation4], 1 }
 0x591   :  { %8085 = vsyncpa [#allocation4 + $0x1], 1 }

</bundles_post_ra>
